<compile_context>
chip_gen: v6e
topology: v6e:2x2x1
jax: 0.10.0
libtpu: 0.0.40
codegen_flags: <defaults>
</compile_context>

<pallas_src>
import functools

import jax
import jax.numpy as jnp
import numpy as np
from jax import lax
from jax.experimental import pallas as pl
from jax.experimental.pallas import tpu as pltpu

EPS = 1e-5  # PyTorch InstanceNorm2d default eps


def _round_up(x, m):
    return (x + m - 1) // m * m


def _in_scale_shift(s1, s2, gamma, beta, inv_hw):
    """Fold single-pass IN stats into per-channel (scale, shift) vectors."""
    mean = s1 * inv_hw                                     # (1, C)
    var = jnp.maximum(s2 * inv_hw - mean * mean, 0.0)      # biased variance
    scale = gamma * lax.rsqrt(var + EPS)
    shift = beta - mean * scale
    return scale, shift


# --------------------------------------------------------------------------
# Pallas kernel: fused residual block, one image per grid step
# --------------------------------------------------------------------------
def _residual_block_kernel(xp_ref, w1_ref, g1_ref, bt1_ref,
                           w2_ref, g2_ref, bt2_ref, o_ref, ypad_ref,
                           *, H, W, WPE, TM, n_chunks):
    """All buffers are flat (rows*WPE, C):

    xp_ref  : (1, (H+3)*WPE, C) reflection-padded input (+slack), compute dtype
    w*_ref  : (9, Cin, Cout) conv taps (tap = kh*3+kw), compute dtype
    g*/bt*  : (1, C) InstanceNorm affine params, f32
    o_ref   : (1, H*WPE, C) extended-width output (cols >= W are garbage), f32
    ypad_ref: ((H+3)*WPE, C) compute-dtype scratch: reflection-padded
              intermediate activation (never leaves VMEM).
    """
    C = o_ref.shape[-1]
    cdt = ypad_ref.dtype
    inv_hw = 1.0 / float(H * W)

    # Column pattern within a (row-aligned) chunk; hoisted, reused everywhere.
    col = lax.broadcasted_iota(jnp.int32, (TM, 1), 0) % WPE
    valid = col < W                                        # real output cols

    # Slack row of ypad is read (only for masked outputs) by kh=2 taps of
    # conv2: make sure it is finite.
    ypad_ref[pl.ds((H + 2) * WPE, WPE), :] = jnp.zeros((WPE, C), cdt)

    # ---- shared 9-tap shifted-matmul conv pass with fused masked IN sums ---
    def conv_pass(load_lhs, w_ref, store_raw):
        def body(m, carry):
            s1, s2 = carry
            j0 = pl.multiple_of(m * TM, 8)
            acc = jnp.zeros((TM, C), jnp.float32)          # lives in vregs
            for kh in range(3):
                for kw in range(3):
                    lhs = load_lhs(j0 + kh * WPE + kw)     # contiguous slice
                    acc = acc + jnp.dot(lhs, w_ref[kh * 3 + kw],
                                        preferred_element_type=jnp.float32)
            am = jnp.where(valid, acc, 0.0)
            store_raw(j0, acc)
            return (s1 + jnp.sum(am, axis=0, keepdims=True),
                    s2 + jnp.sum(am * acc, axis=0, keepdims=True))

        zero = jnp.zeros((1, C), jnp.float32)
        return lax.fori_loop(0, n_chunks, body, (zero, zero))

    # ======================= pass 1: conv1 (raw) ============================
    def load_x(start):
        return xp_ref[0, pl.ds(start, TM), :]

    def store_y1raw(j0, acc):
        # Stage raw conv1 output at its final padded position (+1 col shift
        # done in-register so the store start stays 8-aligned).  The wrapped
        # first element lands on a pad column and is fixed in pass 2.
        staged = jnp.concatenate(
            [jnp.zeros((1, C), jnp.float32), acc[:-1, :]], axis=0)
        ypad_ref[pl.ds(j0 + WPE, TM), :] = staged.astype(cdt)

    s1, s2 = conv_pass(load_x, w1_ref, store_y1raw)
    # Conv bias dropped on purpose: IN subtracts the per-channel mean.
    scale1, shift1 = _in_scale_shift(s1, s2, g1_ref[...], bt1_ref[...], inv_hw)

    # ===== pass 2: in-place IN1 + ReLU on ypad rows 1..H, plus left/right ===
    # reflection columns (col 0 <- col 2, col W+1 <- col W-1), in-register.
    def norm_body(m, _):
        j0 = pl.multiple_of(m * TM, 8)
        base = WPE + j0                                    # row m*rpc+1, col 0
        y = ypad_ref[pl.ds(base, TM), :].astype(jnp.float32)
        y = jnp.maximum(y * scale1 + shift1, 0.0)
        y_p2 = jnp.concatenate(                            # [p] = y[p+2]
            [y[2:, :], jnp.zeros((2, C), jnp.float32)], axis=0)
        y_m2 = jnp.concatenate(                            # [p] = y[p-2]
            [jnp.zeros((2, C), jnp.float32), y[:-2, :]], axis=0)
        y = jnp.where(col == 0, y_p2, y)                   # left pad column
        y = jnp.where(col == W + 1, y_m2, y)               # right pad column
        ypad_ref[pl.ds(base, TM), :] = y.astype(cdt)
        return 0

    lax.fori_loop(0, n_chunks, norm_body, 0)

    # Reflection rows (full padded width; corners come out right because the
    # source rows already carry their fixed pad columns).  Needs H, W >= 2.
    ypad_ref[pl.ds(0, WPE), :] = ypad_ref[pl.ds(2 * WPE, WPE), :]
    ypad_ref[pl.ds((H + 1) * WPE, WPE), :] = ypad_ref[pl.ds((H - 1) * WPE, WPE), :]

    # ======================= pass 3: conv2 (raw) ============================
    def load_y(start):
        return ypad_ref[pl.ds(start, TM), :]

    def store_y2raw(j0, acc):
        o_ref[0, pl.ds(j0, TM), :] = acc.astype(o_ref.dtype)  # stage in out blk

    t1, t2 = conv_pass(load_y, w2_ref, store_y2raw)
    scale2, shift2 = _in_scale_shift(t1, t2, g2_ref[...], bt2_ref[...], inv_hw)

    # ============ pass 4: IN2 + residual add, in place on the output ========
    def finish_body(m, _):
        j0 = pl.multiple_of(m * TM, 8)
        acc2 = o_ref[0, pl.ds(j0, TM), :].astype(jnp.float32)
        ident = xp_ref[0, pl.ds(j0 + WPE + 1, TM), :].astype(jnp.float32)
        out = acc2 * scale2 + shift2 + ident
        o_ref[0, pl.ds(j0, TM), :] = out.astype(o_ref.dtype)
        return 0

    lax.fori_loop(0, n_chunks, finish_body, 0)


# --------------------------------------------------------------------------
# Wrapper (NCHW in / NCHW out, like the PyTorch module)
# --------------------------------------------------------------------------
def _weight_to_taps(w_oihw, dtype):
    """PyTorch conv weight (Cout, Cin, 3, 3) -> (9, Cin, Cout), tap = kh*3+kw."""
    cout, cin, kh, kw = w_oihw.shape
    wt = jnp.transpose(w_oihw, (2, 3, 1, 0))               # (kh, kw, Cin, Cout)
    return wt.reshape(kh * kw, cin, cout).astype(dtype)


@functools.partial(jax.jit, static_argnames=("compute_dtype",))
def residual_layer_forward(x_nchw, params, compute_dtype=jnp.bfloat16):
    n, c, h, w = x_nchw.shape
    assert h >= 2 and w >= 2, "reflection pad of 1 requires H, W >= 2"

    wpe = _round_up(w + 2, 8)           # padded width, 8-sublane aligned
    mpad = (h + 3) * wpe                # H+2 padded rows + 1 slack row, flat
    mext = h * wpe                      # extended (over-wide) output rows

    # rows-per-chunk: largest divisor of H giving <= ~256 flat rows per chunk
    rpc = 1
    for d in range(max(1, 256 // wpe), 0, -1):
        if h % d == 0:
            rpc = d
            break
    tm = rpc * wpe
    n_chunks = h // rpc

    # ---- host-side prep: reflection pad + round-up, already in compute dtype
    x_nhwc = jnp.transpose(x_nchw, (0, 2, 3, 1))
    xp = jnp.pad(x_nhwc, ((0, 0), (1, 1), (1, 1), (0, 0)), mode="reflect")
    xp = jnp.pad(xp, ((0, 0), (0, 1), (0, wpe - (w + 2)), (0, 0)))
    xp_flat = xp.reshape(n, mpad, c).astype(compute_dtype)

    w1 = _weight_to_taps(params["w1"], compute_dtype)
    w2 = _weight_to_taps(params["w2"], compute_dtype)
    g1 = params["g1"].reshape(1, c).astype(jnp.float32)
    bt1 = params["beta1"].reshape(1, c).astype(jnp.float32)
    g2 = params["g2"].reshape(1, c).astype(jnp.float32)
    bt2 = params["beta2"].reshape(1, c).astype(jnp.float32)
    # b1/b2 not passed: a per-channel bias is cancelled by InstanceNorm.

    # VMEM budget: double-buffered in/out blocks + weights + scratch + temps.
    wb = jnp.dtype(compute_dtype).itemsize
    est = (2 * mpad * c * wb            # double-buffered input block
           + 2 * mext * c * 4           # double-buffered output block (f32)
           + 2 * 2 * 9 * c * c * wb     # w1/w2 (assume double-buffered)
           + mpad * c * wb              # ypad scratch
           + 12 * tm * c * 4            # acc / LHS / shift temporaries
           + (4 << 20))                 # slack
    try:
        cap = int(pltpu.get_tpu_info().vmem_capacity_bytes) - (8 << 20)
    except Exception:
        cap = 64 << 20                  # conservative (fits v7x's 64 MiB)
    vmem_limit = int(min(max(est, 16 << 20), cap))

    kernel = functools.partial(_residual_block_kernel, H=h, W=w, WPE=wpe,
                               TM=tm, n_chunks=n_chunks)

    out_flat = pl.pallas_call(
        kernel,
        out_shape=jax.ShapeDtypeStruct((n, mext, c), jnp.float32),
        grid_spec=pltpu.PrefetchScalarGridSpec(
            num_scalar_prefetch=0,
            grid=(n,),
            in_specs=[
                pl.BlockSpec((1, mpad, c), lambda i: (i, 0, 0)),  # padded image
                pl.BlockSpec((9, c, c), lambda i: (0, 0, 0)),     # w1 (resident)
                pl.BlockSpec((1, c), lambda i: (0, 0)),           # gamma1
                pl.BlockSpec((1, c), lambda i: (0, 0)),           # beta1
                pl.BlockSpec((9, c, c), lambda i: (0, 0, 0)),     # w2 (resident)
                pl.BlockSpec((1, c), lambda i: (0, 0)),           # gamma2
                pl.BlockSpec((1, c), lambda i: (0, 0)),           # beta2
            ],
            out_specs=pl.BlockSpec((1, mext, c), lambda i: (i, 0, 0)),
            scratch_shapes=[pltpu.VMEM((mpad, c), compute_dtype)],
        ),
        compiler_params=pltpu.CompilerParams(
            dimension_semantics=("parallel",),
            vmem_limit_bytes=vmem_limit,
        ),
    )(xp_flat, w1, g1, bt1, w2, g2, bt2)

    out = out_flat.reshape(n, h, wpe, c)[:, :, :w, :]       # drop garbage cols
    return jnp.transpose(out, (0, 3, 1, 2))                 # NHWC -> NCHW


# --------------------------------------------------------------------------
# Pure-JAX reference (mirrors the PyTorch forward, including the conv bias)
# --------------------------------------------------------------------------
def _ref_conv_block(x_nchw, w, b, g, beta, relu):
    xp = jnp.pad(x_nchw, ((0, 0), (0, 0), (1, 1), (1, 1)), mode="reflect")
    y = jax.lax.conv_general_dilated(
        xp, w, window_strides=(1, 1), padding="VALID",
        dimension_numbers=("NCHW", "OIHW", "NCHW"))
    y = y + b[None, :, None, None]
    mean = y.mean(axis=(2, 3), keepdims=True)
    var = ((y - mean) ** 2).mean(axis=(2, 3), keepdims=True)
    yn = (y - mean) * jax.lax.rsqrt(var + EPS)
    yn = yn * g[None, :, None, None] + beta[None, :, None, None]
    return jnp.maximum(yn, 0.0) if relu else yn


def _ref_forward(x, params):
    y = _ref_conv_block(x, params["w1"], params["b1"], params["g1"],
                        params["beta1"], True)
    y = _ref_conv_block(y, params["w2"], params["b2"], params["g2"],
                        params["beta2"], False)
    return y + x


# --------------------------------------------------------------------------
if __name__ == "__main__":
    key = jax.random.PRNGKey(0)
    N, C, H, W = 2, 4, 16, 16          # small test shapes (module default C=128)
    K = 3

    k_x, k_w1, k_b1, k_w2, k_b2 = jax.random.split(key, 5)
    x = jax.random.normal(k_x, (N, C, H, W), dtype=jnp.float32)

    fan_in = C * K * K
    scale = 1.0 / np.sqrt(fan_in)
    params = {
        "w1": jax.random.uniform(k_w1, (C, C, K, K), jnp.float32, -scale, scale),
        "b1": jax.random.uniform(k_b1, (C,), jnp.float32, -scale, scale),
        "g1": jnp.ones((C,), jnp.float32),
        "beta1": jnp.zeros((C,), jnp.float32),
        "w2": jax.random.uniform(k_w2, (C, C, K, K), jnp.float32, -scale, scale),
        "b2": jax.random.uniform(k_b2, (C,), jnp.float32, -scale, scale),
        "g2": jnp.ones((C,), jnp.float32),
        "beta2": jnp.zeros((C,), jnp.float32),
    }

    ref = jax.block_until_ready(_ref_forward(x, params))

    # f32 compute path: tight numerical check of the fused kernel semantics.
    out_f32 = jax.block_until_ready(
        residual_layer_forward(x, params, compute_dtype=jnp.float32))
    np.testing.assert_allclose(np.asarray(out_f32), np.asarray(ref),
                               rtol=1e-3, atol=1e-3)

    # bf16 MXU path (production default on v6e/v7x): looser tolerance,
    # stats / normalization / residual remain f32 inside the kernel.
    out_bf16 = jax.block_until_ready(
        residual_layer_forward(x, params, compute_dtype=jnp.bfloat16))
    np.testing.assert_allclose(np.asarray(out_bf16), np.asarray(ref),
                               rtol=5e-2, atol=5e-2)

    print("KERNEL_OK")
</pallas_src>

<mosaic_0001>
module attributes {stable_mosaic.version = 11 : i64} {
  func.func @_residual_block_kernel(%arg0: i32, %arg1: memref<1x456x4xf32, #tpu.memory_space<vmem>>, %arg2: memref<9x4x4xf32, #tpu.memory_space<vmem>>, %arg3: memref<1x4xf32, #tpu.memory_space<vmem>>, %arg4: memref<1x4xf32, #tpu.memory_space<vmem>>, %arg5: memref<9x4x4xf32, #tpu.memory_space<vmem>>, %arg6: memref<1x4xf32, #tpu.memory_space<vmem>>, %arg7: memref<1x4xf32, #tpu.memory_space<vmem>>, %arg8: memref<1x384x4xf32, #tpu.memory_space<vmem>>, %arg9: memref<456x4xf32, #tpu.memory_space<vmem>>) attributes {dimension_semantics = [#tpu.dimension_semantics<parallel>], iteration_bounds = array<i64: 2>, scalar_prefetch = 0 : i64, scratch_operands = 1 : i64, tpu.core_type = #tpu.core_type<tc>, window_params = [{transform_indices = @transform_0, window_bounds = array<i64: 1, 456, 4>}, {pipeline_mode = #tpu.pipeline_mode<synchronous>, transform_indices = @transform_1, window_bounds = array<i64: 9, 4, 4>}, {pipeline_mode = #tpu.pipeline_mode<synchronous>, transform_indices = @transform_2, window_bounds = array<i64: 1, 4>}, {pipeline_mode = #tpu.pipeline_mode<synchronous>, transform_indices = @transform_3, window_bounds = array<i64: 1, 4>}, {pipeline_mode = #tpu.pipeline_mode<synchronous>, transform_indices = @transform_4, window_bounds = array<i64: 9, 4, 4>}, {pipeline_mode = #tpu.pipeline_mode<synchronous>, transform_indices = @transform_5, window_bounds = array<i64: 1, 4>}, {pipeline_mode = #tpu.pipeline_mode<synchronous>, transform_indices = @transform_6, window_bounds = array<i64: 1, 4>}, {transform_indices = @transform_7, window_bounds = array<i64: 1, 384, 4>}]} {
    %0 = tpu.iota {dimensions = array<i32: 0>} : vector<192x1xi32>
    %c24_i32 = arith.constant 24 : i32
    %c0_i32 = arith.constant 0 : i32
    %1 = arith.cmpi eq, %c24_i32, %c0_i32 : i32
    %c1_i32 = arith.constant 1 : i32
    %2 = arith.select %1, %c1_i32, %c24_i32 : i32
    %3 = vector.broadcast %2 : i32 to vector<192x1xi32>
    %4 = arith.remsi %0, %3 : vector<192x1xi32>
    %c0_i32_0 = arith.constant 0 : i32
    %5 = vector.broadcast %c0_i32_0 : i32 to vector<192x1xi32>
    %6 = arith.cmpi ne, %4, %5 : vector<192x1xi32>
    %c0_i32_1 = arith.constant 0 : i32
    %7 = vector.broadcast %c0_i32_1 : i32 to vector<192x1xi32>
    %8 = arith.cmpi slt, %4, %7 : vector<192x1xi32>
    %c0_i32_2 = arith.constant 0 : i32
    %9 = arith.cmpi slt, %2, %c0_i32_2 : i32
    %10 = vector.broadcast %9 : i1 to vector<192x1xi1>
    %11 = vector.broadcast %10 : vector<192x1xi1> to vector<192x1xi1>
    %12 = arith.xori %8, %11 : vector<192x1xi1>
    %13 = arith.andi %12, %6 : vector<192x1xi1>
    %14 = vector.broadcast %2 : i32 to vector<192x1xi32>
    %15 = arith.addi %4, %14 : vector<192x1xi32>
    %16 = arith.select %13, %15, %4 : vector<192x1xi1>, vector<192x1xi32>
    %c16_i32 = arith.constant 16 : i32
    %17 = vector.broadcast %c16_i32 : i32 to vector<192x1xi32>
    %18 = arith.cmpi slt, %16, %17 : vector<192x1xi32>
    %cst = arith.constant 0.000000e+00 : f32
    %19 = vector.broadcast %cst : f32 to vector<24x4xf32>
    %c432 = arith.constant 432 : index
    %c0 = arith.constant 0 : index
    %20 = vector.load %arg9[%c432, %c0] : memref<456x4xf32, #tpu.memory_space<vmem>>, vector<24x4xf32>
    tpu.vector_store %arg9[%c432, %c0], %19 {strides = array<i32>} : memref<456x4xf32, #tpu.memory_space<vmem>>, vector<24x4xf32>,
    %cst_3 = arith.constant 0.000000e+00 : f32
    %21 = vector.broadcast %cst_3 : f32 to vector<1x4xf32>
    %c0_i32_4 = arith.constant 0 : i32
    %c2_i32 = arith.constant 2 : i32
    %22 = arith.addi %c0_i32_4, %c2_i32 : i32
    %c1_i32_5 = arith.constant 1 : i32
    %23:2 = scf.for %arg10 = %c0_i32_4 to %22 step %c1_i32_5 iter_args(%arg11 = %21, %arg12 = %21) -> (vector<1x4xf32>, vector<1x4xf32>)  : i32 {
      %c192_i32 = arith.constant 192 : i32
      %65 = arith.muli %arg10, %c192_i32 : i32
      %66 = tpu.assume_multiple %65, 8 : i32
      %cst_41 = arith.constant 0.000000e+00 : f32
      %67 = vector.broadcast %cst_41 : f32 to vector<192x4xf32>
      %c0_i32_42 = arith.constant 0 : i32
      %68 = arith.addi %66, %c0_i32_42 : i32
      %c0_i32_43 = arith.constant 0 : i32
      %69 = arith.addi %68, %c0_i32_43 : i32
      %c0_44 = arith.constant 0 : index
      %70 = arith.index_cast %69 : i32 to index
      %c0_45 = arith.constant 0 : index
      %71 = vector.load %arg1[%c0_44, %70, %c0_45] : memref<1x456x4xf32, #tpu.memory_space<vmem>>, vector<1x192x4xf32>
      %72 = vector.shape_cast %71 : vector<1x192x4xf32> to vector<192x4xf32>
      %c0_46 = arith.constant 0 : index
      %c0_47 = arith.constant 0 : index
      %c0_48 = arith.constant 0 : index
      %73 = vector.load %arg2[%c0_46, %c0_47, %c0_48] : memref<9x4x4xf32, #tpu.memory_space<vmem>>, vector<1x4x4xf32>
      %74 = vector.shape_cast %73 : vector<1x4x4xf32> to vector<4x4xf32>
      %cst_49 = arith.constant dense<0.000000e+00> : vector<192x4xf32>
      %75 = tpu.matmul %72, %74, %cst_49 {dimension_numbers = #tpu.dot_dimension_numbers<[1], [0], [0], [1], [0, 0, 1, 1], [], []>} : vector<192x4xf32>, vector<4x4xf32>, vector<192x4xf32> -> vector<192x4xf32>
      %76 = arith.addf %67, %75 : vector<192x4xf32>
      %c0_i32_50 = arith.constant 0 : i32
      %77 = arith.addi %66, %c0_i32_50 : i32
      %c1_i32_51 = arith.constant 1 : i32
      %78 = arith.addi %77, %c1_i32_51 : i32
      %c0_52 = arith.constant 0 : index
      %79 = arith.index_cast %78 : i32 to index
      %c0_53 = arith.constant 0 : index
      %80 = vector.load %arg1[%c0_52, %79, %c0_53] : memref<1x456x4xf32, #tpu.memory_space<vmem>>, vector<1x192x4xf32>
      %81 = vector.shape_cast %80 : vector<1x192x4xf32> to vector<192x4xf32>
      %c1 = arith.constant 1 : index
      %c0_54 = arith.constant 0 : index
      %c0_55 = arith.constant 0 : index
      %82 = vector.load %arg2[%c1, %c0_54, %c0_55] : memref<9x4x4xf32, #tpu.memory_space<vmem>>, vector<1x4x4xf32>
      %83 = vector.shape_cast %82 : vector<1x4x4xf32> to vector<4x4xf32>
      %cst_56 = arith.constant dense<0.000000e+00> : vector<192x4xf32>
      %84 = tpu.matmul %81, %83, %cst_56 {dimension_numbers = #tpu.dot_dimension_numbers<[1], [0], [0], [1], [0, 0, 1, 1], [], []>} : vector<192x4xf32>, vector<4x4xf32>, vector<192x4xf32> -> vector<192x4xf32>
      %85 = arith.addf %76, %84 : vector<192x4xf32>
      %c0_i32_57 = arith.constant 0 : i32
      %86 = arith.addi %66, %c0_i32_57 : i32
      %c2_i32_58 = arith.constant 2 : i32
      %87 = arith.addi %86, %c2_i32_58 : i32
      %c0_59 = arith.constant 0 : index
      %88 = arith.index_cast %87 : i32 to index
      %c0_60 = arith.constant 0 : index
      %89 = vector.load %arg1[%c0_59, %88, %c0_60] : memref<1x456x4xf32, #tpu.memory_space<vmem>>, vector<1x192x4xf32>
      %90 = vector.shape_cast %89 : vector<1x192x4xf32> to vector<192x4xf32>
      %c2 = arith.constant 2 : index
      %c0_61 = arith.constant 0 : index
      %c0_62 = arith.constant 0 : index
      %91 = vector.load %arg2[%c2, %c0_61, %c0_62] : memref<9x4x4xf32, #tpu.memory_space<vmem>>, vector<1x4x4xf32>
      %92 = vector.shape_cast %91 : vector<1x4x4xf32> to vector<4x4xf32>
      %cst_63 = arith.constant dense<0.000000e+00> : vector<192x4xf32>
      %93 = tpu.matmul %90, %92, %cst_63 {dimension_numbers = #tpu.dot_dimension_numbers<[1], [0], [0], [1], [0, 0, 1, 1], [], []>} : vector<192x4xf32>, vector<4x4xf32>, vector<192x4xf32> -> vector<192x4xf32>
      %94 = arith.addf %85, %93 : vector<192x4xf32>
      %c24_i32_64 = arith.constant 24 : i32
      %95 = arith.addi %66, %c24_i32_64 : i32
      %c0_i32_65 = arith.constant 0 : i32
      %96 = arith.addi %95, %c0_i32_65 : i32
      %c0_66 = arith.constant 0 : index
      %97 = arith.index_cast %96 : i32 to index
      %c0_67 = arith.constant 0 : index
      %98 = vector.load %arg1[%c0_66, %97, %c0_67] : memref<1x456x4xf32, #tpu.memory_space<vmem>>, vector<1x192x4xf32>
      %99 = vector.shape_cast %98 : vector<1x192x4xf32> to vector<192x4xf32>
      %c3 = arith.constant 3 : index
      %c0_68 = arith.constant 0 : index
      %c0_69 = arith.constant 0 : index
      %100 = vector.load %arg2[%c3, %c0_68, %c0_69] : memref<9x4x4xf32, #tpu.memory_space<vmem>>, vector<1x4x4xf32>
      %101 = vector.shape_cast %100 : vector<1x4x4xf32> to vector<4x4xf32>
      %cst_70 = arith.constant dense<0.000000e+00> : vector<192x4xf32>
      %102 = tpu.matmul %99, %101, %cst_70 {dimension_numbers = #tpu.dot_dimension_numbers<[1], [0], [0], [1], [0, 0, 1, 1], [], []>} : vector<192x4xf32>, vector<4x4xf32>, vector<192x4xf32> -> vector<192x4xf32>
      %103 = arith.addf %94, %102 : vector<192x4xf32>
      %c24_i32_71 = arith.constant 24 : i32
      %104 = arith.addi %66, %c24_i32_71 : i32
      %c1_i32_72 = arith.constant 1 : i32
      %105 = arith.addi %104, %c1_i32_72 : i32
      %c0_73 = arith.constant 0 : index
      %106 = arith.index_cast %105 : i32 to index
      %c0_74 = arith.constant 0 : index
      %107 = vector.load %arg1[%c0_73, %106, %c0_74] : memref<1x456x4xf32, #tpu.memory_space<vmem>>, vector<1x192x4xf32>
      %108 = vector.shape_cast %107 : vector<1x192x4xf32> to vector<192x4xf32>
      %c4 = arith.constant 4 : index
      %c0_75 = arith.constant 0 : index
      %c0_76 = arith.constant 0 : index
      %109 = vector.load %arg2[%c4, %c0_75, %c0_76] : memref<9x4x4xf32, #tpu.memory_space<vmem>>, vector<1x4x4xf32>
      %110 = vector.shape_cast %109 : vector<1x4x4xf32> to vector<4x4xf32>
      %cst_77 = arith.constant dense<0.000000e+00> : vector<192x4xf32>
      %111 = tpu.matmul %108, %110, %cst_77 {dimension_numbers = #tpu.dot_dimension_numbers<[1], [0], [0], [1], [0, 0, 1, 1], [], []>} : vector<192x4xf32>, vector<4x4xf32>, vector<192x4xf32> -> vector<192x4xf32>
      %112 = arith.addf %103, %111 : vector<192x4xf32>
      %c24_i32_78 = arith.constant 24 : i32
      %113 = arith.addi %66, %c24_i32_78 : i32
      %c2_i32_79 = arith.constant 2 : i32
      %114 = arith.addi %113, %c2_i32_79 : i32
      %c0_80 = arith.constant 0 : index
      %115 = arith.index_cast %114 : i32 to index
      %c0_81 = arith.constant 0 : index
      %116 = vector.load %arg1[%c0_80, %115, %c0_81] : memref<1x456x4xf32, #tpu.memory_space<vmem>>, vector<1x192x4xf32>
      %117 = vector.shape_cast %116 : vector<1x192x4xf32> to vector<192x4xf32>
      %c5 = arith.constant 5 : index
      %c0_82 = arith.constant 0 : index
      %c0_83 = arith.constant 0 : index
      %118 = vector.load %arg2[%c5, %c0_82, %c0_83] : memref<9x4x4xf32, #tpu.memory_space<vmem>>, vector<1x4x4xf32>
      %119 = vector.shape_cast %118 : vector<1x4x4xf32> to vector<4x4xf32>
      %cst_84 = arith.constant dense<0.000000e+00> : vector<192x4xf32>
      %120 = tpu.matmul %117, %119, %cst_84 {dimension_numbers = #tpu.dot_dimension_numbers<[1], [0], [0], [1], [0, 0, 1, 1], [], []>} : vector<192x4xf32>, vector<4x4xf32>, vector<192x4xf32> -> vector<192x4xf32>
      %121 = arith.addf %112, %120 : vector<192x4xf32>
      %c48_i32 = arith.constant 48 : i32
      %122 = arith.addi %66, %c48_i32 : i32
      %c0_i32_85 = arith.constant 0 : i32
      %123 = arith.addi %122, %c0_i32_85 : i32
      %c0_86 = arith.constant 0 : index
      %124 = arith.index_cast %123 : i32 to index
      %c0_87 = arith.constant 0 : index
      %125 = vector.load %arg1[%c0_86, %124, %c0_87] : memref<1x456x4xf32, #tpu.memory_space<vmem>>, vector<1x192x4xf32>
      %126 = vector.shape_cast %125 : vector<1x192x4xf32> to vector<192x4xf32>
      %c6 = arith.constant 6 : index
      %c0_88 = arith.constant 0 : index
      %c0_89 = arith.constant 0 : index
      %127 = vector.load %arg2[%c6, %c0_88, %c0_89] : memref<9x4x4xf32, #tpu.memory_space<vmem>>, vector<1x4x4xf32>
      %128 = vector.shape_cast %127 : vector<1x4x4xf32> to vector<4x4xf32>
      %cst_90 = arith.constant dense<0.000000e+00> : vector<192x4xf32>
      %129 = tpu.matmul %126, %128, %cst_90 {dimension_numbers = #tpu.dot_dimension_numbers<[1], [0], [0], [1], [0, 0, 1, 1], [], []>} : vector<192x4xf32>, vector<4x4xf32>, vector<192x4xf32> -> vector<192x4xf32>
      %130 = arith.addf %121, %129 : vector<192x4xf32>
      %c48_i32_91 = arith.constant 48 : i32
      %131 = arith.addi %66, %c48_i32_91 : i32
      %c1_i32_92 = arith.constant 1 : i32
      %132 = arith.addi %131, %c1_i32_92 : i32
      %c0_93 = arith.constant 0 : index
      %133 = arith.index_cast %132 : i32 to index
      %c0_94 = arith.constant 0 : index
      %134 = vector.load %arg1[%c0_93, %133, %c0_94] : memref<1x456x4xf32, #tpu.memory_space<vmem>>, vector<1x192x4xf32>
      %135 = vector.shape_cast %134 : vector<1x192x4xf32> to vector<192x4xf32>
      %c7 = arith.constant 7 : index
      %c0_95 = arith.constant 0 : index
      %c0_96 = arith.constant 0 : index
      %136 = vector.load %arg2[%c7, %c0_95, %c0_96] : memref<9x4x4xf32, #tpu.memory_space<vmem>>, vector<1x4x4xf32>
      %137 = vector.shape_cast %136 : vector<1x4x4xf32> to vector<4x4xf32>
      %cst_97 = arith.constant dense<0.000000e+00> : vector<192x4xf32>
      %138 = tpu.matmul %135, %137, %cst_97 {dimension_numbers = #tpu.dot_dimension_numbers<[1], [0], [0], [1], [0, 0, 1, 1], [], []>} : vector<192x4xf32>, vector<4x4xf32>, vector<192x4xf32> -> vector<192x4xf32>
      %139 = arith.addf %130, %138 : vector<192x4xf32>
      %c48_i32_98 = arith.constant 48 : i32
      %140 = arith.addi %66, %c48_i32_98 : i32
      %c2_i32_99 = arith.constant 2 : i32
      %141 = arith.addi %140, %c2_i32_99 : i32
      %c0_100 = arith.constant 0 : index
      %142 = arith.index_cast %141 : i32 to index
      %c0_101 = arith.constant 0 : index
      %143 = vector.load %arg1[%c0_100, %142, %c0_101] : memref<1x456x4xf32, #tpu.memory_space<vmem>>, vector<1x192x4xf32>
      %144 = vector.shape_cast %143 : vector<1x192x4xf32> to vector<192x4xf32>
      %c8 = arith.constant 8 : index
      %c0_102 = arith.constant 0 : index
      %c0_103 = arith.constant 0 : index
      %145 = vector.load %arg2[%c8, %c0_102, %c0_103] : memref<9x4x4xf32, #tpu.memory_space<vmem>>, vector<1x4x4xf32>
      %146 = vector.shape_cast %145 : vector<1x4x4xf32> to vector<4x4xf32>
      %cst_104 = arith.constant dense<0.000000e+00> : vector<192x4xf32>
      %147 = tpu.matmul %144, %146, %cst_104 {dimension_numbers = #tpu.dot_dimension_numbers<[1], [0], [0], [1], [0, 0, 1, 1], [], []>} : vector<192x4xf32>, vector<4x4xf32>, vector<192x4xf32> -> vector<192x4xf32>
      %148 = arith.addf %139, %147 : vector<192x4xf32>
      %cst_105 = arith.constant 0.000000e+00 : f32
      %149 = vector.shape_cast %18 : vector<192x1xi1> to vector<192x1xi1>
      %150 = vector.broadcast %149 : vector<192x1xi1> to vector<192x4xi1>
      %151 = vector.broadcast %cst_105 : f32 to vector<192x4xf32>
      %152 = arith.select %150, %148, %151 : vector<192x4xi1>, vector<192x4xf32>
      %cst_106 = arith.constant 0.000000e+00 : f32
      %153 = vector.broadcast %cst_106 : f32 to vector<1x4xf32>
      %154 = vector.extract_strided_slice %148 {offsets = [0, 0], sizes = [191, 4], strides = [1, 1]} : vector<192x4xf32> to vector<191x4xf32>
      %155 = tpu.concatenate %153, %154 in 0 : vector<1x4xf32>, vector<191x4xf32> -> vector<192x4xf32>
      %c24_i32_107 = arith.constant 24 : i32
      %156 = arith.addi %66, %c24_i32_107 : i32
      %157 = arith.index_cast %156 : i32 to index
      %c0_108 = arith.constant 0 : index
      %158 = vector.load %arg9[%157, %c0_108] : memref<456x4xf32, #tpu.memory_space<vmem>>, vector<192x4xf32>
      tpu.vector_store %arg9[%157, %c0_108], %155 {strides = array<i32>} : memref<456x4xf32, #tpu.memory_space<vmem>>, vector<192x4xf32>,
      %cst_109 = arith.constant dense<0.000000e+00> : vector<4xf32>
      %159 = vector.multi_reduction <add>, %152, %cst_109 [0] : vector<192x4xf32> to vector<4xf32>
      %160 = vector.shape_cast %159 : vector<4xf32> to vector<1x4xf32>
      %161 = arith.addf %arg11, %160 : vector<1x4xf32>
      %162 = arith.mulf %152, %148 : vector<192x4xf32>
      %cst_110 = arith.constant dense<0.000000e+00> : vector<4xf32>
      %163 = vector.multi_reduction <add>, %162, %cst_110 [0] : vector<192x4xf32> to vector<4xf32>
      %164 = vector.shape_cast %163 : vector<4xf32> to vector<1x4xf32>
      %165 = arith.addf %arg12, %164 : vector<1x4xf32>
      scf.yield %161, %165 : vector<1x4xf32>, vector<1x4xf32>
    }
    %c2_i32_6 = arith.constant 2 : i32
    %c0_7 = arith.constant 0 : index
    %c0_8 = arith.constant 0 : index
    %24 = vector.load %arg3[%c0_7, %c0_8] : memref<1x4xf32, #tpu.memory_space<vmem>>, vector<1x4xf32>
    %c0_9 = arith.constant 0 : index
    %c0_10 = arith.constant 0 : index
    %25 = vector.load %arg4[%c0_9, %c0_10] : memref<1x4xf32, #tpu.memory_space<vmem>>, vector<1x4xf32>
    %cst_11 = arith.constant 3.906250e-03 : f32
    %26 = vector.broadcast %cst_11 : f32 to vector<1x4xf32>
    %27 = arith.mulf %23#0, %26 : vector<1x4xf32>
    %cst_12 = arith.constant 3.906250e-03 : f32
    %28 = vector.broadcast %cst_12 : f32 to vector<1x4xf32>
    %29 = arith.mulf %23#1, %28 : vector<1x4xf32>
    %30 = arith.mulf %27, %27 : vector<1x4xf32>
    %31 = arith.subf %29, %30 : vector<1x4xf32>
    %cst_13 = arith.constant 0.000000e+00 : f32
    %32 = vector.broadcast %cst_13 : f32 to vector<1x4xf32>
    %33 = arith.maximumf %31, %32 : vector<1x4xf32>
    %cst_14 = arith.constant 9.99999974E-6 : f32
    %34 = vector.broadcast %cst_14 : f32 to vector<1x4xf32>
    %35 = arith.addf %33, %34 : vector<1x4xf32>
    %36 = math.rsqrt %35 : vector<1x4xf32>
    %37 = arith.mulf %24, %36 : vector<1x4xf32>
    %38 = arith.mulf %27, %37 : vector<1x4xf32>
    %39 = arith.subf %25, %38 : vector<1x4xf32>
    %c0_i32_15 = arith.constant 0 : i32
    %c2_i32_16 = arith.constant 2 : i32
    %40 = arith.addi %c0_i32_15, %c2_i32_16 : i32
    %c1_i32_17 = arith.constant 1 : i32
    scf.for %arg10 = %c0_i32_15 to %40 step %c1_i32_17  : i32 {
      %c192_i32 = arith.constant 192 : i32
      %65 = arith.muli %arg10, %c192_i32 : i32
      %66 = tpu.assume_multiple %65, 8 : i32
      %c24_i32_41 = arith.constant 24 : i32
      %67 = arith.addi %c24_i32_41, %66 : i32
      %68 = arith.index_cast %67 : i32 to index
      %c0_42 = arith.constant 0 : index
      %69 = vector.load %arg9[%68, %c0_42] : memref<456x4xf32, #tpu.memory_space<vmem>>, vector<192x4xf32>
      %70 = vector.broadcast %37 : vector<1x4xf32> to vector<192x4xf32>
      %71 = arith.mulf %69, %70 : vector<192x4xf32>
      %72 = vector.broadcast %39 : vector<1x4xf32> to vector<192x4xf32>
      %73 = arith.addf %71, %72 : vector<192x4xf32>
      %cst_43 = arith.constant 0.000000e+00 : f32
      %74 = vector.broadcast %cst_43 : f32 to vector<192x4xf32>
      %75 = arith.maximumf %73, %74 : vector<192x4xf32>
      %76 = vector.extract_strided_slice %75 {offsets = [2, 0], sizes = [190, 4], strides = [1, 1]} : vector<192x4xf32> to vector<190x4xf32>
      %cst_44 = arith.constant 0.000000e+00 : f32
      %77 = vector.broadcast %cst_44 : f32 to vector<2x4xf32>
      %78 = tpu.concatenate %76, %77 in 0 : vector<190x4xf32>, vector<2x4xf32> -> vector<192x4xf32>
      %cst_45 = arith.constant 0.000000e+00 : f32
      %79 = vector.broadcast %cst_45 : f32 to vector<2x4xf32>
      %80 = vector.extract_strided_slice %75 {offsets = [0, 0], sizes = [190, 4], strides = [1, 1]} : vector<192x4xf32> to vector<190x4xf32>
      %81 = tpu.concatenate %79, %80 in 0 : vector<2x4xf32>, vector<190x4xf32> -> vector<192x4xf32>
      %c0_i32_46 = arith.constant 0 : i32
      %82 = vector.broadcast %c0_i32_46 : i32 to vector<192x1xi32>
      %83 = arith.cmpi eq, %16, %82 : vector<192x1xi32>
      %84 = vector.shape_cast %83 : vector<192x1xi1> to vector<192x1xi1>
      %85 = vector.broadcast %84 : vector<192x1xi1> to vector<192x4xi1>
      %86 = arith.select %85, %78, %75 : vector<192x4xi1>, vector<192x4xf32>
      %c17_i32 = arith.constant 17 : i32
      %87 = vector.broadcast %c17_i32 : i32 to vector<192x1xi32>
      %88 = arith.cmpi eq, %16, %87 : vector<192x1xi32>
      %89 = vector.shape_cast %88 : vector<192x1xi1> to vector<192x1xi1>
      %90 = vector.broadcast %89 : vector<192x1xi1> to vector<192x4xi1>
      %91 = arith.select %90, %81, %86 : vector<192x4xi1>, vector<192x4xf32>
      %92 = arith.index_cast %67 : i32 to index
      %c0_47 = arith.constant 0 : index
      %93 = vector.load %arg9[%92, %c0_47] : memref<456x4xf32, #tpu.memory_space<vmem>>, vector<192x4xf32>
      tpu.vector_store %arg9[%92, %c0_47], %91 {strides = array<i32>} : memref<456x4xf32, #tpu.memory_space<vmem>>, vector<192x4xf32>,
    }
    %c2_i32_18 = arith.constant 2 : i32
    %c48 = arith.constant 48 : index
    %c0_19 = arith.constant 0 : index
    %41 = vector.load %arg9[%c48, %c0_19] : memref<456x4xf32, #tpu.memory_space<vmem>>, vector<24x4xf32>
    %c0_20 = arith.constant 0 : index
    %c0_21 = arith.constant 0 : index
    %42 = vector.load %arg9[%c0_20, %c0_21] : memref<456x4xf32, #tpu.memory_space<vmem>>, vector<24x4xf32>
    tpu.vector_store %arg9[%c0_20, %c0_21], %41 {strides = array<i32>} : memref<456x4xf32, #tpu.memory_space<vmem>>, vector<24x4xf32>,
    %c360 = arith.constant 360 : index
    %c0_22 = arith.constant 0 : index
    %43 = vector.load %arg9[%c360, %c0_22] : memref<456x4xf32, #tpu.memory_space<vmem>>, vector<24x4xf32>
    %c408 = arith.constant 408 : index
    %c0_23 = arith.constant 0 : index
    %44 = vector.load %arg9[%c408, %c0_23] : memref<456x4xf32, #tpu.memory_space<vmem>>, vector<24x4xf32>
    tpu.vector_store %arg9[%c408, %c0_23], %43 {strides = array<i32>} : memref<456x4xf32, #tpu.memory_space<vmem>>, vector<24x4xf32>,
    %cst_24 = arith.constant 0.000000e+00 : f32
    %45 = vector.broadcast %cst_24 : f32 to vector<1x4xf32>
    %c0_i32_25 = arith.constant 0 : i32
    %c2_i32_26 = arith.constant 2 : i32
    %46 = arith.addi %c0_i32_25, %c2_i32_26 : i32
    %c1_i32_27 = arith.constant 1 : i32
    %47:2 = scf.for %arg10 = %c0_i32_25 to %46 step %c1_i32_27 iter_args(%arg11 = %45, %arg12 = %45) -> (vector<1x4xf32>, vector<1x4xf32>)  : i32 {
      %c192_i32 = arith.constant 192 : i32
      %65 = arith.muli %arg10, %c192_i32 : i32
      %66 = tpu.assume_multiple %65, 8 : i32
      %cst_41 = arith.constant 0.000000e+00 : f32
      %67 = vector.broadcast %cst_41 : f32 to vector<192x4xf32>
      %c0_i32_42 = arith.constant 0 : i32
      %68 = arith.addi %66, %c0_i32_42 : i32
      %c0_i32_43 = arith.constant 0 : i32
      %69 = arith.addi %68, %c0_i32_43 : i32
      %70 = arith.index_cast %69 : i32 to index
      %c0_44 = arith.constant 0 : index
      %71 = vector.load %arg9[%70, %c0_44] : memref<456x4xf32, #tpu.memory_space<vmem>>, vector<192x4xf32>
      %c0_45 = arith.constant 0 : index
      %c0_46 = arith.constant 0 : index
      %c0_47 = arith.constant 0 : index
      %72 = vector.load %arg5[%c0_45, %c0_46, %c0_47] : memref<9x4x4xf32, #tpu.memory_space<vmem>>, vector<1x4x4xf32>
      %73 = vector.shape_cast %72 : vector<1x4x4xf32> to vector<4x4xf32>
      %cst_48 = arith.constant dense<0.000000e+00> : vector<192x4xf32>
      %74 = tpu.matmul %71, %73, %cst_48 {dimension_numbers = #tpu.dot_dimension_numbers<[1], [0], [0], [1], [0, 0, 1, 1], [], []>} : vector<192x4xf32>, vector<4x4xf32>, vector<192x4xf32> -> vector<192x4xf32>
      %75 = arith.addf %67, %74 : vector<192x4xf32>
      %c0_i32_49 = arith.constant 0 : i32
      %76 = arith.addi %66, %c0_i32_49 : i32
      %c1_i32_50 = arith.constant 1 : i32
      %77 = arith.addi %76, %c1_i32_50 : i32
      %78 = arith.index_cast %77 : i32 to index
      %c0_51 = arith.constant 0 : index
      %79 = vector.load %arg9[%78, %c0_51] : memref<456x4xf32, #tpu.memory_space<vmem>>, vector<192x4xf32>
      %c1 = arith.constant 1 : index
      %c0_52 = arith.constant 0 : index
      %c0_53 = arith.constant 0 : index
      %80 = vector.load %arg5[%c1, %c0_52, %c0_53] : memref<9x4x4xf32, #tpu.memory_space<vmem>>, vector<1x4x4xf32>
      %81 = vector.shape_cast %80 : vector<1x4x4xf32> to vector<4x4xf32>
      %cst_54 = arith.constant dense<0.000000e+00> : vector<192x4xf32>
      %82 = tpu.matmul %79, %81, %cst_54 {dimension_numbers = #tpu.dot_dimension_numbers<[1], [0], [0], [1], [0, 0, 1, 1], [], []>} : vector<192x4xf32>, vector<4x4xf32>, vector<192x4xf32> -> vector<192x4xf32>
      %83 = arith.addf %75, %82 : vector<192x4xf32>
      %c0_i32_55 = arith.constant 0 : i32
      %84 = arith.addi %66, %c0_i32_55 : i32
      %c2_i32_56 = arith.constant 2 : i32
      %85 = arith.addi %84, %c2_i32_56 : i32
      %86 = arith.index_cast %85 : i32 to index
      %c0_57 = arith.constant 0 : index
      %87 = vector.load %arg9[%86, %c0_57] : memref<456x4xf32, #tpu.memory_space<vmem>>, vector<192x4xf32>
      %c2 = arith.constant 2 : index
      %c0_58 = arith.constant 0 : index
      %c0_59 = arith.constant 0 : index
      %88 = vector.load %arg5[%c2, %c0_58, %c0_59] : memref<9x4x4xf32, #tpu.memory_space<vmem>>, vector<1x4x4xf32>
      %89 = vector.shape_cast %88 : vector<1x4x4xf32> to vector<4x4xf32>
      %cst_60 = arith.constant dense<0.000000e+00> : vector<192x4xf32>
      %90 = tpu.matmul %87, %89, %cst_60 {dimension_numbers = #tpu.dot_dimension_numbers<[1], [0], [0], [1], [0, 0, 1, 1], [], []>} : vector<192x4xf32>, vector<4x4xf32>, vector<192x4xf32> -> vector<192x4xf32>
      %91 = arith.addf %83, %90 : vector<192x4xf32>
      %c24_i32_61 = arith.constant 24 : i32
      %92 = arith.addi %66, %c24_i32_61 : i32
      %c0_i32_62 = arith.constant 0 : i32
      %93 = arith.addi %92, %c0_i32_62 : i32
      %94 = arith.index_cast %93 : i32 to index
      %c0_63 = arith.constant 0 : index
      %95 = vector.load %arg9[%94, %c0_63] : memref<456x4xf32, #tpu.memory_space<vmem>>, vector<192x4xf32>
      %c3 = arith.constant 3 : index
      %c0_64 = arith.constant 0 : index
      %c0_65 = arith.constant 0 : index
      %96 = vector.load %arg5[%c3, %c0_64, %c0_65] : memref<9x4x4xf32, #tpu.memory_space<vmem>>, vector<1x4x4xf32>
      %97 = vector.shape_cast %96 : vector<1x4x4xf32> to vector<4x4xf32>
      %cst_66 = arith.constant dense<0.000000e+00> : vector<192x4xf32>
      %98 = tpu.matmul %95, %97, %cst_66 {dimension_numbers = #tpu.dot_dimension_numbers<[1], [0], [0], [1], [0, 0, 1, 1], [], []>} : vector<192x4xf32>, vector<4x4xf32>, vector<192x4xf32> -> vector<192x4xf32>
      %99 = arith.addf %91, %98 : vector<192x4xf32>
      %c24_i32_67 = arith.constant 24 : i32
      %100 = arith.addi %66, %c24_i32_67 : i32
      %c1_i32_68 = arith.constant 1 : i32
      %101 = arith.addi %100, %c1_i32_68 : i32
      %102 = arith.index_cast %101 : i32 to index
      %c0_69 = arith.constant 0 : index
      %103 = vector.load %arg9[%102, %c0_69] : memref<456x4xf32, #tpu.memory_space<vmem>>, vector<192x4xf32>
      %c4 = arith.constant 4 : index
      %c0_70 = arith.constant 0 : index
      %c0_71 = arith.constant 0 : index
      %104 = vector.load %arg5[%c4, %c0_70, %c0_71] : memref<9x4x4xf32, #tpu.memory_space<vmem>>, vector<1x4x4xf32>
      %105 = vector.shape_cast %104 : vector<1x4x4xf32> to vector<4x4xf32>
      %cst_72 = arith.constant dense<0.000000e+00> : vector<192x4xf32>
      %106 = tpu.matmul %103, %105, %cst_72 {dimension_numbers = #tpu.dot_dimension_numbers<[1], [0], [0], [1], [0, 0, 1, 1], [], []>} : vector<192x4xf32>, vector<4x4xf32>, vector<192x4xf32> -> vector<192x4xf32>
      %107 = arith.addf %99, %106 : vector<192x4xf32>
      %c24_i32_73 = arith.constant 24 : i32
      %108 = arith.addi %66, %c24_i32_73 : i32
      %c2_i32_74 = arith.constant 2 : i32
      %109 = arith.addi %108, %c2_i32_74 : i32
      %110 = arith.index_cast %109 : i32 to index
      %c0_75 = arith.constant 0 : index
      %111 = vector.load %arg9[%110, %c0_75] : memref<456x4xf32, #tpu.memory_space<vmem>>, vector<192x4xf32>
      %c5 = arith.constant 5 : index
      %c0_76 = arith.constant 0 : index
      %c0_77 = arith.constant 0 : index
      %112 = vector.load %arg5[%c5, %c0_76, %c0_77] : memref<9x4x4xf32, #tpu.memory_space<vmem>>, vector<1x4x4xf32>
      %113 = vector.shape_cast %112 : vector<1x4x4xf32> to vector<4x4xf32>
      %cst_78 = arith.constant dense<0.000000e+00> : vector<192x4xf32>
      %114 = tpu.matmul %111, %113, %cst_78 {dimension_numbers = #tpu.dot_dimension_numbers<[1], [0], [0], [1], [0, 0, 1, 1], [], []>} : vector<192x4xf32>, vector<4x4xf32>, vector<192x4xf32> -> vector<192x4xf32>
      %115 = arith.addf %107, %114 : vector<192x4xf32>
      %c48_i32 = arith.constant 48 : i32
      %116 = arith.addi %66, %c48_i32 : i32
      %c0_i32_79 = arith.constant 0 : i32
      %117 = arith.addi %116, %c0_i32_79 : i32
      %118 = arith.index_cast %117 : i32 to index
      %c0_80 = arith.constant 0 : index
      %119 = vector.load %arg9[%118, %c0_80] : memref<456x4xf32, #tpu.memory_space<vmem>>, vector<192x4xf32>
      %c6 = arith.constant 6 : index
      %c0_81 = arith.constant 0 : index
      %c0_82 = arith.constant 0 : index
      %120 = vector.load %arg5[%c6, %c0_81, %c0_82] : memref<9x4x4xf32, #tpu.memory_space<vmem>>, vector<1x4x4xf32>
      %121 = vector.shape_cast %120 : vector<1x4x4xf32> to vector<4x4xf32>
      %cst_83 = arith.constant dense<0.000000e+00> : vector<192x4xf32>
      %122 = tpu.matmul %119, %121, %cst_83 {dimension_numbers = #tpu.dot_dimension_numbers<[1], [0], [0], [1], [0, 0, 1, 1], [], []>} : vector<192x4xf32>, vector<4x4xf32>, vector<192x4xf32> -> vector<192x4xf32>
      %123 = arith.addf %115, %122 : vector<192x4xf32>
      %c48_i32_84 = arith.constant 48 : i32
      %124 = arith.addi %66, %c48_i32_84 : i32
      %c1_i32_85 = arith.constant 1 : i32
      %125 = arith.addi %124, %c1_i32_85 : i32
      %126 = arith.index_cast %125 : i32 to index
      %c0_86 = arith.constant 0 : index
      %127 = vector.load %arg9[%126, %c0_86] : memref<456x4xf32, #tpu.memory_space<vmem>>, vector<192x4xf32>
      %c7 = arith.constant 7 : index
      %c0_87 = arith.constant 0 : index
      %c0_88 = arith.constant 0 : index
      %128 = vector.load %arg5[%c7, %c0_87, %c0_88] : memref<9x4x4xf32, #tpu.memory_space<vmem>>, vector<1x4x4xf32>
      %129 = vector.shape_cast %128 : vector<1x4x4xf32> to vector<4x4xf32>
      %cst_89 = arith.constant dense<0.000000e+00> : vector<192x4xf32>
      %130 = tpu.matmul %127, %129, %cst_89 {dimension_numbers = #tpu.dot_dimension_numbers<[1], [0], [0], [1], [0, 0, 1, 1], [], []>} : vector<192x4xf32>, vector<4x4xf32>, vector<192x4xf32> -> vector<192x4xf32>
      %131 = arith.addf %123, %130 : vector<192x4xf32>
      %c48_i32_90 = arith.constant 48 : i32
      %132 = arith.addi %66, %c48_i32_90 : i32
      %c2_i32_91 = arith.constant 2 : i32
      %133 = arith.addi %132, %c2_i32_91 : i32
      %134 = arith.index_cast %133 : i32 to index
      %c0_92 = arith.constant 0 : index
      %135 = vector.load %arg9[%134, %c0_92] : memref<456x4xf32, #tpu.memory_space<vmem>>, vector<192x4xf32>
      %c8 = arith.constant 8 : index
      %c0_93 = arith.constant 0 : index
      %c0_94 = arith.constant 0 : index
      %136 = vector.load %arg5[%c8, %c0_93, %c0_94] : memref<9x4x4xf32, #tpu.memory_space<vmem>>, vector<1x4x4xf32>
      %137 = vector.shape_cast %136 : vector<1x4x4xf32> to vector<4x4xf32>
      %cst_95 = arith.constant dense<0.000000e+00> : vector<192x4xf32>
      %138 = tpu.matmul %135, %137, %cst_95 {dimension_numbers = #tpu.dot_dimension_numbers<[1], [0], [0], [1], [0, 0, 1, 1], [], []>} : vector<192x4xf32>, vector<4x4xf32>, vector<192x4xf32> -> vector<192x4xf32>
      %139 = arith.addf %131, %138 : vector<192x4xf32>
      %cst_96 = arith.constant 0.000000e+00 : f32
      %140 = vector.shape_cast %18 : vector<192x1xi1> to vector<192x1xi1>
      %141 = vector.broadcast %140 : vector<192x1xi1> to vector<192x4xi1>
      %142 = vector.broadcast %cst_96 : f32 to vector<192x4xf32>
      %143 = arith.select %141, %139, %142 : vector<192x4xi1>, vector<192x4xf32>
      %c0_97 = arith.constant 0 : index
      %144 = arith.index_cast %66 : i32 to index
      %c0_98 = arith.constant 0 : index
      %145 = vector.load %arg8[%c0_97, %144, %c0_98] : memref<1x384x4xf32, #tpu.memory_space<vmem>>, vector<1x192x4xf32>
      %146 = vector.shape_cast %145 : vector<1x192x4xf32> to vector<192x4xf32>
      %147 = vector.shape_cast %139 : vector<192x4xf32> to vector<1x192x4xf32>
      tpu.vector_store %arg8[%c0_97, %144, %c0_98], %147 {strides = array<i32>} : memref<1x384x4xf32, #tpu.memory_space<vmem>>, vector<1x192x4xf32>,
      %cst_99 = arith.constant dense<0.000000e+00> : vector<4xf32>
      %148 = vector.multi_reduction <add>, %143, %cst_99 [0] : vector<192x4xf32> to vector<4xf32>
      %149 = vector.shape_cast %148 : vector<4xf32> to vector<1x4xf32>
      %150 = arith.addf %arg11, %149 : vector<1x4xf32>
      %151 = arith.mulf %143, %139 : vector<192x4xf32>
      %cst_100 = arith.constant dense<0.000000e+00> : vector<4xf32>
      %152 = vector.multi_reduction <add>, %151, %cst_100 [0] : vector<192x4xf32> to vector<4xf32>
      %153 = vector.shape_cast %152 : vector<4xf32> to vector<1x4xf32>
      %154 = arith.addf %arg12, %153 : vector<1x4xf32>
      scf.yield %150, %154 : vector<1x4xf32>, vector<1x4xf32>
    }
    %c2_i32_28 = arith.constant 2 : i32
    %c0_29 = arith.constant 0 : index
    %c0_30 = arith.constant 0 : index
    %48 = vector.load %arg6[%c0_29, %c0_30] : memref<1x4xf32, #tpu.memory_space<vmem>>, vector<1x4xf32>
    %c0_31 = arith.constant 0 : index
    %c0_32 = arith.constant 0 : index
    %49 = vector.load %arg7[%c0_31, %c0_32] : memref<1x4xf32, #tpu.memory_space<vmem>>, vector<1x4xf32>
    %cst_33 = arith.constant 3.906250e-03 : f32
    %50 = vector.broadcast %cst_33 : f32 to vector<1x4xf32>
    %51 = arith.mulf %47#0, %50 : vector<1x4xf32>
    %cst_34 = arith.constant 3.906250e-03 : f32
    %52 = vector.broadcast %cst_34 : f32 to vector<1x4xf32>
    %53 = arith.mulf %47#1, %52 : vector<1x4xf32>
    %54 = arith.mulf %51, %51 : vector<1x4xf32>
    %55 = arith.subf %53, %54 : vector<1x4xf32>
    %cst_35 = arith.constant 0.000000e+00 : f32
    %56 = vector.broadcast %cst_35 : f32 to vector<1x4xf32>
    %57 = arith.maximumf %55, %56 : vector<1x4xf32>
    %cst_36 = arith.constant 9.99999974E-6 : f32
    %58 = vector.broadcast %cst_36 : f32 to vector<1x4xf32>
    %59 = arith.addf %57, %58 : vector<1x4xf32>
    %60 = math.rsqrt %59 : vector<1x4xf32>
    %61 = arith.mulf %48, %60 : vector<1x4xf32>
    %62 = arith.mulf %51, %61 : vector<1x4xf32>
    %63 = arith.subf %49, %62 : vector<1x4xf32>
    %c0_i32_37 = arith.constant 0 : i32
    %c2_i32_38 = arith.constant 2 : i32
    %64 = arith.addi %c0_i32_37, %c2_i32_38 : i32
    %c1_i32_39 = arith.constant 1 : i32
    scf.for %arg10 = %c0_i32_37 to %64 step %c1_i32_39  : i32 {
      %c192_i32 = arith.constant 192 : i32
      %65 = arith.muli %arg10, %c192_i32 : i32
      %66 = tpu.assume_multiple %65, 8 : i32
      %c0_41 = arith.constant 0 : index
      %67 = arith.index_cast %66 : i32 to index
      %c0_42 = arith.constant 0 : index
      %68 = vector.load %arg8[%c0_41, %67, %c0_42] : memref<1x384x4xf32, #tpu.memory_space<vmem>>, vector<1x192x4xf32>
      %69 = vector.shape_cast %68 : vector<1x192x4xf32> to vector<192x4xf32>
      %c24_i32_43 = arith.constant 24 : i32
      %70 = arith.addi %66, %c24_i32_43 : i32
      %c1_i32_44 = arith.constant 1 : i32
      %71 = arith.addi %70, %c1_i32_44 : i32
      %c0_45 = arith.constant 0 : index
      %72 = arith.index_cast %71 : i32 to index
      %c0_46 = arith.constant 0 : index
      %73 = vector.load %arg1[%c0_45, %72, %c0_46] : memref<1x456x4xf32, #tpu.memory_space<vmem>>, vector<1x192x4xf32>
      %74 = vector.shape_cast %73 : vector<1x192x4xf32> to vector<192x4xf32>
      %75 = vector.broadcast %61 : vector<1x4xf32> to vector<192x4xf32>
      %76 = arith.mulf %69, %75 : vector<192x4xf32>
      %77 = vector.broadcast %63 : vector<1x4xf32> to vector<192x4xf32>
      %78 = arith.addf %76, %77 : vector<192x4xf32>
      %79 = arith.addf %78, %74 : vector<192x4xf32>
      %c0_47 = arith.constant 0 : index
      %80 = arith.index_cast %66 : i32 to index
      %c0_48 = arith.constant 0 : index
      %81 = vector.load %arg8[%c0_47, %80, %c0_48] : memref<1x384x4xf32, #tpu.memory_space<vmem>>, vector<1x192x4xf32>
      %82 = vector.shape_cast %81 : vector<1x192x4xf32> to vector<192x4xf32>
      %83 = vector.shape_cast %79 : vector<192x4xf32> to vector<1x192x4xf32>
      tpu.vector_store %arg8[%c0_47, %80, %c0_48], %83 {strides = array<i32>} : memref<1x384x4xf32, #tpu.memory_space<vmem>>, vector<1x192x4xf32>,
    }
    %c2_i32_40 = arith.constant 2 : i32
    return
  }
  func.func @transform_0(%arg0: i32) -> (i32, i32, i32) {
    %c0_i32 = arith.constant 0 : i32
    %c0_i32_0 = arith.constant 0 : i32
    %c0_i32_1 = arith.constant 0 : i32
    return %arg0, %c0_i32, %c0_i32_0 : i32, i32, i32
  }
  func.func @transform_1(%arg0: i32) -> (i32, i32, i32) {
    %c0_i32 = arith.constant 0 : i32
    %c0_i32_0 = arith.constant 0 : i32
    %c0_i32_1 = arith.constant 0 : i32
    %c0_i32_2 = arith.constant 0 : i32
    return %c0_i32, %c0_i32_0, %c0_i32_1 : i32, i32, i32
  }
  func.func @transform_2(%arg0: i32) -> (i32, i32) {
    %c0_i32 = arith.constant 0 : i32
    %c0_i32_0 = arith.constant 0 : i32
    %c0_i32_1 = arith.constant 0 : i32
    return %c0_i32, %c0_i32_0 : i32, i32
  }
  func.func @transform_3(%arg0: i32) -> (i32, i32) {
    %c0_i32 = arith.constant 0 : i32
    %c0_i32_0 = arith.constant 0 : i32
    %c0_i32_1 = arith.constant 0 : i32
    return %c0_i32, %c0_i32_0 : i32, i32
  }
  func.func @transform_4(%arg0: i32) -> (i32, i32, i32) {
    %c0_i32 = arith.constant 0 : i32
    %c0_i32_0 = arith.constant 0 : i32
    %c0_i32_1 = arith.constant 0 : i32
    %c0_i32_2 = arith.constant 0 : i32
    return %c0_i32, %c0_i32_0, %c0_i32_1 : i32, i32, i32
  }
  func.func @transform_5(%arg0: i32) -> (i32, i32) {
    %c0_i32 = arith.constant 0 : i32
    %c0_i32_0 = arith.constant 0 : i32
    %c0_i32_1 = arith.constant 0 : i32
    return %c0_i32, %c0_i32_0 : i32, i32
  }
  func.func @transform_6(%arg0: i32) -> (i32, i32) {
    %c0_i32 = arith.constant 0 : i32
    %c0_i32_0 = arith.constant 0 : i32
    %c0_i32_1 = arith.constant 0 : i32
    return %c0_i32, %c0_i32_0 : i32, i32
  }
  func.func @transform_7(%arg0: i32) -> (i32, i32, i32) {
    %c0_i32 = arith.constant 0 : i32
    %c0_i32_0 = arith.constant 0 : i32
    %c0_i32_1 = arith.constant 0 : i32
    return %arg0, %c0_i32, %c0_i32_0 : i32, i32, i32
  }
}

</mosaic_0001>

<bundles_post_ra>
// kernel: residual_layer_forward.1
= control target key start
LH: loop header
LB: loop body
LE: loop exit
PB: predicated region body
PF: predicated region fallthrough
CT: control target
= control target key end

     0   :  { %s9997_s24 = smov 0   ;;  %s13493_s0 = inlined_call_operand.vmem [shape: f32[2,456,4], index: 0, kind: input, shape index: {}]   ;;  %s13494_s1 = inlined_call_operand.vmem [shape: f32[9,4,4], index: 1, kind: input, shape index: {}]   ;;  %s13495_s2 = inlined_call_operand.vmem [shape: f32[1,4], index: 2, kind: input, shape index: {}]   ;;  %s13496_s3 = inlined_call_operand.vmem [shape: f32[1,4], index: 3, kind: input, shape index: {}]   ;;  %s13497_s4 = inlined_call_operand.vmem [shape: f32[9,4,4], index: 4, kind: input, shape index: {}]   ;;  %s13498_s5 = inlined_call_operand.vmem [shape: f32[1,4], index: 5, kind: input, shape index: {}]   ;;  %s13499_s6 = inlined_call_operand.vmem [shape: f32[1,4], index: 6, kind: input, shape index: {}]   ;;  %s13500_s7 = inlined_call_operand.vmem [shape: f32[2,384,4], index: 7, kind: output, shape index: {}]  }
   0x1 LB: > { %s7664_s25 = sadd.s32 4294967295, %s9922_s24   ;;  %p7668_p0 = scmp.ge.s32.totalorder %s9922_s24, 1  ;;  %s9922_s24 = sphi %s9997_s24, %s17_s24  }
   0x2   : > { %p237_p1 = scmp.lt.s32.totalorder %s9922_s24, 3 }
   0x4   : > { %p238_p2 = pnand %p7668_p0, %p237_p1 }
   0x6   : > { %241 = sbr.rel (%p238_p2) target bundleno = 1168 (0x490), region = 48 }
   0xb   : > { %p269_p3 = scmp.lt.s32.totalorder %s7664_s25, 1  ;;  %v279_v0 = vlaneseq  ;;  %vm13501_vm0 = vcmask 31744   ;;  %v9956_v1 = vmov 0.0   ;;  %s10637_s11 = smov 0  }
   0xc   : > { %713 = vst.msk [vmem:[#allocation2 + $0x1b0] sm:$0xff] %vm13501_vm0, %v9956_v1  ;;  %714 = vst.msk [vmem:[#allocation2 + $0x1b8] sm:$0xff] %vm13501_vm0, %v9956_v1 }
   0xd   : > { %715 = vst.msk [vmem:[#allocation2 + $0x1c0] sm:$0xff] %vm13501_vm0, %v9956_v1  ;;  %s14460_s25 = smov (!%p269_p3, %s7664_s25), 1  ;;  %v10008_v2 = vshrl.u32 %v279_v0, 7 }
   0xe   : > { %s9757_s26 = smul.u32 456, %s14460_s25 }
   0xf   : > { %13580 = vst [vmem:[#allocation3_spill] sm:$0xff] %v10008_v2  ;;  %s9758_s27 = smul.u32 384, %s14460_s25  ;;  %v10016_v3 = vadd.s32 8, %v10008_v2  ;;  %v10024_v4 = vadd.s32 16, %v10008_v2  ;;  %v10027_v5 = vadd.s32 24, %v10008_v2  ;;  %v10030_v6 = vadd.s32 32, %v10008_v2 }
  0x10   : > { %s10013_s30 = scalar_lea.vmem %s13493_s0, %s9757_s26  ;;  %v10033_v7 = vadd.s32 40, %v10008_v2  ;;  %v10036_v8 = vadd.s32 48, %v10008_v2  ;;  %v10039_v9 = vadd.s32 56, %v10008_v2  ;;  %v10042_v10 = vadd.s32 64, %v10008_v2 }
  0x11   : > { %s10021_s10 = scalar_lea.vmem %s13500_s7, %s9758_s27  ;;  %v10045_v11 = vmul.u32.u64.low 2863311531, %v10008_v2  ;;  %v10046_v12 = vmul.u32.u64.high 2863311531, %v10008_v2, %v10045_v11  ;;  %v10049_v13 = vmul.u32.u64.low 2863311531, %v10016_v3  ;;  %v10050_v14 = vmul.u32.u64.high 2863311531, %v10016_v3, %v10049_v13 }
  0x12   : > { %v10053_v15 = vmul.u32.u64.low 2863311531, %v10024_v4  ;;  %v10054_v16 = vmul.u32.u64.high 2863311531, %v10024_v4, %v10053_v15  ;;  %v10057_v17 = vmul.u32.u64.low 2863311531, %v10027_v5  ;;  %v10058_v18 = vmul.u32.u64.high 2863311531, %v10027_v5, %v10057_v17 }
  0x13   : > { %v10061_v19 = vmul.u32.u64.low 2863311531, %v10030_v6  ;;  %v10062_v20 = vmul.u32.u64.high 2863311531, %v10030_v6, %v10061_v19  ;;  %v10065_v21 = vmul.u32.u64.low 2863311531, %v10033_v7  ;;  %v10066_v22 = vmul.u32.u64.high 2863311531, %v10033_v7, %v10065_v21 }
  0x14   : > { %v10069_v23 = vadd.s32 72, %v10008_v2  ;;  %v10072_v24 = vmul.u32.u64.low 2863311531, %v10036_v8  ;;  %v10073_v25 = vmul.u32.u64.high 2863311531, %v10036_v8, %v10072_v24  ;;  %v10084_v30 = vadd.s32 80, %v10008_v2 }
  0x15   : > { %v10076_v26 = vmul.u32.u64.low 2863311531, %v10039_v9  ;;  %v10077_v27 = vmul.u32.u64.high 2863311531, %v10039_v9, %v10076_v26  ;;  %v10080_v28 = vmul.u32.u64.low 2863311531, %v10042_v10  ;;  %v10081_v29 = vmul.u32.u64.high 2863311531, %v10042_v10, %v10080_v28 }
  0x16   : > { %v10087_v31 = vadd.s32 88, %v10008_v2  ;;  %v10090_v32 = vadd.s32 96, %v10008_v2  ;;  %v310_v33 = vshrl.u32 %v10046_v12, 4  ;;  %v321_v34 = vshrl.u32 %v10050_v14, 4 }
  0x17   : > { %v10095_v35 = vadd.s32 104, %v10008_v2  ;;  %v332_v36 = vshrl.u32 %v10054_v16, 4  ;;  %v10099_v37 = vmul.u32.u64.low 2863311531, %v10069_v23  ;;  %v10100_v38 = vmul.u32.u64.high 2863311531, %v10069_v23, %v10099_v37 }
  0x18   : > { %v10103_v39 = vadd.s32 112, %v10008_v2  ;;  %v10106_v40 = vadd.s32 120, %v10008_v2  ;;  %v343_v41 = vshrl.u32 %v10058_v18, 4  ;;  %v354_v42 = vshrl.u32 %v10062_v20, 4 }
  0x19   : > { %v10111_v43 = vadd.s32 128, %v10008_v2  ;;  %v10114_v44 = vadd.s32 136, %v10008_v2  ;;  %v10117_v45 = vadd.s32 144, %v10008_v2  ;;  %v10120_v46 = vadd.s32 152, %v10008_v2 }
  0x1a   : > { %v10123_v47 = vadd.s32 160, %v10008_v2  ;;  %v311_v48 = vmul.u32 24, %v310_v33  ;;  %v322_v49 = vmul.u32 24, %v321_v34  ;;  %v365_v50 = vshrl.u32 %v10066_v22, 4 }
  0x1b   : > { %v333_v51 = vmul.u32 24, %v332_v36  ;;  %v376_v52 = vshrl.u32 %v10073_v25, 4  ;;  %v10128_v53 = vmul.u32.u64.low 2863311531, %v10084_v30  ;;  %v10129_v54 = vmul.u32.u64.high 2863311531, %v10084_v30, %v10128_v53 }
  0x1c   : > { %v344_v55 = vmul.u32 24, %v343_v41  ;;  %v355_v56 = vmul.u32 24, %v354_v42  ;;  %v387_v57 = vshrl.u32 %v10077_v27, 4  ;;  %v398_v58 = vshrl.u32 %v10081_v29, 4 }
  0x1d   : > { %v10134_v59 = vmul.u32.u64.low 2863311531, %v10087_v31  ;;  %v10135_v60 = vmul.u32.u64.high 2863311531, %v10087_v31, %v10134_v59  ;;  %v10138_v61 = vmul.u32.u64.low 2863311531, %v10090_v32  ;;  %v10139_v62 = vmul.u32.u64.high 2863311531, %v10090_v32, %v10138_v61 }
  0x1e   : > { %v10142_v63 = vadd.s32 168, %v10008_v2  ;;  %v366_v0 = vmul.u32 24, %v365_v50  ;;  %v10145_v1 = vmul.u32.u64.low 2863311531, %v10095_v35  ;;  %v10146_v11 = vmul.u32.u64.high 2863311531, %v10095_v35, %v10145_v1 }
  0x1f   : > { %v377_v12 = vmul.u32 24, %v376_v52  ;;  %v409_v13 = vshrl.u32 %v10100_v38, 4  ;;  %v10150_v14 = vmul.u32.u64.low 2863311531, %v10103_v39  ;;  %v10151_v15 = vmul.u32.u64.high 2863311531, %v10103_v39, %v10150_v14 }
  0x20   : > { %v10154_v16 = vmul.u32.u64.low 2863311531, %v10106_v40  ;;  %v10155_v17 = vmul.u32.u64.high 2863311531, %v10106_v40, %v10154_v16  ;;  %v10158_v18 = vmul.u32.u64.low 2863311531, %v10111_v43  ;;  %v10159_v19 = vmul.u32.u64.high 2863311531, %v10111_v43, %v10158_v18 }
  0x21   : > { %v10162_v20 = vadd.s32 176, %v10008_v2  ;;  %v10165_v21 = vadd.s32 184, %v10008_v2  ;;  %v388_v22 = vmul.u32 24, %v387_v57  ;;  %v399_v24 = vmul.u32 24, %v398_v58 }
  0x22   : > { %v420_v25 = vshrl.u32 %v10129_v54, 4  ;;  %v431_v26 = vshrl.u32 %v10135_v60, 4  ;;  %v10170_v27 = vmul.u32.u64.low 2863311531, %v10114_v44  ;;  %v10171_v28 = vmul.u32.u64.high 2863311531, %v10114_v44, %v10170_v27 }
  0x23   : > { %v10174_v29 = vsub.s32 %v10008_v2, %v311_v48  ;;  %v10177_v33 = vsub.s32 %v10016_v3, %v322_v49  ;;  %v10180_v34 = vsub.s32 %v10024_v4, %v333_v51  ;;  %v442_v36 = vshrl.u32 %v10139_v62, 4 }
  0x24   : > { %v10184_v37 = vsub.s32 %v10027_v5, %v344_v55  ;;  %v410_v38 = vmul.u32 24, %v409_v13  ;;  %v453_v41 = vshrl.u32 %v10146_v11, 4  ;;  %v464_v42 = vshrl.u32 %v10151_v15, 4 }
  0x25   : > { %v10189_v50 = vsub.s32 %v10030_v6, %v355_v56  ;;  %v10192_v48 = vsub.s32 %v10033_v7, %v366_v0  ;;  %v10195_v3 = vsub.s32 %v10036_v8, %v377_v12  ;;  %v10198_v4 = vsub.s32 %v10039_v9, %v388_v22 }
  0x26   : > { %v10201_v5 = vsub.s32 %v10042_v10, %v399_v24  ;;  %v421_v49 = vmul.u32 24, %v420_v25  ;;  %v432_v51 = vmul.u32 24, %v431_v26  ;;  %v475_v52 = vshrl.u32 %v10155_v17, 4 }
  0x27   : > { %v443_v53 = vmul.u32 24, %v442_v36  ;;  %v486_v6 = vshrl.u32 %v10159_v19, 4  ;;  %v10206_v54 = vmul.u32.u64.low 2863311531, %v10117_v45  ;;  %v10207_v7 = vmul.u32.u64.high 2863311531, %v10117_v45, %v10206_v54 }
  0x28   : > { %v10210_v8 = vsub.s32 %v10069_v23, %v410_v38  ;;  %v454_v55 = vmul.u32 24, %v453_v41  ;;  %v465_v9 = vmul.u32 24, %v464_v42  ;;  %v497_v56 = vshrl.u32 %v10171_v28, 4 }
  0x29   : > { %v10214_v10 = vmul.u32.u64.low 2863311531, %v10120_v46  ;;  %v10215_v57 = vmul.u32.u64.high 2863311531, %v10120_v46, %v10214_v10  ;;  %v10218_v58 = vmul.u32.u64.low 2863311531, %v10123_v47  ;;  %v10219_v59 = vmul.u32.u64.high 2863311531, %v10123_v47, %v10218_v58 }
  0x2a   : > { %v476_v60 = vmul.u32 24, %v475_v52  ;;  %v10222_v61 = vmul.u32.u64.low 2863311531, %v10142_v63  ;;  %v10223_v62 = vmul.u32.u64.high 2863311531, %v10142_v63, %v10222_v61  ;;  %vm568_vm1 = vcmp.ne.s32.totalorder %v10174_v29, 0 }
  0x2b   : > { %vm569_vm2 = vcmp.ne.s32.totalorder %v10177_v33, 0  ;;  %vm570_vm3 = vcmp.ne.s32.totalorder %v10180_v34, 0  ;;  %vm571_vm4 = vcmp.ne.s32.totalorder %v10184_v37, 0  ;;  %v10230_v23 = vsub.s32 %v10084_v30, %v421_v49 }
  0x2c   : > { %v487_v0 = vmul.u32 24, %v486_v6  ;;  %v10233_v1 = vmul.u32.u64.low 2863311531, %v10162_v20  ;;  %v10234_v11 = vmul.u32.u64.high 2863311531, %v10162_v20, %v10233_v1  ;;  %vm572_vm5 = vcmp.ne.s32.totalorder %v10189_v50, 0 }
  0x2d   : > { %v10238_v12 = vsub.s32 %v10087_v31, %v432_v51  ;;  %v508_v13 = vshrl.u32 %v10207_v7, 4  ;;  %v10242_v14 = vmul.u32.u64.low 2863311531, %v10165_v21  ;;  %v10243_v15 = vmul.u32.u64.high 2863311531, %v10165_v21, %v10242_v14 }
  0x2e   : > { %vm573_vm6 = vcmp.ne.s32.totalorder %v10192_v48, 0  ;;  %v10247_v30 = vsub.s32 %v10090_v32, %v443_v53  ;;  %v498_v16 = vmul.u32 24, %v497_v56  ;;  %v519_v17 = vshrl.u32 %v10215_v57, 4 }
  0x2f   : > { %v530_v18 = vshrl.u32 %v10219_v59, 4  ;;  %v10252_v19 = vsub.s32 %v10095_v35, %v454_v55  ;;  %v10255_v31 = vsub.s32 %v10103_v39, %v465_v9  ;;  %v541_v22 = vshrl.u32 %v10223_v62, 4 }
  0x30   : > { %v10260_v24 = vsub.s32 %v10106_v40, %v476_v60  ;;  %v10263_v32 = vsub.s32 %v10111_v43, %v487_v0  ;;  %v552_v25 = vshrl.u32 %v10234_v11, 4  ;;  %v509_v26 = vmul.u32 24, %v508_v13 }
  0x31   : > { %v520_v35 = vmul.u32 24, %v519_v17  ;;  %v563_v27 = vshrl.u32 %v10243_v15, 4  ;;  %v10270_v39 = vsub.s32 %v10114_v44, %v498_v16  ;;  %v531_v28 = vmul.u32 24, %v530_v18 }
  0x32   : > { %v542_v36 = vmul.u32 24, %v541_v22  ;;  %v553_v40 = vmul.u32 24, %v552_v25  ;;  %vm592_vm11 = vcmp.lt.s32.totalorder %v10174_v29, 0  ;;  %vm593_vm12 = vcmp.lt.s32.totalorder %v10177_v33, 0 }
  0x33   : > { %vm594_vm13 = vcmp.lt.s32.totalorder %v10180_v34, 0  ;;  %v564_v43 = vmul.u32 24, %v563_v27  ;;  %vm595_vm0 = vcmp.lt.s32.totalorder %v10184_v37, 0  ;;  %vm596_vm10 = vcmp.lt.s32.totalorder %v10189_v50, 0  ;;  %vm10295_vm9 = vmand %vm592_vm11, %vm568_vm1 }
  0x34   : > { %vm597_vm7 = vcmp.lt.s32.totalorder %v10192_v48, 0  ;;  %v10284_v44 = vsub.s32 %v10117_v45, %v509_v26  ;;  %v10287_v38 = vsub.s32 %v10120_v46, %v520_v35  ;;  %vm598_vm15 = vcmp.lt.s32.totalorder %v10195_v3, 0  ;;  %vm10303_vm8 = vmand %vm593_vm12, %vm569_vm2 }
  0x35   : > { %vm10311_vm14 = vmand %vm594_vm13, %vm570_vm3  ;;  %v10322_v49 = vsub.s32 %v10123_v47, %v531_v28  ;;  %v10325_v51 = vsub.s32 %v10142_v63, %v542_v36  ;;  %v10328_v52 = vsub.s32 %v10162_v20, %v553_v40  ;;  %v10341_v47 = vsub.s32 %v10165_v21, %v564_v43 }
  0x36   : > { %vm10317_vm1 = vmand %vm595_vm0, %vm571_vm4  ;;  %v13594_v63 = vmov 0  ;;  %vm13596_vm13 = vcmp.ne.s32.totalorder %v10195_v3, 0  ;;  %vm13599_vm12 = vcmp.ne.s32.totalorder %v10198_v4, 0  ;;  %v640_v54 = vadd.s32 24, %v10174_v29 }
  0x37   : > { %13589 = vst [vmem:[#allocation4_spill] sm:$0xff] %v10325_v51  ;;  %13590 = vst [vmem:[#allocation5_spill] sm:$0xff] %v10328_v52  ;;  %v641_v7 = vadd.s32 24, %v10177_v33  ;;  %v642_v55 = vadd.s32 24, %v10180_v34  ;;  %v643_v9 = vadd.s32 24, %v10184_v37  ;;  %v644_v10 = vadd.s32 24, %v10189_v50 }
  0x38   : > { %vm10336_vm0 = vmand %vm596_vm10, %vm572_vm5  ;;  %13593 = vst [vmem:[#allocation6_spill] sm:$0xff] %v10341_v47  ;;  %vm13600_vm10 = vcmp.lt.s32.totalorder %v10198_v4, 0  ;;  %vm13604_vm5 = vcmp.lt.s32.totalorder %v10201_v5, 0  ;;  %v645_v57 = vadd.s32 24, %v10192_v48  ;;  %v646_v58 = vadd.s32 24, %v10195_v3 }
  0x39   : > { %vm10351_vm2 = vmand %vm597_vm7, %vm573_vm6  ;;  %vm13603_vm6 = vcmp.ne.s32.totalorder %v10201_v5, 0  ;;  %v647_v59 = vadd.s32 24, %v10198_v4  ;;  %vm13612_vm11 = vcmp.lt.s32.totalorder %v10230_v23, 0  ;;  %v13613_v60 = vmov 0 }
  0x3a   : > { %v13595_v63 = vsel %vm10351_vm2, 4294967295, %v13594_v63  ;;  %vm10364_vm3 = vmand %vm598_vm15, %vm13596_vm13  ;;  %vm13607_vm13 = vcmp.ne.s32.totalorder %v10210_v8, 0  ;;  %vm13608_vm15 = vcmp.lt.s32.totalorder %v10210_v8, 0  ;;  %v648_v61 = vadd.s32 24, %v10201_v5 }
  0x3b   : > { %vm10377_vm2 = vmand %vm13600_vm10, %vm13599_vm12  ;;  %vm13611_vm12 = vcmp.ne.s32.totalorder %v10230_v23, 0  ;;  %v649_v62 = vadd.s32 24, %v10210_v8  ;;  %v650_v0 = vadd.s32 24, %v10230_v23  ;;  %v651_v1 = vadd.s32 24, %v10238_v12 }
  0x3c   : > { %vm10387_vm7 = vmand %vm13604_vm5, %vm13603_vm6  ;;  %vm13615_vm6 = vcmp.ne.s32.totalorder %v10238_v12, 0  ;;  %vm13616_vm4 = vcmp.lt.s32.totalorder %v10238_v12, 0  ;;  %v652_v13 = vadd.s32 24, %v10247_v30  ;;  %v653_v14 = vadd.s32 24, %v10252_v19 }
  0x3d   : > { %vm10401_vm5 = vmand %vm13608_vm15, %vm13607_vm13  ;;  %v654_v15 = vadd.s32 24, %v10255_v31  ;;  %v655_v16 = vadd.s32 24, %v10260_v24  ;;  %vm13619_vm13 = vcmp.ne.s32.totalorder %v10247_v30, 0  ;;  %v13621_v17 = vmov 0 }
  0x3e   : > { %vm10415_vm15 = vmand %vm13612_vm11, %vm13611_vm12  ;;  %v656_v18 = vadd.s32 24, %v10263_v32  ;;  %v657_v22 = vadd.s32 24, %v10270_v39  ;;  %v658_v25 = vadd.s32 24, %v10284_v44  ;;  %v659_v26 = vadd.s32 24, %v10287_v38 }
  0x3f   : > { %v13614_v60 = vsel %vm10415_vm15, 4294967295, %v13613_v60  ;;  %vm10429_vm11 = vmand %vm13616_vm4, %vm13615_vm6  ;;  %vm13620_vm15 = vcmp.lt.s32.totalorder %v10247_v30, 0  ;;  %vm13623_vm6 = vcmp.ne.s32.totalorder %v10252_v19, 0  ;;  %vm13624_vm10 = vcmp.lt.s32.totalorder %v10252_v19, 0 }
  0x40   : > { %vm10443_vm4 = vmand %vm13620_vm15, %vm13619_vm13  ;;  %v660_v27 = vadd.s32 24, %v10322_v49  ;;  %v661_v28 = vadd.s32 24, %v10325_v51  ;;  %v662_v36 = vadd.s32 24, %v10328_v52  ;;  %v663_v40 = vadd.s32 24, %v10341_v47 }
  0x41   : > { %v13622_v17 = vsel %vm10443_vm4, 4294967295, %v13621_v17  ;;  %vm10455_vm12 = vmand %vm13624_vm10, %vm13623_vm6  ;;  %vm13627_vm15 = vcmp.ne.s32.totalorder %v10255_v31, 0  ;;  %vm13628_vm13 = vcmp.lt.s32.totalorder %v10255_v31, 0  ;;  %v10474_v2 = vsel %vm10295_vm9, %v640_v54, %v10174_v29 }
  0x42   : > { %vm10467_vm4 = vmand %vm13628_vm13, %vm13627_vm15  ;;  %13631 = vst [vmem:[#allocation7_spill] sm:$0xff] %v10474_v2  ;;  %v10479_v51 = vsel %vm10303_vm8, %v641_v7, %v10177_v33  ;;  %v10484_v47 = vsel %vm10311_vm14, %v642_v55, %v10180_v34  ;;  %v10489_v52 = vsel %vm10317_vm1, %v643_v9, %v10184_v37  ;;  %vm13635_vm10 = vcmp.ne.s32.totalorder %v10260_v24, 0 }
  0x43   : > { %13632 = vst [vmem:[#allocation8_spill] sm:$0xff] %v10479_v51  ;;  %13633 = vst [vmem:[#allocation9_spill] sm:$0xff] %v10484_v47  ;;  %vm13636_vm9 = vcmp.lt.s32.totalorder %v10260_v24, 0  ;;  %v10498_v29 = vsel %vm10336_vm0, %v644_v10, %v10189_v50  ;;  %vm13638_vm8 = vnez %v13595_v63  ;;  %v10508_v34 = vsel %vm10364_vm3, %v646_v58, %v10195_v3 }
  0x44   : > { %13634 = vst [vmem:[#allocation10_spill] sm:$0xff] %v10489_v52  ;;  %vm631_vm6 = vmand %vm13636_vm9, %vm13635_vm10  ;;  %v10503_v33 = vsel %vm13638_vm8, %v645_v57, %v10192_v48  ;;  %v10513_v37 = vsel %vm10377_vm2, %v647_v59, %v10198_v4  ;;  %vm13642_vm14 = vcmp.ne.s32.totalorder %v10263_v32, 0  ;;  %vm13643_vm1 = vcmp.lt.s32.totalorder %v10263_v32, 0 }
  0x45   : > { %13637 = vst [vmem:[#allocation11_spill] sm:$0xff] %v10498_v29  ;;  %13639 = vst [vmem:[#allocation12_spill] sm:$0xff] %v10503_v33  ;;  %v10522_v50 = vsel %vm10387_vm7, %v648_v61, %v10201_v5  ;;  %v10527_v48 = vsel %vm10401_vm5, %v649_v62, %v10210_v8  ;;  %vm13646_vm3 = vnez %v13614_v60  ;;  %v10537_v4 = vsel %vm10429_vm11, %v651_v1, %v10238_v12 }
  0x46   : > { %13640 = vst [vmem:[#allocation13_spill] sm:$0xff] %v10508_v34  ;;  %13641 = vst [vmem:[#allocation14_spill] sm:$0xff] %v10513_v37  ;;  %v10532_v3 = vsel %vm13646_vm3, %v650_v0, %v10230_v23  ;;  %vm13649_vm2 = vcmp.ne.s32.totalorder %v10270_v39, 0  ;;  %vm13650_vm7 = vcmp.lt.s32.totalorder %v10270_v39, 0  ;;  %vm13651_vm13 = vnez %v13622_v17 }
  0x47   : > { %vm632_vm0 = vmand %vm13643_vm1, %vm13642_vm14  ;;  %13644 = vst [vmem:[#allocation15_spill] sm:$0xff] %v10522_v50  ;;  %v10546_v5 = vsel %vm13651_vm13, %v652_v13, %v10247_v30  ;;  %v10551_v8 = vsel %vm10455_vm12, %v653_v14, %v10252_v19  ;;  %v10556_v23 = vsel %vm10467_vm4, %v654_v15, %v10255_v31  ;;  %v10559_v12 = vsel %vm631_vm6, %v655_v16, %v10260_v24  ;;  %v13666_v24 = vld [vmem:[#allocation4_spill] sm:$0xff] }
  0x48   : > { %13645 = vst [vmem:[#allocation16_spill] sm:$0xff] %v10527_v48  ;;  %13647 = vst [vmem:[#allocation17_spill] sm:$0xff] %v10532_v3  ;;  %vm13656_vm5 = vcmp.ne.s32.totalorder %v10284_v44, 0  ;;  %vm13657_vm11 = vcmp.lt.s32.totalorder %v10284_v44, 0  ;;  %v10566_v30 = vsel %vm632_vm0, %v656_v18, %v10263_v32  ;;  %vm13570_vm12 = vcmp.lt.s32.totalorder %v10474_v2, 16 }
  0x49   : > { %13648 = vst [vmem:[#allocation18_spill] sm:$0xff] %v10537_v4  ;;  %vm633_vm15 = vmand %vm13650_vm7, %vm13649_vm2  ;;  %vm13571_vm9 = vcmp.lt.s32.totalorder %v10479_v51, 16  ;;  %vm13660_vm4 = vcmp.ne.s32.totalorder %v10287_v38, 0  ;;  %vm13661_vm6 = vcmp.lt.s32.totalorder %v10287_v38, 0  ;;  %vm13568_vm14 = vcmp.lt.s32.totalorder %v10484_v47, 16 }
  0x4a   : > { %13652 = vst [vmem:[#allocation19_spill] sm:$0xff] %v10546_v5  ;;  %13653 = vst [vmem:[#allocation20_spill] sm:$0xff] %v10551_v8  ;;  %v10569_v41 = vsel %vm633_vm15, %v657_v22, %v10270_v39  ;;  %vm13569_vm1 = vcmp.lt.s32.totalorder %v10489_v52, 16  ;;  %vm13663_vm3 = vcmp.ne.s32.totalorder %v10322_v49, 0  ;;  %vm13664_vm2 = vcmp.lt.s32.totalorder %v10322_v49, 0  ;;  %v13670_v39 = vld [vmem:[#allocation5_spill] sm:$0xff] }
  0x4b   : > { %13654 = vst [vmem:[#allocation21_spill] sm:$0xff] %v10556_v23  ;;  %13655 = vst [vmem:[#allocation22_spill] sm:$0xff] %v10559_v12  ;;  %vm13567_vm15 = vcmp.lt.s32.totalorder %v10503_v33, 16  ;;  %vm13672_vm13 = vcmp.lt.s32.totalorder %v13670_v39, 0  ;;  %v10633_v42 = vmov 0.0  }
  0x4c   : > { %vm634_vm10 = vmand %vm13657_vm11, %vm13656_vm5  ;;  %13658 = vst [vmem:[#allocation23_spill] sm:$0xff] %v10566_v30  ;;  %vm13667_vm11 = vcmp.ne.s32.totalorder %v13666_v24, 0  ;;  %vm13566_vm5 = vcmp.lt.s32.totalorder %v10537_v4, 16 }
  0x4d   : > { %13659 = vst [vmem:[#allocation24_spill] sm:$0xff] %v10569_v41  ;;  %vm635_vm8 = vmand %vm13661_vm6, %vm13660_vm4  ;;  %v10578_v19 = vsel %vm634_vm10, %v658_v25, %v10284_v44  ;;  %vm13668_vm10 = vcmp.lt.s32.totalorder %v13666_v24, 0 }
  0x4e   : > { %13662 = vst [vmem:[#allocation25_spill] sm:$0xff] %v10578_v19  ;;  %vm636_vm7 = vmand %vm13664_vm2, %vm13663_vm3  ;;  %v10588_v31 = vsel %vm635_vm8, %v659_v26, %v10287_v38  ;;  %vm13671_vm2 = vcmp.ne.s32.totalorder %v13670_v39, 0  ;;  %v13674_v38 = vld [vmem:[#allocation6_spill] sm:$0xff] }
  0x4f   : > { %13665 = vst [vmem:[#allocation26_spill] sm:$0xff] %v10588_v31  ;;  %vm637_vm4 = vmand %vm13668_vm10, %vm13667_vm11  ;;  %v10598_v32 = vsel %vm636_vm7, %v660_v27, %v10322_v49  ;;  %vm13675_vm10 = vcmp.ne.s32.totalorder %v13674_v38, 0  ;;  %vm13676_vm6 = vcmp.lt.s32.totalorder %v13674_v38, 0  ;;  %v10635_v49 = vmov 0.0  }
  0x50   : > { %13669 = vst [vmem:[#allocation4_spill] sm:$0xff] %v10598_v32  ;;  %vm638_vm0 = vmand %vm13672_vm13, %vm13671_vm2  ;;  %v10608_v44 = vsel %vm637_vm4, %v661_v28, %v13666_v24  ;;  %vm13565_vm13 = vcmp.lt.s32.totalorder %v10559_v12, 16  ;;  %vm13564_vm2 = vcmp.lt.s32.totalorder %v10569_v41, 16 }
  0x51   : > { %13673 = vst [vmem:[#allocation5_spill] sm:$0xff] %v10608_v44  ;;  %vm639_vm3 = vmand %vm13676_vm6, %vm13675_vm10  ;;  %v10618_v45 = vsel %vm638_vm0, %v662_v36, %v13670_v39 }
  0x52   : > { %13677 = vst [vmem:[#allocation6_spill] sm:$0xff] %v10618_v45  ;;  %v10624_v46 = vsel %vm639_vm3, %v663_v40, %v13674_v38 }
  0x53   : > { %13678 = vst [vmem:[#allocation27_spill] sm:$0xff] %v10624_v46 }
  0x54 LB: >> { %13679 = vst [vmem:[#allocation28_spill] sm:$0xff] %v9926_v42  ;;  %13680 = vst [vmem:[#allocation29_spill] sm:$0xff] %v9930_v49  ;;  %v7695_v53 = vld [vmem:[%s13494_s1 + $0x4] sm:$0xf]  ;;  %vm13563_vm3 = vcmask 1043456   ;;  %s724_s18 = smul.u32 192, %s9934_s11  ;;  %s9934_s11 = sphi %s10637_s11, %s721_s11   ;;  %v9930_v49 = vphi %v10635_v49, %v14001_v49   ;;  %v9926_v42 = vphi %v10633_v42, %v14000_v42  }
  0x55   : >> { %v750_v63 = vld [vmem:[%s13494_s1] sm:$0xf]  ;;  %9753 = vmatprep.subr.msk.mxu1 %vm13563_vm3, %v7695_v53  ;;  %9069 = vmatprep.subr.msk.mxu0 %vm13563_vm3, %v7695_v53  ;;  %v7770_v20 = vld [vmem:[%s13494_s1 + $0x8] sm:$0xf]  ;;  %vm13681_vm10 = vcmask 31744   ;;  %s721_s11 = sadd.s32 1, %s9934_s11  }
  0x56   : >> { %9754 = vmatpush3.msk.msra.mxu1 %vm13563_vm3, %v7695_v53  ;;  %9070 = vmatpush3.msk.msra.mxu0 %vm13563_vm3, %v7695_v53  ;;  %s10667_s19 = scalar_lea.vmem %s10013_s30, %s724_s18  ;;  %vm13682_vm8 = vmmov %vm13681_vm10  ;;  %v7820_v56 = vld [vmem:[%s13494_s1 + $0xc] sm:$0xf]  ;;  %v7870_v10 = vld [vmem:[%s13494_s1 + $0x10] sm:$0xf]  ;;  %s11586_s13 = scalar_lea.vmem [#allocation2], %s724_s18 }
  0x57   : >> { %9107 = vmatprep.subr.msk.mxu1 %vm13563_vm3, %v750_v63  ;;  %9145 = vmatprep.subr.msk.mxu0 %vm13563_vm3, %v7770_v20  ;;  %v7671_v21 = vld [vmem:[%s10667_s19 + $0x1] sm:$0xff]  ;;  %v7672_v54 = vld [vmem:[%s10667_s19 + $0x9] sm:$0xff]  ;;  %v7673_v55 = vld [vmem:[%s10667_s19 + $0x11] sm:$0xff]  ;;  %p718_p4 = scmp.ge.s32.totalorder %s721_s11, 2  }
  0x58   : >> { %v10671_v6 = vld [vmem:[%s10667_s19 + $0x61] sm:$0xff]  ;;  %9071 = vmatprep.mubr.msk.f32.mxu0 %vm13681_vm10, %v7671_v21  ;;  %v10678_v7 = vld [vmem:[%s10667_s19 + $0x69] sm:$0xff]  ;;  %v10682_v9 = vld [vmem:[%s10667_s19 + $0x71] sm:$0xff]  ;;  %s11840_s11 = smov (%p718_p4), 0  }
  0x59   : >> { %9089 = vmatprep.mubr.msk.f32.mxu1 %vm13682_vm8, %v10671_v6  ;;  %vm13683_vm6 = vmmov %vm13682_vm8  ;;  %v10696_v57 = vld [vmem:[%s10667_s19 + $0x19] sm:$0xff]  ;;  %v10705_v59 = vld [vmem:[%s10667_s19 + $0x21] sm:$0xff] }
  0x5a   : >> { %9072 = vmatmul.mubr.msk.f32.vlgmr.msra.gmra.mxu0 %vm13683_vm6, %v7672_v54  ;;  %vm13684_vm0 = vmmov %vm13683_vm6  ;;  %v10699_v58 = vld [vmem:[%s10667_s19 + $0x79] sm:$0xff]  ;;  %v10708_v60 = vld [vmem:[%s10667_s19 + $0x81] sm:$0xff] }
  0x5b   : >> { %9090 = vmatmul.mubr.msk.f32.vlgmr.msra.gmra.mxu1 %vm13684_vm0, %v10678_v7  ;;  %9146 = vmatpush3.msk.msra.mxu0 %vm13563_vm3, %v7770_v20  ;;  %vm13685_vm8 = vmmov %vm13684_vm0  ;;  %v10721_v61 = vld [vmem:[%s10667_s19 + $0x29] sm:$0xff]  ;;  %v10727_v0 = vld [vmem:[%s10667_s19 + $0x31] sm:$0xff] }
  0x5c   : >> { %9108 = vmatpush3.msk.msra.mxu1 %vm13563_vm3, %v750_v63  ;;  %9074 = vmatprep.mubr.msk.f32.mxu0 %vm13685_vm8, %v7673_v55  ;;  %vm13686_vm6 = vmmov %vm13684_vm0  ;;  %v10724_v62 = vld [vmem:[%s10667_s19 + $0x89] sm:$0xff]  ;;  %v10730_v1 = vld [vmem:[%s10667_s19 + $0x91] sm:$0xff] }
  0x5d   : >> { %9092 = vmatprep.mubr.msk.f32.mxu1 %vm13686_vm6, %v10682_v9  ;;  %9183 = vmatprep.subr.msk.mxu1 %vm13563_vm3, %v7820_v56  ;;  %vm13687_vm10 = vmmov %vm13684_vm0  ;;  %v10741_v11 = vld [vmem:[%s10667_s19 + $0x39] sm:$0xff]  ;;  %v10747_v14 = vld [vmem:[%s10667_s19 + $0x41] sm:$0xff] }
  0x5e   : >> { %9221 = vmatprep.subr.msk.mxu0 %vm13563_vm3, %v7870_v10  ;;  %9075 = vmatmul.mubr.msk.f32.gmra.mxu0 %vm13684_vm0, %v10696_v57  ;;  %vm13688_vm8 = vmmov %vm13684_vm0  ;;  %v10744_v13 = vld [vmem:[%s10667_s19 + $0x99] sm:$0xff]  ;;  %v10750_v15 = vld [vmem:[%s10667_s19 + $0xa1] sm:$0xff] }
  0x5f   : >> { %9093 = vmatmul.mubr.msk.f32.gmra.mxu1 %vm13687_vm10, %v10699_v58  ;;  %9077 = vmatprep.mubr.msk.f32.mxu0 %vm13688_vm8, %v10705_v59  ;;  %vm13689_vm6 = vmmov %vm13684_vm0  ;;  %v10761_v16 = vld [vmem:[%s10667_s19 + $0x49] sm:$0xff]  ;;  %v10767_v18 = vld [vmem:[%s10667_s19 + $0x51] sm:$0xff] }
  0x60   : >> { %9095 = vmatprep.mubr.msk.f32.mxu1 %vm13689_vm6, %v10708_v60  ;;  %vm13690_vm10 = vmmov %vm13684_vm0  ;;  %v10764_v17 = vld [vmem:[%s10667_s19 + $0xa9] sm:$0xff]  ;;  %v10770_v22 = vld [vmem:[%s10667_s19 + $0xb1] sm:$0xff] }
  0x61   : >> { %vm13691_vm8 = vmmov %vm13684_vm0  ;;  %v10781_v25 = vld [vmem:[%s10667_s19 + $0x59] sm:$0xff]  ;;  %v7746_v27 = vld [vmem:[%s10667_s19 + $0x2] sm:$0xff] }
  0x62   : >> { %9078 = vmatmul.mubr.msk.f32.gmra.mxu0 %vm13684_vm0, %v10721_v61  ;;  %vm13692_vm6 = vmmov %vm13684_vm0  ;;  %v10784_v26 = vld [vmem:[%s10667_s19 + $0xb9] sm:$0xff]  ;;  %v727_v28 = vld [vmem:[%s10667_s19 + $0x8] sm:$0xff] }
  0x63   : >> { %9096 = vmatmul.mubr.msk.f32.gmra.mxu1 %vm13690_vm10, %v10724_v62  ;;  %9080 = vmatprep.mubr.msk.f32.mxu0 %vm13691_vm8, %v10727_v0  ;;  %vm13693_vm10 = vmmov %vm13684_vm0  ;;  %v726_v35 = vld [vmem:[%s10667_s19] sm:$0xff]  ;;  %v7747_v36 = vld [vmem:[%s10667_s19 + $0xa] sm:$0xff] }
  0x64   : >> { %9098 = vmatprep.mubr.msk.f32.mxu1 %vm13692_vm6, %v10730_v1  ;;  %vm13694_vm8 = vmmov %vm13684_vm0  ;;  %v728_v40 = vld [vmem:[%s10667_s19 + $0x10] sm:$0xff]  ;;  %v10808_v39 = vld [vmem:[%s13494_s1 + $0x18] sm:$0xf] }
  0x65   : >> { %vm13695_vm6 = vmmov %vm13684_vm0  ;;  %v7748_v43 = vld [vmem:[%s10667_s19 + $0x12] sm:$0xff]  ;;  %v10816_v53 = vld [vmem:[%s10667_s19 + $0x1a] sm:$0xff] }
  0x66   : >> { %9081 = vmatmul.mubr.msk.f32.gmra.mxu0 %vm13684_vm0, %v10741_v11  ;;  %vm13699_vm11 = vmmov %vm13684_vm0  ;;  %v10803_v24 = vld [vmem:[%s13494_s1 + $0x14] sm:$0xf]  ;;  %v10813_v38 = vld [vmem:[%s10667_s19 + $0x18] sm:$0xff] }
  0x67   : >> { %9099 = vmatmul.mubr.msk.f32.gmra.mxu1 %vm13693_vm10, %v10744_v13  ;;  %9083 = vmatprep.mubr.msk.f32.mxu0 %vm13694_vm8, %v10747_v14  ;;  %vm13696_vm10 = vmmov %vm13684_vm0  ;;  %v10821_v63 = vld [vmem:[%s10667_s19 + $0x20] sm:$0xff]  ;;  %v10839_v21 = vld [vmem:[%s10667_s19 + $0x28] sm:$0xff] }
  0x68   : >> { %9101 = vmatprep.mubr.msk.f32.mxu1 %vm13695_vm6, %v10750_v15  ;;  %vm13697_vm8 = vmmov %vm13684_vm0  ;;  %v10824_v20 = vld [vmem:[%s10667_s19 + $0x22] sm:$0xff]  ;;  %v10842_v54 = vld [vmem:[%s10667_s19 + $0x2a] sm:$0xff] }
  0x69   : >> { %vm13698_vm6 = vmmov %vm13684_vm0  ;;  %v10845_v55 = vld [vmem:[%s10667_s19 + $0x30] sm:$0xff]  ;;  %v10899_v49 = vld [vmem:[%s10667_s19 + $0x58] sm:$0xff] }
  0x6a   : >> { %9084 = vmatmul.mubr.msk.f32.gmra.mxu0 %vm13684_vm0, %v10761_v16  ;;  %vm13703_vm7 = vmmov %vm13684_vm0  ;;  %v10888_v42 = vld [vmem:[%s10667_s19 + $0x52] sm:$0xff]  ;;  %v10902_v45 = vld [vmem:[%s10667_s19 + $0x5a] sm:$0xff] }
  0x6b   : >> { %9102 = vmatmul.mubr.msk.f32.gmra.mxu1 %vm13696_vm10, %v10764_v17  ;;  %9086 = vmatprep.mubr.msk.f32.mxu0 %vm13697_vm8, %v10767_v18  ;;  %vm13700_vm10 = vmmov %vm13684_vm0  ;;  %v10905_v46 = vld [vmem:[%s10667_s19 + $0x60] sm:$0xff]  ;;  %v10919_v44 = vld [vmem:[%s10667_s19 + $0x68] sm:$0xff] }
  0x6c   : >> { %9104 = vmatprep.mubr.msk.f32.mxu1 %vm13698_vm6, %v10770_v22  ;;  %vm13701_vm8 = vmmov %vm13684_vm0  ;;  %v10908_v32 = vld [vmem:[%s10667_s19 + $0x62] sm:$0xff]  ;;  %v10922_v19 = vld [vmem:[%s10667_s19 + $0x6a] sm:$0xff] }
  0x6d   : >> { %vm13702_vm6 = vmmov %vm13684_vm0  ;;  %v10925_v31 = vld [vmem:[%s10667_s19 + $0x70] sm:$0xff]  ;;  %v10939_v41 = vld [vmem:[%s10667_s19 + $0x78] sm:$0xff] }
  0x6e   : >> { %9087 = vmatmul.mubr.msk.f32.gmra.mxu0 %vm13699_vm11, %v10781_v25  ;;  %vm13704_vm11 = vmmov %vm13684_vm0  ;;  %v10928_v30 = vld [vmem:[%s10667_s19 + $0x72] sm:$0xff]  ;;  %v10942_v23 = vld [vmem:[%s10667_s19 + $0x7a] sm:$0xff] }
  0x6f   : >> { %9105 = vmatmul.mubr.msk.f32.gmra.mxu1 %vm13684_vm0, %v10784_v26  ;;  %9147 = vmatprep.mubr.msk.f32.mxu0 %vm13701_vm8, %v7746_v27  ;;  %vm13707_vm8 = vmmov %vm13684_vm0  ;;  %v10865_v27 = vld [vmem:[%s10667_s19 + $0x40] sm:$0xff]  ;;  %v10959_v8 = vld [vmem:[%s10667_s19 + $0x88] sm:$0xff] }
  0x70   : >> { %9109 = vmatprep.mubr.msk.f32.mxu1 %vm13700_vm10, %v726_v35  ;;  %vm13706_vm10 = vmmov %vm13684_vm0  ;;  %v10862_v35 = vld [vmem:[%s10667_s19 + $0x3a] sm:$0xff]  ;;  %v10948_v5 = vld [vmem:[%s10667_s19 + $0x82] sm:$0xff] }
  0x71   : >> { %v10945_v12 = vld [vmem:[%s10667_s19 + $0x80] sm:$0xff]  ;;  %v10962_v3 = vld [vmem:[%s10667_s19 + $0x8a] sm:$0xff]  ;;  %v10968_v50 = vld [vmem:[%s10667_s19 + $0x92] sm:$0xff] }
  0x72   : >> { %9148 = vmatmul.mubr.msk.f32.vlgmr.msra.gmra.mxu0 %vm13703_vm7, %v7747_v36  ;;  %vm13705_vm7 = vmmov %vm13684_vm0  ;;  %v10879_v36 = vld [vmem:[%s10667_s19 + $0x48] sm:$0xff]  ;;  %v10965_v4 = vld [vmem:[%s10667_s19 + $0x90] sm:$0xff] }
  0x73   : >> { %9110 = vmatmul.mubr.msk.f32.vlgmr.msra.gmra.mxu1 %vm13702_vm6, %v727_v28  ;;  %9222 = vmatpush3.msk.msra.mxu0 %vm13563_vm3, %v7870_v10  ;;  %vm13708_vm6 = vmmov %vm13684_vm0  ;;  %v10859_v10 = vld [vmem:[%s10667_s19 + $0x38] sm:$0xff]  ;;  %v10868_v28 = vld [vmem:[%s10667_s19 + $0x42] sm:$0xff] }
  0x74   : >> { %9184 = vmatpush3.msk.msra.mxu1 %vm13563_vm3, %v7820_v56  ;;  %9112 = vmatprep.mubr.msk.f32.mxu1 %vm13704_vm11, %v728_v40  ;;  %v10848_v56 = vld [vmem:[%s10667_s19 + $0x32] sm:$0xff]  ;;  %vm13709_vm11 = vmmov %vm13684_vm0  ;;  %v10882_v40 = vld [vmem:[%s10667_s19 + $0x4a] sm:$0xff] }
  0x75   : >> { %9150 = vmatprep.mubr.msk.f32.mxu0 %vm13705_vm7, %v7748_v43  ;;  %9259 = vmatprep.subr.msk.mxu1 %vm13563_vm3, %v10803_v24  ;;  %vm13710_vm7 = vmmov %vm13684_vm0  ;;  %v10885_v43 = vld [vmem:[%s10667_s19 + $0x50] sm:$0xff]  ;;  %v10979_v48 = vld [vmem:[%s10667_s19 + $0x98] sm:$0xff] }
  0x76   : >> { %9297 = vmatprep.subr.msk.mxu0 %vm13563_vm3, %v10808_v39  ;;  %9151 = vmatmul.mubr.msk.f32.gmra.mxu0 %vm13706_vm10, %v10816_v53  ;;  %vm13711_vm10 = vmmov %vm13684_vm0  ;;  %v10982_v34 = vld [vmem:[%s10667_s19 + $0x9a] sm:$0xff]  ;;  %v10988_v29 = vld [vmem:[%s10667_s19 + $0xa2] sm:$0xff] }
  0x77   : >> { %9113 = vmatmul.mubr.msk.f32.gmra.mxu1 %vm13684_vm0, %v10813_v38  ;;  %9153 = vmatprep.mubr.msk.f32.mxu0 %vm13708_vm6, %v10824_v20  ;;  %vm13713_vm6 = vmmov %vm13684_vm0  ;;  %v10985_v37 = vld [vmem:[%s10667_s19 + $0xa0] sm:$0xff]  ;;  %13732 = vst [vmem:[#allocation30_spill] sm:$0xff] %v10988_v29  ;;  %v10999_v33 = vld [vmem:[%s10667_s19 + $0xa8] sm:$0xff] }
  0x78   : >> { %9115 = vmatprep.mubr.msk.f32.mxu1 %vm13707_vm8, %v10821_v63  ;;  %vm13712_vm8 = vmmov %vm13684_vm0  ;;  %v11002_v47 = vld [vmem:[%s10667_s19 + $0xaa] sm:$0xff]  ;;  %v11008_v2 = vld [vmem:[%s10667_s19 + $0xb2] sm:$0xff] }
  0x79   : >> { %v11005_v52 = vld [vmem:[%s10667_s19 + $0xb0] sm:$0xff]  ;;  %13737 = vst [vmem:[#allocation31_spill] sm:$0xff] %v11008_v2  ;;  %v11019_v51 = vld [vmem:[%s10667_s19 + $0xb8] sm:$0xff]  ;;  %vm13754_vm4 = vmmov %vm13684_vm0 }
  0x7a   : >> { %9154 = vmatmul.mubr.msk.f32.gmra.mxu0 %vm13710_vm7, %v10842_v54  ;;  %vm13715_vm7 = vmmov %vm13684_vm0 }
  0x7b   : >> { %9116 = vmatmul.mubr.msk.f32.gmra.mxu1 %vm13709_vm11, %v10839_v21  ;;  %9156 = vmatprep.mubr.msk.f32.mxu0 %vm13711_vm10, %v10848_v56  ;;  %vm13714_vm11 = vmmov %vm13684_vm0 }
  0x7c   : >> { %9118 = vmatprep.mubr.msk.f32.mxu1 %vm13684_vm0, %v10845_v55  ;;  %vm13716_vm10 = vmmov %vm13684_vm0 }
  0x7e   : >> { %9157 = vmatmul.mubr.msk.f32.gmra.mxu0 %vm13713_vm6, %v10862_v35  ;;  %vm13718_vm6 = vmmov %vm13684_vm0 }
  0x7f   : >> { %9119 = vmatmul.mubr.msk.f32.gmra.mxu1 %vm13712_vm8, %v10859_v10  ;;  %9159 = vmatprep.mubr.msk.f32.mxu0 %vm13715_vm7, %v10868_v28  ;;  %vm13717_vm8 = vmmov %vm13684_vm0 }
  0x80   : >> { %9121 = vmatprep.mubr.msk.f32.mxu1 %vm13714_vm11, %v10865_v27  ;;  %vm13719_vm11 = vmmov %vm13684_vm0 }
  0x81   : >> { %vm13720_vm7 = vmmov %vm13684_vm0 }
  0x82   : >> { %9160 = vmatmul.mubr.msk.f32.gmra.mxu0 %vm13716_vm10, %v10882_v40  ;;  %vm13721_vm10 = vmmov %vm13684_vm0 }
  0x83   : >> { %9122 = vmatmul.mubr.msk.f32.gmra.mxu1 %vm13684_vm0, %v10879_v36  ;;  %9162 = vmatprep.mubr.msk.f32.mxu0 %vm13718_vm6, %v10888_v42  ;;  %vm13723_vm6 = vmmov %vm13684_vm0 }
  0x84   : >> { %9124 = vmatprep.mubr.msk.f32.mxu1 %vm13717_vm8, %v10885_v43  ;;  %vm13722_vm8 = vmmov %vm13684_vm0 }
  0x86   : >> { %9163 = vmatmul.mubr.msk.f32.gmra.mxu0 %vm13720_vm7, %v10902_v45  ;;  %vm13725_vm7 = vmmov %vm13684_vm0 }
  0x87   : >> { %9125 = vmatmul.mubr.msk.f32.gmra.mxu1 %vm13719_vm11, %v10899_v49  ;;  %9165 = vmatprep.mubr.msk.f32.mxu0 %vm13721_vm10, %v10908_v32  ;;  %vm13724_vm11 = vmmov %vm13684_vm0 }
  0x88   : >> { %9127 = vmatprep.mubr.msk.f32.mxu1 %vm13684_vm0, %v10905_v46  ;;  %vm13726_vm10 = vmmov %vm13684_vm0 }
  0x8a   : >> { %9166 = vmatmul.mubr.msk.f32.gmra.mxu0 %vm13723_vm6, %v10922_v19  ;;  %vm13728_vm6 = vmmov %vm13684_vm0 }
  0x8b   : >> { %9128 = vmatmul.mubr.msk.f32.gmra.mxu1 %vm13722_vm8, %v10919_v44  ;;  %9168 = vmatprep.mubr.msk.f32.mxu0 %vm13725_vm7, %v10928_v30  ;;  %vm13727_vm8 = vmmov %vm13684_vm0 }
  0x8c   : >> { %9130 = vmatprep.mubr.msk.f32.mxu1 %vm13724_vm11, %v10925_v31  ;;  %vm13729_vm11 = vmmov %vm13684_vm0 }
  0x8d   : >> { %vm13730_vm7 = vmmov %vm13684_vm0 }
  0x8e   : >> { %9169 = vmatmul.mubr.msk.f32.gmra.mxu0 %vm13726_vm10, %v10942_v23  ;;  %vm13731_vm10 = vmmov %vm13684_vm0 }
  0x8f   : >> { %9131 = vmatmul.mubr.msk.f32.gmra.mxu1 %vm13684_vm0, %v10939_v41  ;;  %9171 = vmatprep.mubr.msk.f32.mxu0 %vm13728_vm6, %v10948_v5  ;;  %vm13734_vm6 = vmmov %vm13684_vm0 }
  0x90   : >> { %9133 = vmatprep.mubr.msk.f32.mxu1 %vm13727_vm8, %v10945_v12  ;;  %vm13733_vm8 = vmmov %vm13684_vm0 }
  0x92   : >> { %9172 = vmatmul.mubr.msk.f32.gmra.mxu0 %vm13730_vm7, %v10962_v3  ;;  %vm13736_vm7 = vmmov %vm13684_vm0 }
  0x93   : >> { %9134 = vmatmul.mubr.msk.f32.gmra.mxu1 %vm13729_vm11, %v10959_v8  ;;  %9174 = vmatprep.mubr.msk.f32.mxu0 %vm13731_vm10, %v10968_v50  ;;  %vm13735_vm11 = vmmov %vm13684_vm0 }
  0x94   : >> { %9136 = vmatprep.mubr.msk.f32.mxu1 %vm13684_vm0, %v10965_v4  ;;  %vm13738_vm10 = vmmov %vm13684_vm0 }
  0x96   : >> { %9175 = vmatmul.mubr.msk.f32.gmra.mxu0 %vm13734_vm6, %v10982_v34  ;;  %vm13740_vm6 = vmmov %vm13684_vm0 }
  0x97   : >> { %9137 = vmatmul.mubr.msk.f32.gmra.mxu1 %vm13733_vm8, %v10979_v48  ;;  %9177 = vmatprep.mubr.msk.f32.mxu0 %vm13736_vm7, %v10988_v29  ;;  %vm13739_vm8 = vmmov %vm13684_vm0  ;;  %v11022_v29 = vld [vmem:[%s10667_s19 + $0xba] sm:$0xff] }
  0x98   : >> { %9139 = vmatprep.mubr.msk.f32.mxu1 %vm13735_vm11, %v10985_v37  ;;  %13741 = vst [vmem:[#allocation32_spill] sm:$0xff] %v11022_v29  ;;  %vm13742_vm11 = vmmov %vm13684_vm0 }
  0x99   : >> { %vm13743_vm7 = vmmov %vm13684_vm0 }
  0x9a   : >> { %9178 = vmatmul.mubr.msk.f32.gmra.mxu0 %vm13738_vm10, %v11002_v47  ;;  %vm13744_vm10 = vmmov %vm13684_vm0 }
  0x9b   : >> { %9140 = vmatmul.mubr.msk.f32.gmra.mxu1 %vm13684_vm0, %v10999_v33  ;;  %9180 = vmatprep.mubr.msk.f32.mxu0 %vm13740_vm6, %v11008_v2  ;;  %vm13746_vm6 = vmmov %vm13684_vm0  ;;  %v8020_v2 = vld [vmem:[%s13494_s1 + $0x1c] sm:$0xf] }
  0x9c   : >> { %9142 = vmatprep.mubr.msk.f32.mxu1 %vm13739_vm8, %v11005_v52  ;;  %vm13745_vm8 = vmmov %vm13684_vm0 }
  0x9e   : >> { %9181 = vmatmul.mubr.msk.f32.gmra.mxu0 %vm13743_vm7, %v11022_v29  ;;  %v8070_v29 = vld [vmem:[%s13494_s1 + $0x20] sm:$0xf]  ;;  %vm13748_vm7 = vmmov %vm13684_vm0 }
  0x9f   : >> { %9143 = vmatmul.mubr.msk.f32.gmra.mxu1 %vm13742_vm11, %v11019_v51  ;;  %9223 = vmatprep.mubr.msk.f32.mxu0 %vm13744_vm10, %v10696_v57  ;;  %vm13747_vm11 = vmmov %vm13684_vm0  ;;  %v7817_v57 = vld [vmem:[%s10667_s19 + $0xc0] sm:$0xff] }
  0xa0   : >> { %9185 = vmatprep.mubr.msk.f32.mxu1 %vm13684_vm0, %v10813_v38  ;;  %vm13749_vm10 = vmmov %vm13684_vm0  ;;  %v11140_v38 = vld [vmem:[%s10667_s19 + $0xd1] sm:$0xff] }
  0xa2   : >> { %9224 = vmatmul.mubr.msk.f32.vlgmr.msra.gmra.mxu0 %vm13746_vm6, %v10705_v59  ;;  %vm13751_vm6 = vmmov %vm13684_vm0  ;;  %v11126_v59 = vld [vmem:[%s10667_s19 + $0xc1] sm:$0xff] }
  0xa3   : >> { %9186 = vmatmul.mubr.msk.f32.vlgmr.msra.gmra.mxu1 %vm13745_vm8, %v10821_v63  ;;  %9298 = vmatpush3.msk.msra.mxu0 %vm13563_vm3, %v10808_v39  ;;  %vm13750_vm8 = vmmov %vm13684_vm0  ;;  %v7819_v39 = vld [vmem:[%s10667_s19 + $0xd0] sm:$0xff] }
  0xa4   : >> { %9260 = vmatpush3.msk.msra.mxu1 %vm13563_vm3, %v10803_v24  ;;  %9188 = vmatprep.mubr.msk.f32.mxu1 %vm13747_vm11, %v10839_v21  ;;  %vm13752_vm11 = vmmov %vm13684_vm0  ;;  %v11130_v24 = vld [vmem:[%s10667_s19 + $0xc9] sm:$0xff] }
  0xa5   : >> { %9226 = vmatprep.mubr.msk.f32.mxu0 %vm13748_vm7, %v10721_v61  ;;  %9335 = vmatprep.subr.msk.mxu1 %vm13563_vm3, %v8020_v2  ;;  %vm13753_vm7 = vmmov %vm13684_vm0  ;;  %v7818_v61 = vld [vmem:[%s10667_s19 + $0xc8] sm:$0xff] }
  0xa6   : >> { %9373 = vmatprep.subr.msk.mxu0 %vm13563_vm3, %v8070_v29  ;;  %9227 = vmatmul.mubr.msk.f32.gmra.mxu0 %vm13749_vm10, %v10727_v0  ;;  %vm13755_vm10 = vmmov %vm13684_vm0 }
  0xa7   : >> { %9189 = vmatmul.mubr.msk.f32.gmra.mxu1 %vm13684_vm0, %v10845_v55  ;;  %9229 = vmatprep.mubr.msk.f32.mxu0 %vm13751_vm6, %v10741_v11  ;;  %vm13757_vm6 = vmmov %vm13684_vm0 }
  0xa8   : >> { %9191 = vmatprep.mubr.msk.f32.mxu1 %vm13750_vm8, %v10859_v10  ;;  %vm13756_vm8 = vmmov %vm13684_vm0 }
  0xaa   : >> { %9230 = vmatmul.mubr.msk.f32.gmra.mxu0 %vm13753_vm7, %v10747_v14  ;;  %vm13759_vm7 = vmmov %vm13684_vm0 }
  0xab   : >> { %9192 = vmatmul.mubr.msk.f32.gmra.mxu1 %vm13752_vm11, %v10865_v27  ;;  %9232 = vmatprep.mubr.msk.f32.mxu0 %vm13684_vm0, %v10761_v16  ;;  %vm13758_vm11 = vmmov %vm13684_vm0 }
  0xac   : >> { %9194 = vmatprep.mubr.msk.f32.mxu1 %vm13754_vm4, %v10879_v36  ;;  %vm13760_vm4 = vmmov %vm13684_vm0 }
  0xae   : >> { %9233 = vmatmul.mubr.msk.f32.gmra.mxu0 %vm13756_vm8, %v10767_v18  ;;  %vm13762_vm8 = vmmov %vm13684_vm0 }
  0xaf   : >> { %9195 = vmatmul.mubr.msk.f32.gmra.mxu1 %vm13755_vm10, %v10885_v43  ;;  %9235 = vmatprep.mubr.msk.f32.mxu0 %vm13758_vm11, %v10781_v25  ;;  %vm13761_vm10 = vmmov %vm13684_vm0 }
  0xb0   : >> { %9197 = vmatprep.mubr.msk.f32.mxu1 %vm13757_vm6, %v10899_v49  ;;  %vm13763_vm6 = vmmov %vm13684_vm0 }
  0xb1   : >> { %vm13764_vm11 = vmmov %vm13684_vm0 }
  0xb2   : >> { %9236 = vmatmul.mubr.msk.f32.gmra.mxu0 %vm13760_vm4, %v10671_v6  ;;  %vm13766_vm4 = vmmov %vm13684_vm0 }
  0xb3   : >> { %9198 = vmatmul.mubr.msk.f32.gmra.mxu1 %vm13759_vm7, %v10905_v46  ;;  %9238 = vmatprep.mubr.msk.f32.mxu0 %vm13761_vm10, %v10678_v7  ;;  %vm13765_vm7 = vmmov %vm13684_vm0 }
  0xb4   : >> { %9200 = vmatprep.mubr.msk.f32.mxu1 %vm13684_vm0, %v10919_v44  ;;  %vm13767_vm10 = vmmov %vm13684_vm0 }
  0xb6   : >> { %9239 = vmatmul.mubr.msk.f32.gmra.mxu0 %vm13763_vm6, %v10682_v9  ;;  %vm13769_vm6 = vmmov %vm13684_vm0 }
  0xb7   : >> { %9201 = vmatmul.mubr.msk.f32.gmra.mxu1 %vm13762_vm8, %v10925_v31  ;;  %9241 = vmatprep.mubr.msk.f32.mxu0 %vm13765_vm7, %v10699_v58  ;;  %vm13768_vm8 = vmmov %vm13684_vm0 }
  0xb8   : >> { %9203 = vmatprep.mubr.msk.f32.mxu1 %vm13764_vm11, %v10939_v41  ;;  %vm13770_vm11 = vmmov %vm13684_vm0 }
  0xb9   : >> { %vm13771_vm7 = vmmov %vm13684_vm0 }
  0xba   : >> { %9242 = vmatmul.mubr.msk.f32.gmra.mxu0 %vm13684_vm0, %v10708_v60 }
  0xbb   : >> { %9204 = vmatmul.mubr.msk.f32.gmra.mxu1 %vm13766_vm4, %v10945_v12  ;;  %9244 = vmatprep.mubr.msk.f32.mxu0 %vm13768_vm8, %v10724_v62  ;;  %vm13772_vm4 = vmmov %vm13684_vm0 }
  0xbc   : >> { %9206 = vmatprep.mubr.msk.f32.mxu1 %vm13767_vm10, %v10959_v8  ;;  %vm13773_vm10 = vmmov %vm13684_vm0 }
  0xbd   : >> { %vm13774_vm8 = vmmov %vm13684_vm0 }
  0xbe   : >> { %9245 = vmatmul.mubr.msk.f32.gmra.mxu0 %vm13770_vm11, %v10730_v1  ;;  %vm13776_vm11 = vmmov %vm13684_vm0 }
  0xbf   : >> { %9207 = vmatmul.mubr.msk.f32.gmra.mxu1 %vm13769_vm6, %v10965_v4  ;;  %9247 = vmatprep.mubr.msk.f32.mxu0 %vm13772_vm4, %v10744_v13  ;;  %vm13775_vm6 = vmmov %vm13684_vm0 }
  0xc0   : >> { %9209 = vmatprep.mubr.msk.f32.mxu1 %vm13771_vm7, %v10979_v48  ;;  %vm13777_vm7 = vmmov %vm13684_vm0 }
  0xc1   : >> { %vm13778_vm4 = vmmov %vm13684_vm0 }
  0xc2   : >> { %9248 = vmatmul.mubr.msk.f32.gmra.mxu0 %vm13773_vm10, %v10750_v15  ;;  %vm13779_vm10 = vmmov %vm13684_vm0 }
  0xc3   : >> { %9210 = vmatmul.mubr.msk.f32.gmra.mxu1 %vm13684_vm0, %v10985_v37  ;;  %9250 = vmatprep.mubr.msk.f32.mxu0 %vm13775_vm6, %v10764_v17  ;;  %vm13781_vm6 = vmmov %vm13684_vm0 }
  0xc4   : >> { %9212 = vmatprep.mubr.msk.f32.mxu1 %vm13774_vm8, %v10999_v33  ;;  %vm13780_vm8 = vmmov %vm13684_vm0 }
  0xc6   : >> { %9251 = vmatmul.mubr.msk.f32.gmra.mxu0 %vm13777_vm7, %v10770_v22  ;;  %vm13783_vm7 = vmmov %vm13684_vm0 }
  0xc7   : >> { %9213 = vmatmul.mubr.msk.f32.gmra.mxu1 %vm13776_vm11, %v11005_v52  ;;  %9253 = vmatprep.mubr.msk.f32.mxu0 %vm13684_vm0, %v10784_v26  ;;  %vm13782_vm11 = vmmov %vm13684_vm0 }
  0xc8   : >> { %9215 = vmatprep.mubr.msk.f32.mxu1 %vm13778_vm4, %v11019_v51  ;;  %vm13784_vm4 = vmmov %vm13684_vm0 }
  0xca   : >> { %9254 = vmatmul.mubr.msk.f32.gmra.mxu0 %vm13780_vm8, %v11126_v59  ;;  %vm13786_vm8 = vmmov %vm13684_vm0 }
  0xcb   : >> { %9216 = vmatmul.mubr.msk.f32.gmra.mxu1 %vm13779_vm10, %v7817_v57  ;;  %9256 = vmatprep.mubr.msk.f32.mxu0 %vm13782_vm11, %v11130_v24  ;;  %vm13785_vm10 = vmmov %vm13684_vm0 }
  0xcc   : >> { %9218 = vmatprep.mubr.msk.f32.mxu1 %vm13781_vm6, %v7818_v61  ;;  %vm13787_vm6 = vmmov %vm13684_vm0 }
  0xcd   : >> { %vm13788_vm11 = vmmov %vm13684_vm0 }
  0xce   : >> { %9257 = vmatmul.mubr.msk.f32.gmra.mxu0 %vm13784_vm4, %v11140_v38  ;;  %vm13790_vm4 = vmmov %vm13684_vm0 }
  0xcf   : >> { %9219 = vmatmul.mubr.msk.f32.gmra.mxu1 %vm13783_vm7, %v7819_v39  ;;  %9299 = vmatprep.mubr.msk.f32.mxu0 %vm13785_vm10, %v10845_v55  ;;  %vm13789_vm7 = vmmov %vm13684_vm0 }
  0xd0   : >> { %9261 = vmatprep.mubr.msk.f32.mxu1 %vm13684_vm0, %v10816_v53  ;;  %vm13791_vm10 = vmmov %vm13684_vm0 }
  0xd2   : >> { %9300 = vmatmul.mubr.msk.f32.vlgmr.msra.gmra.mxu0 %vm13787_vm6, %v10859_v10  ;;  %vm13793_vm6 = vmmov %vm13684_vm0 }
  0xd3   : >> { %9262 = vmatmul.mubr.msk.f32.vlgmr.msra.gmra.mxu1 %vm13786_vm8, %v10824_v20  ;;  %9374 = vmatpush3.msk.msra.mxu0 %vm13563_vm3, %v8070_v29  ;;  %vm13792_vm8 = vmmov %vm13684_vm0  ;;  %v13818_v29 = vld [vmem:[#allocation31_spill] sm:$0xff] }
  0xd4   : >> { %9336 = vmatpush3.msk.msra.mxu1 %vm13563_vm3, %v8020_v2  ;;  %9264 = vmatprep.mubr.msk.f32.mxu1 %vm13788_vm11, %v10842_v54  ;;  %vm13794_vm11 = vmmov %vm13684_vm0  ;;  %v13814_v2 = vld [vmem:[#allocation30_spill] sm:$0xff] }
  0xd5   : >> { %9302 = vmatprep.mubr.msk.f32.mxu0 %vm13789_vm7, %v10865_v27  ;;  %vm13795_vm7 = vmmov %vm13684_vm0 }
  0xd6   : >> { %9303 = vmatmul.mubr.msk.f32.gmra.mxu0 %vm13684_vm0, %v10879_v36  ;;  %vm13823_vm3 = vmmov %vm13684_vm0 }
  0xd7   : >> { %9265 = vmatmul.mubr.msk.f32.gmra.mxu1 %vm13790_vm4, %v10848_v56  ;;  %9305 = vmatprep.mubr.msk.f32.mxu0 %vm13792_vm8, %v10885_v43  ;;  %vm13796_vm4 = vmmov %vm13684_vm0 }
  0xd8   : >> { %9267 = vmatprep.mubr.msk.f32.mxu1 %vm13791_vm10, %v10862_v35  ;;  %vm13797_vm10 = vmmov %vm13684_vm0 }
  0xd9   : >> { %vm13798_vm8 = vmmov %vm13684_vm0 }
  0xda   : >> { %9306 = vmatmul.mubr.msk.f32.gmra.mxu0 %vm13794_vm11, %v10899_v49  ;;  %vm13800_vm11 = vmmov %vm13684_vm0 }
  0xdb   : >> { %9268 = vmatmul.mubr.msk.f32.gmra.mxu1 %vm13793_vm6, %v10868_v28  ;;  %9308 = vmatprep.mubr.msk.f32.mxu0 %vm13796_vm4, %v10905_v46  ;;  %vm13799_vm6 = vmmov %vm13684_vm0  ;;  %v8017_v46 = vld [vmem:[%s10667_s19 + $0xd9] sm:$0xff] }
  0xdc   : >> { %9270 = vmatprep.mubr.msk.f32.mxu1 %vm13795_vm7, %v10882_v40  ;;  %vm13801_vm7 = vmmov %vm13684_vm0 }
  0xdd   : >> { %vm13802_vm4 = vmmov %vm13684_vm0 }
  0xde   : >> { %9309 = vmatmul.mubr.msk.f32.gmra.mxu0 %vm13797_vm10, %v10919_v44  ;;  %vm13803_vm10 = vmmov %vm13684_vm0 }
  0xdf   : >> { %9271 = vmatmul.mubr.msk.f32.gmra.mxu1 %vm13684_vm0, %v10888_v42  ;;  %9311 = vmatprep.mubr.msk.f32.mxu0 %vm13799_vm6, %v10925_v31  ;;  %vm13805_vm6 = vmmov %vm13684_vm0 }
  0xe0   : >> { %9273 = vmatprep.mubr.msk.f32.mxu1 %vm13798_vm8, %v10902_v45  ;;  %vm13804_vm8 = vmmov %vm13684_vm0 }
  0xe2   : >> { %9312 = vmatmul.mubr.msk.f32.gmra.mxu0 %vm13801_vm7, %v10939_v41  ;;  %vm13807_vm7 = vmmov %vm13684_vm0 }
  0xe3   : >> { %9274 = vmatmul.mubr.msk.f32.gmra.mxu1 %vm13800_vm11, %v10908_v32  ;;  %9314 = vmatprep.mubr.msk.f32.mxu0 %vm13684_vm0, %v10945_v12  ;;  %vm13806_vm11 = vmmov %vm13684_vm0 }
  0xe4   : >> { %9276 = vmatprep.mubr.msk.f32.mxu1 %vm13802_vm4, %v10922_v19  ;;  %vm13808_vm4 = vmmov %vm13684_vm0 }
  0xe6   : >> { %9315 = vmatmul.mubr.msk.f32.gmra.mxu0 %vm13804_vm8, %v10959_v8  ;;  %vm13810_vm8 = vmmov %vm13684_vm0  ;;  %v7969_v8 = vld [vmem:[%s10667_s19 + $0xe8] sm:$0xff] }
  0xe7   : >> { %9277 = vmatmul.mubr.msk.f32.gmra.mxu1 %vm13803_vm10, %v10928_v30  ;;  %9317 = vmatprep.mubr.msk.f32.mxu0 %vm13806_vm11, %v10965_v4  ;;  %vm13809_vm10 = vmmov %vm13684_vm0  ;;  %v7919_v4 = vld [vmem:[%s10667_s19 + $0xd2] sm:$0xff] }
  0xe8   : >> { %9279 = vmatprep.mubr.msk.f32.mxu1 %vm13805_vm6, %v10942_v23  ;;  %vm13811_vm6 = vmmov %vm13684_vm0 }
  0xe9   : >> { %vm13812_vm11 = vmmov %vm13684_vm0 }
  0xea   : >> { %9318 = vmatmul.mubr.msk.f32.gmra.mxu0 %vm13808_vm4, %v10979_v48  ;;  %vm13815_vm4 = vmmov %vm13684_vm0  ;;  %v11231_v48 = vld [vmem:[%s10667_s19 + $0xca] sm:$0xff] }
  0xeb   : >> { %9280 = vmatmul.mubr.msk.f32.gmra.mxu1 %vm13807_vm7, %v10948_v5  ;;  %9320 = vmatprep.mubr.msk.f32.mxu0 %vm13809_vm10, %v10985_v37  ;;  %vm13813_vm7 = vmmov %vm13684_vm0  ;;  %v7967_v37 = vld [vmem:[%s10667_s19 + $0xd8] sm:$0xff] }
  0xec   : >> { %9282 = vmatprep.mubr.msk.f32.mxu1 %vm13684_vm0, %v10962_v3  ;;  %vm13816_vm10 = vmmov %vm13684_vm0 }
  0xee   : >> { %9321 = vmatmul.mubr.msk.f32.gmra.mxu0 %vm13811_vm6, %v10999_v33  ;;  %vm13819_vm6 = vmmov %vm13684_vm0  ;;  %v13821_v33 = vld [vmem:[#allocation32_spill] sm:$0xff] }
  0xef   : >> { %9283 = vmatmul.mubr.msk.f32.gmra.mxu1 %vm13810_vm8, %v10968_v50  ;;  %9323 = vmatprep.mubr.msk.f32.mxu0 %vm13813_vm7, %v11005_v52  ;;  %vm13817_vm8 = vmmov %vm13684_vm0  ;;  %v7917_v52 = vld [vmem:[%s10667_s19 + $0xc2] sm:$0xff] }
  0xf0   : >> { %9285 = vmatprep.mubr.msk.f32.mxu1 %vm13812_vm11, %v10982_v34  ;;  %vm13820_vm11 = vmmov %vm13684_vm0 }
  0xf1   : >> { %vm13822_vm7 = vmmov %vm13684_vm0 }
  0xf2   : >> { %9324 = vmatmul.mubr.msk.f32.gmra.mxu0 %vm13684_vm0, %v11019_v51  ;;  %v7968_v51 = vld [vmem:[%s10667_s19 + $0xe0] sm:$0xff] }
  0xf3   : >> { %9286 = vmatmul.mubr.msk.f32.gmra.mxu1 %vm13815_vm4, %v13814_v2  ;;  %9326 = vmatprep.mubr.msk.f32.mxu0 %vm13817_vm8, %v7817_v57  ;;  %vm13824_vm4 = vmmov %vm13684_vm0 }
  0xf4   : >> { %9288 = vmatprep.mubr.msk.f32.mxu1 %vm13816_vm10, %v11002_v47  ;;  %vm13825_vm10 = vmmov %vm13684_vm0 }
  0xf5   : >> { %vm13826_vm8 = vmmov %vm13684_vm0 }
  0xf6   : >> { %9327 = vmatmul.mubr.msk.f32.gmra.mxu0 %vm13820_vm11, %v7818_v61  ;;  %vm13828_vm11 = vmmov %vm13684_vm0 }
  0xf7   : >> { %9289 = vmatmul.mubr.msk.f32.gmra.mxu1 %vm13819_vm6, %v13818_v29  ;;  %9329 = vmatprep.mubr.msk.f32.mxu0 %vm13823_vm3, %v7819_v39  ;;  %vm13827_vm6 = vmmov %vm13684_vm0 }
  0xf8   : >> { %9291 = vmatprep.mubr.msk.f32.mxu1 %vm13822_vm7, %v13821_v33  ;;  %vm13829_vm3 = vmmov %vm13684_vm0 }
  0xf9   : >> { %vm13830_vm7 = vmmov %vm13684_vm0 }
  0xfa   : >> { %9330 = vmatmul.mubr.msk.f32.gmra.mxu0 %vm13684_vm0, %v7967_v37 }
  0xfb   : >> { %9292 = vmatmul.mubr.msk.f32.gmra.mxu1 %vm13824_vm4, %v7917_v52  ;;  %9332 = vmatprep.mubr.msk.f32.mxu0 %vm13826_vm8, %v7968_v51  ;;  %vm13831_vm4 = vmmov %vm13684_vm0 }
  0xfc   : >> { %9294 = vmatprep.mubr.msk.f32.mxu1 %vm13825_vm10, %v11231_v48  ;;  %vm13832_vm10 = vmmov %vm13684_vm0 }
  0xfd   : >> { %vm13833_vm8 = vmmov %vm13684_vm0 }
  0xfe   : >> { %9333 = vmatmul.mubr.msk.f32.gmra.mxu0 %vm13828_vm11, %v7969_v8  ;;  %vm13835_vm11 = vmmov %vm13684_vm0 }
  0xff   : >> { %9295 = vmatmul.mubr.msk.f32.gmra.mxu1 %vm13827_vm6, %v7919_v4  ;;  %9375 = vmatprep.mubr.msk.f32.mxu0 %vm13830_vm7, %v10848_v56  ;;  %vm13834_vm6 = vmmov %vm13684_vm0 }
 0x100   : >> { %9337 = vmatprep.mubr.msk.f32.mxu1 %vm13829_vm3, %v10727_v0  ;;  %vm13836_vm3 = vmmov %vm13684_vm0  ;;  %v8069_v0 = vld [vmem:[%s10667_s19 + $0xea] sm:$0xff] }
 0x101   : >> { %vm13837_vm7 = vmmov %vm13684_vm0 }
 0x102   : >> { %9376 = vmatmul.mubr.msk.f32.vlgmr.msra.gmra.mxu0 %vm13684_vm0, %v10862_v35 }
 0x103   : >> { %9338 = vmatmul.mubr.msk.f32.vlgmr.msra.gmra.mxu1 %vm13831_vm4, %v10741_v11  ;;  %9378 = vmatprep.mubr.msk.f32.mxu0 %vm13833_vm8, %v10868_v28  ;;  %vm13838_vm4 = vmmov %vm13684_vm0 }
 0x104   : >> { %9340 = vmatprep.mubr.msk.f32.mxu1 %vm13832_vm10, %v10747_v14  ;;  %vm13839_vm10 = vmmov %vm13684_vm0 }
 0x105   : >> { %vm13840_vm8 = vmmov %vm13684_vm0 }
 0x106   : >> { %9379 = vmatmul.mubr.msk.f32.gmra.mxu0 %vm13835_vm11, %v10882_v40  ;;  %vm13842_vm11 = vmmov %vm13684_vm0 }
 0x107   : >> { %9341 = vmatmul.mubr.msk.f32.gmra.mxu1 %vm13834_vm6, %v10761_v16  ;;  %9381 = vmatprep.mubr.msk.f32.mxu0 %vm13837_vm7, %v10888_v42  ;;  %vm13841_vm6 = vmmov %vm13684_vm0  ;;  %v8067_v42 = vld [vmem:[%s10667_s19 + $0xda] sm:$0xff] }
 0x108   : >> { %9343 = vmatprep.mubr.msk.f32.mxu1 %vm13836_vm3, %v10767_v18  ;;  %vm13843_vm3 = vmmov %vm13684_vm0 }
 0x109   : >> { %vm13844_vm7 = vmmov %vm13684_vm0 }
 0x10a   : >> { %9382 = vmatmul.mubr.msk.f32.gmra.mxu0 %vm13684_vm0, %v10902_v45 }
 0x10b   : >> { %9344 = vmatmul.mubr.msk.f32.gmra.mxu1 %vm13838_vm4, %v10781_v25  ;;  %9384 = vmatprep.mubr.msk.f32.mxu0 %vm13840_vm8, %v10908_v32  ;;  %vm13845_vm4 = vmmov %vm13684_vm0 }
 0x10c   : >> { %9346 = vmatprep.mubr.msk.f32.mxu1 %vm13839_vm10, %v10671_v6  ;;  %vm13846_vm10 = vmmov %vm13684_vm0 }
 0x10d   : >> { %vm13847_vm8 = vmmov %vm13684_vm0 }
 0x10e   : >> { %9385 = vmatmul.mubr.msk.f32.gmra.mxu0 %vm13842_vm11, %v10922_v19  ;;  %vm13849_vm11 = vmmov %vm13684_vm0 }
 0x10f   : >> { %9347 = vmatmul.mubr.msk.f32.gmra.mxu1 %vm13841_vm6, %v10678_v7  ;;  %9387 = vmatprep.mubr.msk.f32.mxu0 %vm13844_vm7, %v10928_v30  ;;  %vm13848_vm6 = vmmov %vm13684_vm0  ;;  %v8018_v7 = vld [vmem:[%s10667_s19 + $0xe1] sm:$0xff] }
 0x110   : >> { %9349 = vmatprep.mubr.msk.f32.mxu1 %vm13843_vm3, %v10682_v9  ;;  %vm13850_vm3 = vmmov %vm13684_vm0  ;;  %v8068_v9 = vld [vmem:[%s10667_s19 + $0xe2] sm:$0xff] }
 0x111   : >> { %vm13851_vm7 = vmmov %vm13684_vm0 }
 0x112   : >> { %9388 = vmatmul.mubr.msk.f32.gmra.mxu0 %vm13684_vm0, %v10942_v23 }
 0x113   : >> { %9350 = vmatmul.mubr.msk.f32.gmra.mxu1 %vm13845_vm4, %v10699_v58  ;;  %9390 = vmatprep.mubr.msk.f32.mxu0 %vm13847_vm8, %v10948_v5  ;;  %vm13852_vm4 = vmmov %vm13684_vm0 }
 0x114   : >> { %9352 = vmatprep.mubr.msk.f32.mxu1 %vm13846_vm10, %v10708_v60  ;;  %vm13853_vm10 = vmmov %vm13684_vm0 }
 0x115   : >> { %vm13854_vm8 = vmmov %vm13684_vm0 }
 0x116   : >> { %9391 = vmatmul.mubr.msk.f32.gmra.mxu0 %vm13849_vm11, %v10962_v3  ;;  %vm13856_vm11 = vmmov %vm13684_vm0 }
 0x117   : >> { %9353 = vmatmul.mubr.msk.f32.gmra.mxu1 %vm13848_vm6, %v10724_v62  ;;  %9393 = vmatprep.mubr.msk.f32.mxu0 %vm13851_vm7, %v10968_v50  ;;  %vm13855_vm6 = vmmov %vm13684_vm0  ;;  %v8019_v62 = vld [vmem:[%s10667_s19 + $0xe9] sm:$0xff] }
 0x118   : >> { %9355 = vmatprep.mubr.msk.f32.mxu1 %vm13850_vm3, %v10730_v1  ;;  %vm13857_vm3 = vmmov %vm13684_vm0 }
 0x119   : >> { %vm13858_vm7 = vmmov %vm13684_vm0 }
 0x11a   : >> { %v9073_v12 = vpop.f32.mrf.mxu0  ;;  %9394 = vmatmul.mubr.msk.f32.gmra.mxu0 %vm13684_vm0, %v10982_v34 }
 0x11b   : >> { %v11295_v23 = vpop.f32.mrf.mxu1  ;;  %9356 = vmatmul.mubr.msk.f32.gmra.mxu1 %vm13852_vm4, %v10744_v13  ;;  %9396 = vmatprep.mubr.msk.f32.mxu0 %vm13854_vm8, %v13814_v2  ;;  %vm13859_vm4 = vmmov %vm13684_vm0 }
 0x11c   : >> { %9358 = vmatprep.mubr.msk.f32.mxu1 %vm13853_vm10, %v10750_v15  ;;  %v921_v3 = vpop.f32.mrf.mxu0  ;;  %vm13860_vm10 = vmmov %vm13684_vm0 }
 0x11d   : >> { %v11305_v5 = vpop.f32.mrf.mxu1  ;;  %vm13861_vm8 = vmmov %vm13684_vm0 }
 0x11e   : >> { %v9076_v30 = vpop.f32.mrf.mxu0  ;;  %9397 = vmatmul.mubr.msk.f32.gmra.mxu0 %vm13856_vm11, %v11002_v47  ;;  %vm13863_vm11 = vmmov %vm13684_vm0 }
 0x11f   : >> { %v11307_v50 = vpop.f32.mrf.mxu1  ;;  %9359 = vmatmul.mubr.msk.f32.gmra.mxu1 %vm13855_vm6, %v10764_v17  ;;  %9399 = vmatprep.mubr.msk.f32.mxu0 %vm13858_vm7, %v13818_v29  ;;  %vm13862_vm6 = vmmov %vm13684_vm0 }
 0x120   : >> { %9361 = vmatprep.mubr.msk.f32.mxu1 %vm13857_vm3, %v10770_v22  ;;  %v931_v34 = vpop.f32.mrf.mxu0  ;;  %vm13864_vm3 = vmmov %vm13684_vm0 }
 0x121   : >> { %v11317_v41 = vpop.f32.mrf.mxu1  ;;  %vm13865_vm7 = vmmov %vm13684_vm0 }
 0x122   : >> { %v9079_v19 = vpop.f32.mrf.mxu0  ;;  %9400 = vmatmul.mubr.msk.f32.gmra.mxu0 %vm13684_vm0, %v13821_v33 }
 0x123   : >> { %v11319_v31 = vpop.f32.mrf.mxu1  ;;  %9362 = vmatmul.mubr.msk.f32.gmra.mxu1 %vm13859_vm4, %v10784_v26  ;;  %9402 = vmatprep.mubr.msk.f32.mxu0 %vm13861_vm8, %v7917_v52  ;;  %vm13866_vm4 = vmmov %vm13684_vm0 }
 0x124   : >> { %9364 = vmatprep.mubr.msk.f32.mxu1 %vm13860_vm10, %v11126_v59  ;;  %v941_v47 = vpop.f32.mrf.mxu0  ;;  %vm13867_vm10 = vmmov %vm13684_vm0 }
 0x125   : >> { %v11328_v32 = vpop.f32.mrf.mxu1  ;;  %vm13868_vm8 = vmmov %vm13684_vm0 }
 0x126   : >> { %v9082_v44 = vpop.f32.mrf.mxu0  ;;  %9403 = vmatmul.mubr.msk.f32.gmra.mxu0 %vm13863_vm11, %v11231_v48  ;;  %vm13870_vm11 = vmmov %vm13684_vm0 }
 0x127   : >> { %v11330_v45 = vpop.f32.mrf.mxu1  ;;  %9365 = vmatmul.mubr.msk.f32.gmra.mxu1 %vm13862_vm6, %v11130_v24  ;;  %9405 = vmatprep.mubr.msk.f32.mxu0 %vm13865_vm7, %v7919_v4  ;;  %vm13869_vm6 = vmmov %vm13684_vm0 }
 0x128   : >> { %9367 = vmatprep.mubr.msk.f32.mxu1 %vm13864_vm3, %v11140_v38  ;;  %v951_v49 = vpop.f32.mrf.mxu0  ;;  %vm3580_vm3 = vcmask 1040384   ;;  %vm13891_vm7 = vmmov %vm13684_vm0 }
 0x129   : >> { %v11341_v6 = vpop.f32.mrf.mxu1 }
 0x12a   : >> { %v9085_v58 = vpop.f32.mrf.mxu0  ;;  %9406 = vmatmul.mubr.msk.f32.gmra.mxu0 %vm13684_vm0, %v8067_v42 }
 0x12b   : >> { %v11345_v60 = vpop.f32.mrf.mxu1  ;;  %9368 = vmatmul.mubr.msk.f32.gmra.mxu1 %vm13866_vm4, %v8017_v46  ;;  %9408 = vmatprep.mubr.msk.f32.mxu0 %vm13868_vm8, %v8068_v9  ;;  %vm13892_vm4 = vmmov %vm13684_vm0 }
 0x12c   : >> { %9370 = vmatprep.mubr.msk.f32.mxu1 %vm13867_vm10, %v8018_v7  ;;  %v961_v1 = vpop.f32.mrf.mxu0  ;;  %vm13895_vm10 = vmmov %vm13684_vm0 }
 0x12d   : >> { %v11353_v11 = vpop.f32.mrf.mxu1  ;;  %vm13896_vm8 = vmmov %vm13684_vm0 }
 0x12e   : >> { %v9088_v13 = vpop.f32.mrf.mxu0  ;;  %9409 = vmatmul.mubr.msk.f32.gmra.mxu0 %vm13870_vm11, %v8069_v0  ;;  %vm13903_vm11 = vmmov %vm13684_vm0 }
 0x12f   : >> { %v11355_v14 = vpop.f32.mrf.mxu1  ;;  %9371 = vmatmul.mubr.msk.f32.gmra.mxu1 %vm13869_vm6, %v8019_v62  ;;  %vm13897_vm6 = vmmov %vm13684_vm0 }
 0x130   : >> { %v971_v15 = vpop.f32.mrf.mxu0 }
 0x131   : >> { %v11359_v16 = vpop.f32.mrf.mxu1 }
 0x132   : >> { %v9149_v18 = vpop.f32.mrf.mxu0 }
 0x133   : >> { %v9111_v17 = vpop.f32.mrf.mxu1 }
 0x134   : >> { %v1187_v22 = vadd.f32 %v9111_v17, %v9073_v12  ;;  %v1469_v26 = vpop.f32.mrf.mxu0 }
 0x135   : >> { %v1181_v25 = vpop.f32.mrf.mxu1 }
 0x136   : >> { %v11361_v53 = vadd.f32 %v9149_v18, %v1187_v22  ;;  %v1182_v63 = vadd.f32 %v1181_v25, %v921_v3  ;;  %v9152_v21 = vpop.f32.mrf.mxu0 }
 0x137   : >> { %v9114_v20 = vpop.f32.mrf.mxu1 }
 0x138   : >> { %v11363_v54 = vadd.f32 %v1469_v26, %v1182_v63  ;;  %v1197_v55 = vadd.f32 %v9114_v20, %v9076_v30  ;;  %v1479_v10 = vpop.f32.mrf.mxu0 }
 0x139   : >> { %v1191_v56 = vpop.f32.mrf.mxu1 }
 0x13a   : >> { %v11365_v35 = vadd.f32 %v9152_v21, %v1197_v55  ;;  %v1192_v27 = vadd.f32 %v1191_v56, %v931_v34  ;;  %v9155_v36 = vpop.f32.mrf.mxu0 }
 0x13b   : >> { %v9117_v28 = vpop.f32.mrf.mxu1 }
 0x13c   : >> { %v11367_v40 = vadd.f32 %v1479_v10, %v1192_v27  ;;  %v1207_v43 = vadd.f32 %v9117_v28, %v9079_v19  ;;  %v1489_v59 = vpop.f32.mrf.mxu0 }
 0x13d   : >> { %v1201_v57 = vpop.f32.mrf.mxu1 }
 0x13e   : >> { %v11369_v61 = vadd.f32 %v9155_v36, %v1207_v43  ;;  %v1202_v24 = vadd.f32 %v1201_v57, %v941_v47  ;;  %v9158_v38 = vpop.f32.mrf.mxu0 }
 0x13f   : >> { %v9120_v39 = vpop.f32.mrf.mxu1 }
 0x140   : >> { %v11371_v2 = vadd.f32 %v1489_v59, %v1202_v24  ;;  %v1217_v29 = vadd.f32 %v9120_v39, %v9082_v44  ;;  %v1499_v52 = vpop.f32.mrf.mxu0 }
 0x141   : >> { %v1211_v33 = vpop.f32.mrf.mxu1 }
 0x142   : >> { %v11373_v37 = vadd.f32 %v9158_v38, %v1217_v29  ;;  %v1212_v48 = vadd.f32 %v1211_v33, %v951_v49  ;;  %v9161_v4 = vpop.f32.mrf.mxu0 }
 0x143   : >> { %v9123_v51 = vpop.f32.mrf.mxu1 }
 0x144   : >> { %v11375_v8 = vadd.f32 %v1499_v52, %v1212_v48  ;;  %v1227_v12 = vadd.f32 %v9123_v51, %v9085_v58  ;;  %v1509_v30 = vpop.f32.mrf.mxu0 }
 0x145   : >> { %v1221_v3 = vpop.f32.mrf.mxu1 }
 0x146   : >> { %v11377_v34 = vadd.f32 %v9161_v4, %v1227_v12  ;;  %v1222_v19 = vadd.f32 %v1221_v3, %v961_v1  ;;  %v9164_v46 = vpop.f32.mrf.mxu0 }
 0x147   : >> { %v9126_v47 = vpop.f32.mrf.mxu1 }
 0x148   : >> { %v11379_v42 = vadd.f32 %v1509_v30, %v1222_v19  ;;  %v1237_v44 = vadd.f32 %v9126_v47, %v9088_v13  ;;  %v1519_v9 = vpop.f32.mrf.mxu0 }
 0x149   : >> { %v1231_v7 = vpop.f32.mrf.mxu1 }
 0x14a   : >> { %v11381_v62 = vadd.f32 %v9164_v46, %v1237_v44  ;;  %v1232_v49 = vadd.f32 %v1231_v7, %v971_v15  ;;  %v9167_v17 = vpop.f32.mrf.mxu0 }
 0x14b   : >> { %v9129_v0 = vpop.f32.mrf.mxu1 }
 0x14c   : >> { %v11383_v18 = vadd.f32 %v1519_v9, %v1232_v49  ;;  %v1247_v58 = vadd.f32 %v9129_v0, %v11295_v23  ;;  %v1529_v25 = vpop.f32.mrf.mxu0 }
 0x14d   : >> { %v1241_v22 = vpop.f32.mrf.mxu1 }
 0x14e   : >> { %v11386_v26 = vadd.f32 %v9167_v17, %v1247_v58  ;;  %v1242_v1 = vadd.f32 %v1241_v22, %v11305_v5  ;;  %v9170_v20 = vpop.f32.mrf.mxu0 }
 0x14f   : >> { %v9132_v63 = vpop.f32.mrf.mxu1 }
 0x150   : >> { %v11389_v13 = vadd.f32 %v1529_v25, %v1242_v1  ;;  %v1257_v21 = vadd.f32 %v9132_v63, %v11307_v50  ;;  %v1539_v15 = vpop.f32.mrf.mxu0 }
 0x151   : >> { %v1251_v55 = vpop.f32.mrf.mxu1 }
 0x152   : >> { %v11392_v56 = vadd.f32 %v9170_v20, %v1257_v21  ;;  %v1252_v10 = vadd.f32 %v1251_v55, %v11317_v41  ;;  %v9173_v23 = vpop.f32.mrf.mxu0 }
 0x153   : >> { %v9135_v27 = vpop.f32.mrf.mxu1 }
 0x154   : >> { %v11395_v28 = vadd.f32 %v1539_v15, %v1252_v10  ;;  %v1267_v36 = vadd.f32 %v9135_v27, %v11319_v31  ;;  %v1549_v5 = vpop.f32.mrf.mxu0 }
 0x155   : >> { %v1261_v43 = vpop.f32.mrf.mxu1 }
 0x156   : >> { %v11398_v57 = vadd.f32 %v9173_v23, %v1267_v36  ;;  %v1262_v59 = vadd.f32 %v1261_v43, %v11328_v32  ;;  %v9176_v50 = vpop.f32.mrf.mxu0 }
 0x157   : >> { %v9138_v24 = vpop.f32.mrf.mxu1 }
 0x158   : >> { %v11401_v39 = vadd.f32 %v1549_v5, %v1262_v59  ;;  %v1277_v38 = vadd.f32 %v9138_v24, %v11330_v45  ;;  %v1559_v41 = vpop.f32.mrf.mxu0 }
 0x159   : >> { %v1271_v29 = vpop.f32.mrf.mxu1 }
 0x15a   : >> { %v11404_v33 = vadd.f32 %v9176_v50, %v1277_v38  ;;  %v1272_v52 = vadd.f32 %v1271_v29, %v11341_v6  ;;  %v9179_v31 = vpop.f32.mrf.mxu0 }
 0x15b   : >> { %v9141_v48 = vpop.f32.mrf.mxu1 }
 0x15c   : >> { %v11407_v51 = vadd.f32 %v1559_v41, %v1272_v52  ;;  %v1287_v4 = vadd.f32 %v9141_v48, %v11345_v60  ;;  %v1569_v32 = vpop.f32.mrf.mxu0 }
 0x15d   : >> { %v1281_v12 = vpop.f32.mrf.mxu1 }
 0x15e   : >> { %v11410_v3 = vadd.f32 %v9179_v31, %v1287_v4  ;;  %v1282_v30 = vadd.f32 %v1281_v12, %v11353_v11  ;;  %v9182_v45 = vpop.f32.mrf.mxu0 }
 0x15f   : >> { %v9144_v19 = vpop.f32.mrf.mxu1 }
 0x160   : >> { %v11413_v47 = vadd.f32 %v1569_v32, %v1282_v30  ;;  %v1297_v46 = vadd.f32 %v9144_v19, %v11355_v14  ;;  %v1579_v6 = vpop.f32.mrf.mxu0 }
 0x161   : >> { %v1291_v44 = vpop.f32.mrf.mxu1 }
 0x162   : >> { %v11416_v7 = vadd.f32 %v9182_v45, %v1297_v46  ;;  %v1292_v9 = vadd.f32 %v1291_v44, %v11359_v16  ;;  %v9225_v60 = vpop.f32.mrf.mxu0 }
 0x163   : >> { %v9187_v49 = vpop.f32.mrf.mxu1 }
 0x164   : >> { %v11419_v0 = vadd.f32 %v1579_v6, %v1292_v9  ;;  %v1901_v17 = vadd.f32 %v9187_v49, %v11361_v53  ;;  %v2093_v11 = vpop.f32.mrf.mxu0 }
 0x165   : >> { %v1781_v58 = vpop.f32.mrf.mxu1 }
 0x166   : >> { %v11422_v22 = vadd.f32 %v9225_v60, %v1901_v17  ;;  %v1900_v25 = vadd.f32 %v1781_v58, %v11363_v54  ;;  %v9228_v14 = vpop.f32.mrf.mxu0 }
 0x167   : >> { %v9190_v1 = vpop.f32.mrf.mxu1 }
 0x168   : >> { %v11425_v63 = vadd.f32 %v2093_v11, %v1900_v25  ;;  %v1903_v20 = vadd.f32 %v9190_v1, %v11365_v35  ;;  %v2103_v16 = vpop.f32.mrf.mxu0 }
 0x169   : >> { %v1791_v21 = vpop.f32.mrf.mxu1 }
 0x16a   : >> { %v11428_v55 = vadd.f32 %v9228_v14, %v1903_v20  ;;  %v1902_v15 = vadd.f32 %v1791_v21, %v11367_v40  ;;  %v9231_v53 = vpop.f32.mrf.mxu0 }
 0x16b   : >> { %v9193_v10 = vpop.f32.mrf.mxu1 }
 0x16c   : >> { %v11431_v27 = vadd.f32 %v2103_v16, %v1902_v15  ;;  %v1905_v23 = vadd.f32 %v9193_v10, %v11369_v61  ;;  %v2113_v54 = vpop.f32.mrf.mxu0 }
 0x16d   : >> { %v1801_v36 = vpop.f32.mrf.mxu1 }
 0x16e   : >> { %v11434_v43 = vadd.f32 %v9231_v53, %v1905_v23  ;;  %v1904_v5 = vadd.f32 %v1801_v36, %v11371_v2  ;;  %v9234_v35 = vpop.f32.mrf.mxu0 }
 0x16f   : >> { %v9196_v59 = vpop.f32.mrf.mxu1 }
 0x170   : >> { %v11437_v24 = vadd.f32 %v2113_v54, %v1904_v5  ;;  %v1907_v50 = vadd.f32 %v9196_v59, %v11373_v37  ;;  %v2123_v40 = vpop.f32.mrf.mxu0 }
 0x171   : >> { %v1811_v38 = vpop.f32.mrf.mxu1 }
 0x172   : >> { %v11440_v29 = vadd.f32 %v9234_v35, %v1907_v50  ;;  %v1906_v41 = vadd.f32 %v1811_v38, %v11375_v8  ;;  %v9237_v61 = vpop.f32.mrf.mxu0 }
 0x173   : >> { %v9199_v52 = vpop.f32.mrf.mxu1 }
 0x174   : >> { %v11443_v48 = vadd.f32 %v2123_v40, %v1906_v41  ;;  %v1909_v31 = vadd.f32 %v9199_v52, %v11377_v34  ;;  %v2133_v2 = vpop.f32.mrf.mxu0 }
 0x175   : >> { %v1821_v4 = vpop.f32.mrf.mxu1 }
 0x176   : >> { %v11446_v12 = vadd.f32 %v9237_v61, %v1909_v31  ;;  %v1908_v32 = vadd.f32 %v1821_v4, %v11379_v42  ;;  %v9240_v37 = vpop.f32.mrf.mxu0 }
 0x177   : >> { %v9202_v30 = vpop.f32.mrf.mxu1 }
 0x178   : >> { %v11449_v19 = vadd.f32 %v2133_v2, %v1908_v32  ;;  %v1911_v45 = vadd.f32 %v9202_v30, %v11381_v62  ;;  %v2143_v8 = vpop.f32.mrf.mxu0 }
 0x179   : >> { %v1831_v46 = vpop.f32.mrf.mxu1 }
 0x17a   : >> { %v11452_v44 = vadd.f32 %v9240_v37, %v1911_v45  ;;  %v1910_v6 = vadd.f32 %v1831_v46, %v11383_v18  ;;  %v9243_v34 = vpop.f32.mrf.mxu0 }
 0x17b   : >> { %v9205_v9 = vpop.f32.mrf.mxu1 }
 0x17c   : >> { %v11455_v49 = vadd.f32 %v2143_v8, %v1910_v6  ;;  %v1913_v60 = vadd.f32 %v9205_v9, %v11386_v26  ;;  %v2153_v42 = vpop.f32.mrf.mxu0 }
 0x17d   : >> { %v1841_v17 = vpop.f32.mrf.mxu1 }
 0x17e   : >> { %v11458_v58 = vadd.f32 %v9243_v34, %v1913_v60  ;;  %v1912_v11 = vadd.f32 %v1841_v17, %v11389_v13  ;;  %v9246_v62 = vpop.f32.mrf.mxu0 }
 0x17f   : >> { %v9208_v25 = vpop.f32.mrf.mxu1 }
 0x180   : >> { %v11461_v1 = vadd.f32 %v2153_v42, %v1912_v11  ;;  %v1915_v14 = vadd.f32 %v9208_v25, %v11392_v56  ;;  %v2163_v18 = vpop.f32.mrf.mxu0 }
 0x181   : >> { %v1851_v20 = vpop.f32.mrf.mxu1 }
 0x182   : >> { %v11464_v21 = vadd.f32 %v9246_v62, %v1915_v14  ;;  %v1914_v16 = vadd.f32 %v1851_v20, %v11395_v28  ;;  %v9249_v26 = vpop.f32.mrf.mxu0 }
 0x183   : >> { %v9211_v15 = vpop.f32.mrf.mxu1 }
 0x184   : >> { %v11467_v10 = vadd.f32 %v2163_v18, %v1914_v16  ;;  %v1917_v53 = vadd.f32 %v9211_v15, %v11398_v57  ;;  %v2173_v13 = vpop.f32.mrf.mxu0 }
 0x185   : >> { %v1861_v23 = vpop.f32.mrf.mxu1 }
 0x186   : >> { %v11470_v36 = vadd.f32 %v9249_v26, %v1917_v53  ;;  %v1916_v54 = vadd.f32 %v1861_v23, %v11401_v39  ;;  %v9252_v56 = vpop.f32.mrf.mxu0 }
 0x187   : >> { %v9214_v5 = vpop.f32.mrf.mxu1 }
 0x188   : >> { %v11473_v59 = vadd.f32 %v2173_v13, %v1916_v54  ;;  %v1919_v35 = vadd.f32 %v9214_v5, %v11404_v33  ;;  %v2183_v28 = vpop.f32.mrf.mxu0 }
 0x189   : >> { %v1871_v50 = vpop.f32.mrf.mxu1 }
 0x18a   : >> { %13871 = vst [vmem:[#allocation30_spill] sm:$0xff] %v11473_v59  ;;  %v11476_v38 = vadd.f32 %v9252_v56, %v1919_v35  ;;  %v1918_v40 = vadd.f32 %v1871_v50, %v11407_v51  ;;  %v9255_v57 = vpop.f32.mrf.mxu0 }
 0x18b   : >> { %v9217_v41 = vpop.f32.mrf.mxu1 }
 0x18c   : >> { %13872 = vst [vmem:[#allocation31_spill] sm:$0xff] %v11476_v38  ;;  %v11479_v52 = vadd.f32 %v2183_v28, %v1918_v40  ;;  %v1921_v61 = vadd.f32 %v9217_v41, %v11410_v3  ;;  %v2193_v39 = vpop.f32.mrf.mxu0 }
 0x18d   : >> { %v1881_v31 = vpop.f32.mrf.mxu1 }
 0x18e   : >> { %13873 = vst [vmem:[#allocation32_spill] sm:$0xff] %v11479_v52  ;;  %v11482_v4 = vadd.f32 %v9255_v57, %v1921_v61  ;;  %v1920_v2 = vadd.f32 %v1881_v31, %v11413_v47  ;;  %v9258_v33 = vpop.f32.mrf.mxu0 }
 0x18f   : >> { %v9220_v32 = vpop.f32.mrf.mxu1 }
 0x190   : >> { %13874 = vst [vmem:[#allocation33_spill] sm:$0xff] %v11482_v4  ;;  %v11485_v30 = vadd.f32 %v2193_v39, %v1920_v2  ;;  %v1923_v37 = vadd.f32 %v9220_v32, %v11416_v7  ;;  %v2203_v51 = vpop.f32.mrf.mxu0 }
 0x191   : >> { %v1891_v45 = vpop.f32.mrf.mxu1 }
 0x192   : >> { %13875 = vst [vmem:[#allocation34_spill] sm:$0xff] %v11485_v30  ;;  %v11488_v46 = vadd.f32 %v9258_v33, %v1923_v37  ;;  %v1922_v8 = vadd.f32 %v1891_v45, %v11419_v0  ;;  %v9301_v3 = vpop.f32.mrf.mxu0 }
 0x193   : >> { %v9263_v6 = vpop.f32.mrf.mxu1 }
 0x194   : >> { %13876 = vst [vmem:[#allocation35_spill] sm:$0xff] %v11488_v46  ;;  %v11491_v9 = vadd.f32 %v2203_v51, %v1922_v8  ;;  %v2717_v60 = vpop.f32.mrf.mxu0 }
 0x195   : >> { %v2405_v34 = vpop.f32.mrf.mxu1 }
 0x196   : >> { %13877 = vst [vmem:[#allocation36_spill] sm:$0xff] %v11491_v9  ;;  %v9304_v47 = vpop.f32.mrf.mxu0  ;;  %v2525_v9 = vadd.f32 %v9263_v6, %v11422_v22  ;;  %v2524_v4 = vadd.f32 %v2405_v34, %v11425_v63 }
 0x197   : >> { %v9266_v17 = vpop.f32.mrf.mxu1 }
 0x198   : >> { %v2727_v11 = vpop.f32.mrf.mxu0  ;;  %v2836_v22 = vadd.f32 %v2717_v60, %v2524_v4 }
 0x199   : >> { %v2415_v42 = vpop.f32.mrf.mxu1 }
 0x19a   : >> { %v11493_v62 = vpop.f32.mrf.mxu0  ;;  %v2526_v59 = vadd.f32 %v2415_v42, %v11431_v27 }
 0x19b   : >> { %v9269_v25 = vpop.f32.mrf.mxu1  ;;  %13878 = vst [vmem:[#allocation37_spill] sm:$0xff] %v11493_v62 }
 0x19c   : >> { %v2737_v14 = vpop.f32.mrf.mxu0  ;;  %v2529_v6 = vadd.f32 %v9269_v25, %v11434_v43  ;;  %v2838_v60 = vadd.f32 %v2727_v11, %v2526_v59 }
 0x19d   : >> { %v2425_v7 = vpop.f32.mrf.mxu1 }
 0x19e   : >> { %v9310_v18 = vpop.f32.mrf.mxu0 }
 0x19f   : >> { %v9272_v20 = vpop.f32.mrf.mxu1 }
 0x1a0   : >> { %v2747_v15 = vpop.f32.mrf.mxu0  ;;  %v2531_v63 = vadd.f32 %v9272_v20, %v11440_v29 }
 0x1a1   : >> { %v2435_v16 = vpop.f32.mrf.mxu1 }
 0x1a2   : >> { %v9313_v26 = vpop.f32.mrf.mxu0  ;;  %v2530_v34 = vadd.f32 %v2435_v16, %v11443_v48  ;;  %v13884_v42 = vld [vmem:[#allocation37_spill] sm:$0xff]  ;;  %v11535_v20 = vadd.f32 %v9310_v18, %v2531_v63 }
 0x1a3   : >> { %v9275_v0 = vpop.f32.mrf.mxu1  ;;  %v2841_v25 = vadd.f32 %v13884_v42, %v2529_v6 }
 0x1a4   : >> { %v2757_v23 = vpop.f32.mrf.mxu0 }
 0x1a5   : >> { %v2445_v53 = vpop.f32.mrf.mxu1 }
 0x1a6   : >> { %v9316_v54 = vpop.f32.mrf.mxu0 }
 0x1a7   : >> { %v9278_v13 = vpop.f32.mrf.mxu1 }
 0x1a8   : >> { %v2767_v56 = vpop.f32.mrf.mxu0  ;;  %v2535_v27 = vadd.f32 %v9278_v13, %v11452_v44 }
 0x1a9   : >> { %v2455_v5 = vpop.f32.mrf.mxu1 }
 0x1aa   : >> { %v9319_v50 = vpop.f32.mrf.mxu0  ;;  %v2534_v43 = vadd.f32 %v2455_v5, %v11455_v49 }
 0x1ab   : >> { %v9281_v35 = vpop.f32.mrf.mxu1 }
 0x1ac   : >> { %v2777_v40 = vpop.f32.mrf.mxu0  ;;  %v11545_v11 = vadd.f32 %v2767_v56, %v2534_v43 }
 0x1ad   : >> { %v2465_v28 = vpop.f32.mrf.mxu1 }
 0x1ae   : >> { %v9322_v57 = vpop.f32.mrf.mxu0  ;;  %v2536_v29 = vadd.f32 %v2465_v28, %v11461_v1  ;;  %v11543_v1 = vadd.f32 %v9316_v54, %v2535_v27  ;;  %v13888_v28 = vld [vmem:[#allocation32_spill] sm:$0xff] }
 0x1af   : >> { %v9284_v41 = vpop.f32.mrf.mxu1 }
 0x1b0   : >> { %v2787_v31 = vpop.f32.mrf.mxu0  ;;  %v2539_v48 = vadd.f32 %v9284_v41, %v11464_v21 }
 0x1b1   : >> { %v2475_v61 = vpop.f32.mrf.mxu1 }
 0x1b2   : >> { %v9325_v2 = vpop.f32.mrf.mxu0  ;;  %v11553_v18 = vadd.f32 %v9322_v57, %v2539_v48 }
 0x1b3   : >> { %v9287_v39 = vpop.f32.mrf.mxu1 }
 0x1b4   : >> { %v11495_v33 = vpop.f32.mrf.mxu0 }
 0x1b5   : >> { %v2485_v32 = vpop.f32.mrf.mxu1  ;;  %13879 = vst [vmem:[#allocation38_spill] sm:$0xff] %v11495_v33  ;;  %v2527_v33 = vadd.f32 %v9266_v17, %v11428_v55  ;;  %v2532_v55 = vadd.f32 %v2445_v53, %v11449_v19  ;;  %v2541_v19 = vadd.f32 %v9287_v39, %v11470_v36  ;;  %v13885_v53 = vld [vmem:[#allocation30_spill] sm:$0xff] }
 0x1b6   : >> { %v11497_v45 = vpop.f32.mrf.mxu0 }
 0x1b7   : >> { %v9290_v37 = vpop.f32.mrf.mxu1  ;;  %13880 = vst [vmem:[#allocation39_spill] sm:$0xff] %v11497_v45  ;;  %v2837_v45 = vadd.f32 %v9301_v3, %v2525_v9  ;;  %v2839_v4 = vadd.f32 %v9304_v47, %v2527_v33  ;;  %v11537_v47 = vadd.f32 %v2747_v15, %v2530_v34 }
 0x1b8   : >> { %v11499_v8 = vpop.f32.mrf.mxu0 }
 0x1b9   : >> { %v2495_v51 = vpop.f32.mrf.mxu1  ;;  %13881 = vst [vmem:[#allocation40_spill] sm:$0xff] %v11499_v8 }
 0x1ba   : >> { %v11504_v30 = vpop.f32.mrf.mxu0 }
 0x1bb   : >> { %v11502_v46 = vpop.f32.mrf.mxu1  ;;  %13882 = vst [vmem:[#allocation41_spill] sm:$0xff] %v11504_v30  ;;  %v2528_v30 = vadd.f32 %v2425_v7, %v11437_v24  ;;  %v2537_v24 = vadd.f32 %v9281_v35, %v11458_v58  ;;  %v11541_v58 = vadd.f32 %v2757_v23, %v2532_v55  ;;  %v2540_v23 = vadd.f32 %v2485_v32, %v13885_v53  ;;  %v13887_v35 = vld [vmem:[#allocation31_spill] sm:$0xff] }
 0x1bc   : >> { %v11509_v38 = vpop.f32.mrf.mxu0  ;;  %v13893_v27 = vld [vmem:[#allocation38_spill] sm:$0xff] }
 0x1bd   : >> { %v11507_v52 = vpop.f32.mrf.mxu1  ;;  %13883 = vst [vmem:[#allocation42_spill] sm:$0xff] %v11509_v38  ;;  %v2533_v38 = vadd.f32 %v9275_v0, %v11446_v12  ;;  %v2538_v12 = vadd.f32 %v2475_v61, %v11467_v10  ;;  %v2840_v7 = vadd.f32 %v2737_v14, %v2528_v30  ;;  %v11547_v36 = vadd.f32 %v9319_v50, %v2537_v24 }
 0x1be   : >> { %v11515_v8 = vpop.f32.mrf.mxu0  ;;  %v11551_v14 = vadd.f32 %v2777_v40, %v2536_v29  ;;  %v2543_v50 = vadd.f32 %v9290_v37, %v13887_v35  ;;  %v2542_v40 = vadd.f32 %v2495_v51, %v13888_v28  ;;  %v13894_v48 = vld [vmem:[#allocation39_spill] sm:$0xff] }
 0x1bf   : >> { %v11513_v62 = vpop.f32.mrf.mxu1  ;;  %v11539_v49 = vadd.f32 %v9313_v26, %v2533_v38  ;;  %v11555_v15 = vadd.f32 %v2787_v31, %v2538_v12  ;;  %v11557_v38 = vadd.f32 %v9325_v2, %v2541_v19 }
 0x1c0   : >> { %v11526_v9 = vpop.f32.mrf.mxu0 }
 0x1c1   : >> { %v11524_v3 = vpop.f32.mrf.mxu1 }
 0x1c2   : >> { %v9377_v17 = vpop.f32.mrf.mxu0 }
 0x1c3   : >> { %v9339_v44 = vpop.f32.mrf.mxu1 }
 0x1c4   : >> { %v3149_v59 = vadd.f32 %v9339_v44, %v2837_v45  ;;  %v3341_v10 = vpop.f32.mrf.mxu0 }
 0x1c5   : >> { %v3029_v21 = vpop.f32.mrf.mxu1 }
 0x1c6   : >> { %v11549_v16 = vadd.f32 %v9377_v17, %v3149_v59  ;;  %v3148_v30 = vadd.f32 %v3029_v21, %v2836_v22  ;;  %v9380_v26 = vpop.f32.mrf.mxu0  ;;  %v13890_v22 = vld [vmem:[#allocation33_spill] sm:$0xff] }
 0x1c7   : >> { %v9342_v0 = vpop.f32.mrf.mxu1  ;;  %v2545_v6 = vadd.f32 %v11502_v46, %v13890_v22 }
 0x1c8   : >> { %v3533_v54 = vsel %vm13571_vm9, %v11549_v16, 0.0  ;;  %v3460_v5 = vadd.f32 %v3341_v10, %v3148_v30  ;;  %v3151_v56 = vadd.f32 %v9342_v0, %v2839_v4  ;;  %v3582_v41 = vrot.slane %v11549_v16, 7  ;;  %v3351_v31 = vpop.f32.mrf.mxu0  ;;  %v13899_v30 = vld [vmem:[#allocation40_spill] sm:$0xff] }
 0x1c9   : >> { %v3733_v57 = vmul.f32 %v3533_v54, %v11549_v16  ;;  %v3039_v61 = vpop.f32.mrf.mxu1  ;;  %v3679_v37 = vsel %vm13891_vm7, %v3533_v54, 0.0  ;;  %v11576_v4 = vadd.f32 %v13893_v27, %v2540_v23  ;;  %v11597_v0 = vadd.f32 %v13899_v30, %v2542_v40  ;;  %v13901_v23 = vld [vmem:[#allocation34_spill] sm:$0xff]  ;;  %vm13905_vm7 = vmmov %vm13684_vm0 }
 0x1ca   : >> { %v3532_v2 = vsel %vm13570_vm12, %v3460_v5, 0.0  ;;  %v3581_v32 = vrot.slane %v3460_v5, 7  ;;  %v11569_v33 = vadd.f32 %v9380_v26, %v3151_v56  ;;  %v3150_v45 = vadd.f32 %v3039_v61, %v2838_v60  ;;  %v9383_v55 = vpop.f32.mrf.mxu0  ;;  %v13900_v26 = vld [vmem:[#allocation41_spill] sm:$0xff]  ;;  %v13915_v30 = vld [vmem:[#allocation14_spill] sm:$0xff] }
 0x1cb   : >> { %v3678_v51 = vsel %vm13892_vm4, %v3532_v2, 0.0  ;;  %v3732_v63 = vmul.f32 %v3532_v2, %v3460_v5  ;;  %v9345_v34 = vpop.f32.mrf.mxu1  ;;  %v11581_v60 = vadd.f32 %v13894_v48, %v2543_v50  ;;  %v3757_v46 = vsel %vm13684_vm0, %v3733_v57, 0.0  ;;  %vm13906_vm4 = vmmov %vm13684_vm0 }
 0x1cc   : >> { %v3583_v43 = vsel %vm3580_vm3, %v3581_v32, %v3582_v41  ;;  %v3652_v24 = vsel %vm3580_vm3, 0.0, %v3581_v32  ;;  %v3680_v29 = vadd.f32 %v3679_v37, %v3678_v51  ;;  %v3535_v44 = vsel %vm13569_vm1, %v11569_v33, 0.0  ;;  %v3361_v42 = vpop.f32.mrf.mxu0 }
 0x1cd   : >> { %8096 = vst.msk [vmem:[%s11586_s13 + $0x18] sm:$0xff] %vm13895_vm10, %v3652_v24  ;;  %v3756_v12 = vsel %vm13897_vm6, %v3732_v63, 0.0  ;;  %v3049_v17 = vpop.f32.mrf.mxu1  ;;  %v3462_v21 = vadd.f32 %v3351_v31, %v3150_v45  ;;  %v3153_v10 = vadd.f32 %v9345_v34, %v2841_v25  ;;  %v11600_v53 = vadd.f32 %v13900_v26, %v2545_v6  ;;  %vm13907_vm10 = vmmov %vm13684_vm0 }
 0x1ce   : >> { %8097 = vst.msk [vmem:[%s11586_s13 + $0x20] sm:$0xff] %vm13896_vm8, %v3583_v43  ;;  %v3758_v59 = vadd.f32 %v3757_v46, %v3756_v12  ;;  %v3152_v16 = vadd.f32 %v3049_v17, %v2840_v7  ;;  %v11604_v13 = vadd.f32 %v11507_v52, %v13901_v23  ;;  %v3586_v54 = vrot.slane %v11569_v33, 7  ;;  %v9386_v56 = vpop.f32.mrf.mxu0  ;;  %vm13910_vm6 = vmmov %vm13684_vm0 }
 0x1cf   : >> { %v9348_v5 = vpop.f32.mrf.mxu1  ;;  %v3534_v50 = vsel %vm13568_vm14, %v3462_v21, 0.0  ;;  %v3584_v25 = vrot.slane %v3462_v21, 7  ;;  %v11609_v7 = vadd.f32 %v9383_v55, %v3153_v10  ;;  %v3735_v40 = vmul.f32 %v3535_v44, %v11569_v33  ;;  %v13908_v55 = vld [vmem:[#allocation11_spill] sm:$0xff] }
 0x1d0   : >> { %v3464_v28 = vadd.f32 %v3361_v42, %v3152_v16  ;;  %v3681_v57 = vsel %vm13903_vm11, %v3534_v50, 0.0  ;;  %v3734_v61 = vmul.f32 %v3534_v50, %v3462_v21  ;;  %v3155_v52 = vadd.f32 %v9348_v5, %v11535_v20  ;;  %v3371_v39 = vpop.f32.mrf.mxu0  ;;  %vm13911_vm11 = vmmov %vm13684_vm0 }
 0x1d1   : >> { %v3059_v31 = vpop.f32.mrf.mxu1  ;;  %v3585_v2 = vsel %vm3580_vm3, %v3582_v41, %v3584_v25  ;;  %v3587_v32 = vsel %vm3580_vm3, %v3584_v25, %v3586_v54  ;;  %v3682_v45 = vadd.f32 %v3681_v57, %v3680_v29  ;;  %v3537_v6 = vsel %vm13567_vm15, %v11609_v7, 0.0 }
 0x1d2   : >> { %v3683_v37 = vsel %vm13905_vm7, %v3535_v44, 0.0  ;;  %8098 = vst.msk [vmem:[%s11586_s13 + $0x28] sm:$0xff] %vm13906_vm4, %v3585_v2  ;;  %v3759_v33 = vsel %vm13907_vm10, %v3734_v61, 0.0  ;;  %v3590_v20 = vrot.slane %v11609_v7, 7  ;;  %v3737_v51 = vmul.f32 %v3537_v6, %v11609_v7  ;;  %v9389_v63 = vpop.f32.mrf.mxu0  ;;  %vm13912_vm7 = vmmov %vm13684_vm0 }
 0x1d3   : >> { %8099 = vst.msk [vmem:[%s11586_s13 + $0x30] sm:$0xff] %vm13684_vm0, %v3587_v32  ;;  %v9351_v41 = vpop.f32.mrf.mxu1  ;;  %v3760_v34 = vadd.f32 %v3759_v33, %v3758_v59  ;;  %vm13909_vm8 = vcmp.lt.s32.totalorder %v13908_v55, 16  ;;  %v3588_v43 = vrot.slane %v3464_v28, 7  ;;  %v3684_v24 = vadd.f32 %v3683_v37, %v3682_v45  ;;  %vm13913_vm4 = vmmov %vm13684_vm0  ;;  %v13919_v45 = vld [vmem:[#allocation13_spill] sm:$0xff] }
 0x1d4   : >> { %v3536_v27 = vsel %vm13909_vm8, %v3464_v28, 0.0  ;;  %v3761_v29 = vsel %vm13910_vm6, %v3735_v40, 0.0  ;;  %v11631_v12 = vadd.f32 %v9386_v56, %v3155_v52  ;;  %v3381_v44 = vpop.f32.mrf.mxu0  ;;  %v3687_v10 = vsel %vm13912_vm7, %v3537_v6, 0.0  ;;  %vm13914_vm10 = vmmov %vm13684_vm0 }
 0x1d5   : >> { %v3685_v48 = vsel %vm13911_vm11, %v3536_v27, 0.0  ;;  %v3736_v46 = vmul.f32 %v3536_v27, %v3464_v28  ;;  %v3069_v19 = vpop.f32.mrf.mxu1  ;;  %v3589_v17 = vsel %vm3580_vm3, %v3586_v54, %v3588_v43  ;;  %v3591_v42 = vsel %vm3580_vm3, %v3588_v43, %v3590_v20  ;;  %vm13917_vm6 = vmmov %vm13684_vm0  ;;  %v13922_v27 = vld [vmem:[#allocation16_spill] sm:$0xff] }
 0x1d6   : >> { %v3686_v59 = vadd.f32 %v3685_v48, %v3684_v24  ;;  %v3762_v21 = vadd.f32 %v3761_v29, %v3760_v34  ;;  %8100 = vst.msk [vmem:[%s11586_s13 + $0x38] sm:$0xff] %vm13913_vm4, %v3589_v17  ;;  %vm13916_vm8 = vcmp.lt.s32.totalorder %v13915_v30, 16  ;;  %v3154_v23 = vadd.f32 %v3059_v31, %v11537_v47  ;;  %v9392_v54 = vpop.f32.mrf.mxu0  ;;  %vm13918_vm11 = vmmov %vm13684_vm0 }
 0x1d7   : >> { %8101 = vst.msk [vmem:[%s11586_s13 + $0x40] sm:$0xff] %vm13684_vm0, %v3591_v42  ;;  %v3763_v16 = vsel %vm13914_vm10, %v3736_v46, 0.0  ;;  %v3539_v26 = vsel %vm13916_vm8, %v11631_v12, 0.0  ;;  %v9354_v5 = vpop.f32.mrf.mxu1  ;;  %v3765_v56 = vsel %vm13917_vm6, %v3737_v51, 0.0  ;;  %v3157_v28 = vadd.f32 %v9351_v41, %v11539_v49  ;;  %vm13921_vm4 = vmmov %vm13684_vm0 }
 0x1d8   : >> { %v3764_v35 = vadd.f32 %v3763_v16, %v3762_v21  ;;  %v3739_v50 = vmul.f32 %v3539_v26, %v11631_v12  ;;  %v3688_v25 = vadd.f32 %v3687_v10, %v3686_v59  ;;  %v3466_v7 = vadd.f32 %v3371_v39, %v3154_v23  ;;  %v3391_v52 = vpop.f32.mrf.mxu0  ;;  %vm13924_vm8 = vmmov %vm13684_vm0 }
 0x1d9   : >> { %v3156_v40 = vadd.f32 %v3069_v19, %v11541_v58  ;;  %v3159_v57 = vadd.f32 %v9354_v5, %v11543_v1  ;;  %v3079_v61 = vpop.f32.mrf.mxu1  ;;  %v3594_v2 = vrot.slane %v11631_v12, 7  ;;  %v3691_v47 = vsel %vm13918_vm11, %v3539_v26, 0.0  ;;  %vm13925_vm6 = vmmov %vm13684_vm0 }
 0x1da   : >> { %v3766_v31 = vadd.f32 %v3765_v56, %v3764_v35  ;;  %v3158_v32 = vadd.f32 %v3079_v61, %v11545_v11  ;;  %vm13920_vm7 = vcmp.lt.s32.totalorder %v13919_v45, 16  ;;  %v3592_v39 = vrot.slane %v3466_v7, 7  ;;  %v9395_v37 = vpop.f32.mrf.mxu0  ;;  %vm13926_vm11 = vmmov %vm13684_vm0 }
 0x1db   : >> { %v3538_v22 = vsel %vm13920_vm7, %v3466_v7, 0.0  ;;  %v3469_v49 = vadd.f32 %v9389_v63, %v3157_v28  ;;  %v3468_v6 = vadd.f32 %v3381_v44, %v3156_v40  ;;  %v9357_v58 = vpop.f32.mrf.mxu1  ;;  %v3769_v1 = vsel %vm13921_vm4, %v3739_v50, 0.0  ;;  %v13927_v44 = vld [vmem:[#allocation15_spill] sm:$0xff]  ;;  %vm13929_vm4 = vmmov %vm13684_vm0 }
 0x1dc   : >> { %v3689_v33 = vsel %vm13684_vm0, %v3538_v22, 0.0  ;;  %v3738_v51 = vmul.f32 %v3538_v22, %v3466_v7  ;;  %v11657_v41 = vadd.f32 %v9392_v54, %v3159_v57  ;;  %v3593_v34 = vsel %vm3580_vm3, %v3590_v20, %v3592_v39  ;;  %v3401_v63 = vpop.f32.mrf.mxu0 }
 0x1dd   : >> { %v3595_v11 = vsel %vm3580_vm3, %v3592_v39, %v3594_v2  ;;  %v3690_v55 = vadd.f32 %v3689_v33, %v3688_v25  ;;  %vm13923_vm10 = vcmp.lt.s32.totalorder %v13922_v27, 16  ;;  %v3089_v24 = vpop.f32.mrf.mxu1  ;;  %8102 = vst.msk [vmem:[%s11586_s13 + $0x48] sm:$0xff] %vm13924_vm8, %v3593_v34  ;;  %v3598_v48 = vrot.slane %v3469_v49, 7  ;;  %vm13932_vm8 = vmmov %vm13684_vm0 }
 0x1de   : >> { %v3541_v43 = vsel %vm13923_vm10, %v3469_v49, 0.0  ;;  %8103 = vst.msk [vmem:[%s11586_s13 + $0x50] sm:$0xff] %vm13925_vm6, %v3595_v11  ;;  %v3767_v29 = vsel %vm13926_vm11, %v3738_v51, 0.0  ;;  %v3470_v12 = vadd.f32 %v3391_v52, %v3158_v32  ;;  %vm13928_vm7 = vcmp.lt.s32.totalorder %v13927_v44, 16  ;;  %v9398_v21 = vpop.f32.mrf.mxu0  ;;  %vm13931_vm10 = vmmov %vm13684_vm0  ;;  %v13936_v52 = vld [vmem:[#allocation17_spill] sm:$0xff]  ;;  %v13943_v44 = vld [vmem:[#allocation20_spill] sm:$0xff] }
 0x1df   : >> { %v3741_v46 = vmul.f32 %v3541_v43, %v3469_v49  ;;  %v3768_v19 = vadd.f32 %v3767_v29, %v3766_v31  ;;  %v3540_v20 = vsel %vm13928_vm7, %v3468_v6, 0.0  ;;  %v3596_v17 = vrot.slane %v3468_v6, 7  ;;  %v9360_v59 = vpop.f32.mrf.mxu1  ;;  %vm13933_vm6 = vmmov %vm13684_vm0 }
 0x1e0   : >> { %v3692_v42 = vadd.f32 %v3691_v47, %v3690_v55  ;;  %v3695_v10 = vsel %vm13929_vm4, %v3541_v43, 0.0  ;;  %v3693_v16 = vsel %vm13684_vm0, %v3540_v20, 0.0  ;;  %v3740_v30 = vmul.f32 %v3540_v20, %v3468_v6  ;;  %v3411_v25 = vpop.f32.mrf.mxu0  ;;  %vm13934_vm11 = vmmov %vm13684_vm0 }
 0x1e1   : >> { %v3543_v23 = vsel %vm13566_vm5, %v11657_v41, 0.0  ;;  %v3597_v5 = vsel %vm3580_vm3, %v3594_v2, %v3596_v17  ;;  %v3599_v54 = vsel %vm3580_vm3, %v3596_v17, %v3598_v48  ;;  %v3770_v35 = vadd.f32 %v3769_v1, %v3768_v19  ;;  %v3099_v50 = vpop.f32.mrf.mxu1  ;;  %vm13935_vm7 = vmmov %vm13684_vm0 }
 0x1e2   : >> { %v3694_v56 = vadd.f32 %v3693_v16, %v3692_v42  ;;  %v3773_v7 = vsel %vm13931_vm10, %v3741_v46, 0.0  ;;  %8104 = vst.msk [vmem:[%s11586_s13 + $0x58] sm:$0xff] %vm13932_vm8, %v3597_v5  ;;  %v3771_v28 = vsel %vm13934_vm11, %v3740_v30, 0.0  ;;  %v3602_v40 = vrot.slane %v11657_v41, 7  ;;  %v9401_v6 = vpop.f32.mrf.mxu0  ;;  %vm13938_vm10 = vmmov %vm13684_vm0  ;;  %v13946_v16 = vld [vmem:[#allocation19_spill] sm:$0xff] }
 0x1e3   : >> { %8105 = vst.msk [vmem:[%s11586_s13 + $0x60] sm:$0xff] %vm13933_vm6, %v3599_v54  ;;  %v3699_v57 = vsel %vm13935_vm7, %v3543_v23, 0.0  ;;  %v3772_v61 = vadd.f32 %v3771_v28, %v3770_v35  ;;  %vm13937_vm4 = vcmp.lt.s32.totalorder %v13936_v52, 16  ;;  %v3600_v47 = vrot.slane %v3470_v12, 7  ;;  %v9363_v32 = vpop.f32.mrf.mxu1  ;;  %vm13939_vm8 = vmmov %vm13684_vm0  ;;  %v13953_v28 = vld [vmem:[#allocation21_spill] sm:$0xff] }
 0x1e4   : >> { %v3542_v2 = vsel %vm13937_vm4, %v3470_v12, 0.0  ;;  %v3696_v31 = vadd.f32 %v3695_v10, %v3694_v56  ;;  %v3743_v45 = vmul.f32 %v3543_v23, %v11657_v41  ;;  %v3161_v49 = vadd.f32 %v9357_v58, %v11547_v36  ;;  %vm13940_vm6 = vmmov %vm13684_vm0  ;;  %v13941_v36 = vld [vmem:[#allocation42_spill] sm:$0xff] }
 0x1e5   : >> { %v3697_v22 = vsel %vm13684_vm0, %v3542_v2, 0.0  ;;  %v3742_v39 = vmul.f32 %v3542_v2, %v3470_v12  ;;  %v3601_v1 = vsel %vm3580_vm3, %v3598_v48, %v3600_v47  ;;  %v3603_v33 = vsel %vm3580_vm3, %v3600_v47, %v3602_v40  ;;  %v3109_v11 = vpop.f32.mrf.mxu1  ;;  %vm13942_vm11 = vmmov %vm13684_vm0 }
 0x1e6   : >> { %v3698_v51 = vadd.f32 %v3697_v22, %v3696_v31  ;;  %v3774_v34 = vadd.f32 %v3773_v7, %v3772_v61  ;;  %8106 = vst.msk [vmem:[%s11586_s13 + $0x68] sm:$0xff] %vm13938_vm10, %v3601_v1  ;;  %v3473_v41 = vadd.f32 %v9395_v37, %v3161_v49  ;;  %v3160_v27 = vadd.f32 %v3089_v24, %v11551_v14  ;;  %v3421_v14 = vpop.f32.mrf.mxu0  ;;  %v13945_v24 = vld [vmem:[#allocation35_spill] sm:$0xff]  ;;  %vm13948_vm10 = vmmov %vm13684_vm0 }
 0x1e7   : >> { %8107 = vst.msk [vmem:[%s11586_s13 + $0x70] sm:$0xff] %vm13939_vm8, %v3603_v33  ;;  %v3775_v55 = vsel %vm13940_vm6, %v3742_v39, 0.0  ;;  %v3163_v43 = vadd.f32 %v9360_v59, %v11553_v18  ;;  %v11701_v58 = vadd.f32 %v13941_v36, %v11604_v13  ;;  %v3162_v46 = vadd.f32 %v3099_v50, %v11555_v15  ;;  %v9366_v12 = vpop.f32.mrf.mxu1  ;;  %vm13950_vm8 = vmmov %vm13684_vm0 }
 0x1e8   : >> { %v3776_v29 = vadd.f32 %v3775_v55, %v3774_v34  ;;  %v3700_v48 = vadd.f32 %v3699_v57, %v3698_v51  ;;  %v3777_v19 = vsel %vm13942_vm11, %v3743_v45, 0.0  ;;  %vm13944_vm7 = vcmp.lt.s32.totalorder %v13943_v44, 16  ;;  %vm13951_vm6 = vmmov %vm13684_vm0  ;;  %v13961_v44 = vld [vmem:[#allocation36_spill] sm:$0xff] }
 0x1e9   : >> { %v3545_v20 = vsel %vm13944_vm7, %v3473_v41, 0.0  ;;  %v3472_v17 = vadd.f32 %v3401_v63, %v3160_v27  ;;  %v11707_v37 = vadd.f32 %v9398_v21, %v3163_v43  ;;  %v2547_v18 = vadd.f32 %v11513_v62, %v13945_v24  ;;  %v3119_v23 = vpop.f32.mrf.mxu1  ;;  %vm13952_vm11 = vmmov %vm13684_vm0 }
 0x1ea   : >> { %v3778_v42 = vadd.f32 %v3777_v19, %v3776_v29  ;;  %v3474_v13 = vadd.f32 %v3411_v25, %v3162_v46  ;;  %v3165_v59 = vadd.f32 %v9363_v32, %v11557_v38  ;;  %v3606_v15 = vrot.slane %v3473_v41, 7  ;;  %v9404_v25 = vpop.f32.mrf.mxu0 }
 0x1eb   : >> { %v3745_v10 = vmul.f32 %v3545_v20, %v3473_v41  ;;  %vm13947_vm4 = vcmp.lt.s32.totalorder %v13946_v16, 16  ;;  %v3604_v26 = vrot.slane %v3472_v17, 7  ;;  %v3703_v63 = vsel %vm13684_vm0, %v3545_v20, 0.0  ;;  %v9369_v32 = vpop.f32.mrf.mxu1  ;;  %v13981_v41 = vld [vmem:[#allocation4_spill] sm:$0xff] }
 0x1ec   : >> { %v3544_v30 = vsel %vm13947_vm4, %v3472_v17, 0.0  ;;  %v3547_v54 = vsel %vm13565_vm13, %v11707_v37, 0.0  ;;  %v3610_v50 = vrot.slane %v11707_v37, 7  ;;  %vm13954_vm7 = vcmp.lt.s32.totalorder %v13953_v28, 16  ;;  %vm13955_vm4 = vmmov %vm13684_vm0  ;;  %v3431_v34 = vpop.f32.mrf.mxu0 }
 0x1ed   : >> { %v3701_v21 = vsel %vm13948_vm10, %v3544_v30, 0.0  ;;  %v3744_v5 = vmul.f32 %v3544_v30, %v3472_v17  ;;  %v3605_v56 = vsel %vm3580_vm3, %v3602_v40, %v3604_v26  ;;  %v3607_v38 = vsel %vm3580_vm3, %v3604_v26, %v3606_v15  ;;  %vm13956_vm10 = vmmov %vm13684_vm0  ;;  %v3129_v19 = vpop.f32.mrf.mxu1 }
 0x1ee   : >> { %v3702_v35 = vadd.f32 %v3701_v21, %v3700_v48  ;;  %8108 = vst.msk [vmem:[%s11586_s13 + $0x78] sm:$0xff] %vm13950_vm8, %v3605_v56  ;;  %v3546_v57 = vsel %vm13954_vm7, %v3474_v13, 0.0  ;;  %v3608_v61 = vrot.slane %v3474_v13, 7  ;;  %v11729_v52 = vadd.f32 %v9401_v6, %v3165_v59  ;;  %vm13957_vm8 = vmmov %vm13684_vm0  ;;  %v13969_v21 = vld [vmem:[#allocation25_spill] sm:$0xff] }
 0x1ef   : >> { %8109 = vst.msk [vmem:[%s11586_s13 + $0x80] sm:$0xff] %vm13951_vm6, %v3607_v38  ;;  %v3779_v7 = vsel %vm13952_vm11, %v3744_v5, 0.0  ;;  %v3781_v40 = vsel %vm13955_vm4, %v3745_v10, 0.0  ;;  %v3705_v31 = vsel %vm13684_vm0, %v3546_v57, 0.0  ;;  %v3747_v45 = vmul.f32 %v3547_v54, %v11707_v37  ;;  %vm13958_vm6 = vmmov %vm13684_vm0  ;;  %v9372_v30 = vpop.f32.mrf.mxu1 }
 0x1f0   : >> { %v3780_v2 = vadd.f32 %v3779_v7, %v3778_v42  ;;  %v3704_v47 = vadd.f32 %v3703_v63, %v3702_v35  ;;  %v3609_v22 = vsel %vm3580_vm3, %v3606_v15, %v3608_v61  ;;  %v3611_v39 = vsel %vm3580_vm3, %v3608_v61, %v3610_v50  ;;  %vm13959_vm11 = vmmov %vm13684_vm0  ;;  %v13967_v15 = vld [vmem:[#allocation26_spill] sm:$0xff] }
 0x1f1   : >> { %v3746_v49 = vmul.f32 %v3546_v57, %v3474_v13  ;;  %v2859_v1 = vadd.f32 %v11515_v8, %v2547_v18  ;;  %v3707_v33 = vsel %vm13956_vm10, %v3547_v54, 0.0  ;;  %8110 = vst.msk [vmem:[%s11586_s13 + $0x88] sm:$0xff] %vm13957_vm8, %v3609_v22  ;;  %v3549_v27 = vsel %vm13564_vm2, %v11729_v52, 0.0  ;;  %vm13962_vm7 = vmmov %vm13684_vm0  ;;  %v13979_v22 = vld [vmem:[#allocation5_spill] sm:$0xff] }
 0x1f2   : >> { %8111 = vst.msk [vmem:[%s11586_s13 + $0x90] sm:$0xff] %vm13958_vm6, %v3611_v39  ;;  %v3706_v6 = vadd.f32 %v3705_v31, %v3704_v47  ;;  %v3782_v51 = vadd.f32 %v3781_v40, %v3780_v2  ;;  %v3164_v43 = vadd.f32 %v3109_v11, %v11576_v4  ;;  %v3167_v36 = vadd.f32 %v9366_v12, %v11581_v60  ;;  %vm13963_vm4 = vmmov %vm13684_vm0  ;;  %v9407_v12 = vpop.f32.mrf.mxu0  ;;  %v3139_v40 = vpop.f32.mrf.mxu1 }
 0x1f3   : >> { %v3783_v55 = vsel %vm13959_vm11, %v3746_v49, 0.0  ;;  %v3166_v48 = vadd.f32 %v3119_v23, %v11597_v0  ;;  %v3169_v46 = vadd.f32 %v9369_v32, %v11600_v53  ;;  %v2546_v20 = vadd.f32 %v11524_v3, %v13961_v44  ;;  %v13964_v53 = vld [vmem:[#allocation23_spill] sm:$0xff]  ;;  %vm13966_vm10 = vmmov %vm13963_vm4 }
 0x1f4   : >> { %v3784_v8 = vadd.f32 %v3783_v55, %v3782_v51  ;;  %v3708_v29 = vadd.f32 %v3707_v33, %v3706_v6  ;;  %v3785_v17 = vsel %vm13962_vm7, %v3747_v45, 0.0  ;;  %v3476_v37 = vadd.f32 %v3421_v14, %v3164_v43  ;;  %vm13971_vm11 = vmmov %vm13963_vm4  ;;  %v3441_v38 = vpop.f32.mrf.mxu0 }
 0x1f5   : >> { %v3479_v24 = vadd.f32 %v9404_v25, %v3167_v36  ;;  %v3614_v18 = vrot.slane %v11729_v52, 7  ;;  %v3711_v4 = vsel %vm13963_vm4, %v3549_v27, 0.0  ;;  %v3478_v60 = vadd.f32 %v3431_v34, %v3166_v48  ;;  %vm13972_vm7 = vmmov %vm13963_vm4 }
 0x1f6   : >> { %v3786_v11 = vadd.f32 %v3785_v17, %v3784_v8  ;;  %v3749_v0 = vmul.f32 %v3549_v27, %v11729_v52  ;;  %vm13965_vm0 = vcmp.lt.s32.totalorder %v13964_v53, 16  ;;  %v3612_v13 = vrot.slane %v3476_v37, 7  ;;  %v13991_v53 = vld [vmem:[#allocation6_spill] sm:$0xff] }
 0x1f7   : >> { %v3548_v42 = vsel %vm13965_vm0, %v3476_v37, 0.0  ;;  %v3168_v3 = vadd.f32 %v3129_v19, %v11701_v58  ;;  %vm13968_vm8 = vcmp.lt.s32.totalorder %v13967_v15, 16  ;;  %v11762_v16 = vadd.f32 %v9407_v12, %v3169_v46  ;;  %vm13973_vm0 = vmmov %vm13963_vm4 }
 0x1f8   : >> { %v3709_v14 = vsel %vm13966_vm10, %v3548_v42, 0.0  ;;  %v3748_v59 = vmul.f32 %v3548_v42, %v3476_v37  ;;  %v3551_v10 = vsel %vm13968_vm8, %v3479_v24, 0.0  ;;  %v3613_v26 = vsel %vm3580_vm3, %v3610_v50, %v3612_v13  ;;  %vm13974_vm10 = vmmov %vm13973_vm0 }
 0x1f9   : >> { %v3615_v23 = vsel %vm3580_vm3, %v3612_v13, %v3614_v18  ;;  %v3710_v63 = vadd.f32 %v3709_v14, %v3708_v29  ;;  %vm13970_vm6 = vcmp.lt.s32.totalorder %v13969_v21, 16  ;;  %8112 = vst.msk [vmem:[%s11586_s13 + $0x98] sm:$0xff] %vm13971_vm11, %v3613_v26  ;;  %v3618_v62 = vrot.slane %v3479_v24, 7  ;;  %vm13975_vm8 = vmmov %vm13973_vm0 }
 0x1fa   : >> { %v3550_v5 = vsel %vm13970_vm6, %v3478_v60, 0.0  ;;  %8113 = vst.msk [vmem:[%s11586_s13 + $0xa0] sm:$0xff] %vm13972_vm7, %v3615_v23  ;;  %v3787_v58 = vsel %vm13963_vm4, %v3748_v59, 0.0  ;;  %v3616_v54 = vrot.slane %v3478_v60, 7  ;;  %v3171_v7 = vadd.f32 %v9372_v30, %v2859_v1  ;;  %vm13976_vm6 = vmmov %vm13973_vm0  ;;  %v9410_v1 = vpop.f32.mrf.mxu0 }
 0x1fb   : >> { %v3713_v56 = vsel %vm13973_vm0, %v3550_v5, 0.0  ;;  %v3788_v35 = vadd.f32 %v3787_v58, %v3786_v11  ;;  %v3712_v50 = vadd.f32 %v3711_v4, %v3710_v63  ;;  %v3750_v25 = vmul.f32 %v3550_v5, %v3478_v60  ;;  %vm13977_vm11 = vmmov %vm13973_vm0 }
 0x1fc   : >> { %v3789_v28 = vsel %vm13974_vm10, %v3749_v0, 0.0  ;;  %v3751_v57 = vmul.f32 %v3551_v10, %v3479_v24  ;;  %v3617_v61 = vsel %vm3580_vm3, %v3614_v18, %v3616_v54  ;;  %v3619_v52 = vsel %vm3580_vm3, %v3616_v54, %v3618_v62  ;;  %vm13978_vm7 = vmmov %vm13973_vm0  ;;  %v13988_v24 = vld [vmem:[#allocation27_spill] sm:$0xff] }
 0x1fd   : >> { %v2858_v2 = vadd.f32 %v11526_v9, %v2546_v20  ;;  %8114 = vst.msk [vmem:[%s11586_s13 + $0xa8] sm:$0xff] %vm13975_vm8, %v3617_v61  ;;  %v3714_v47 = vadd.f32 %v3713_v56, %v3712_v50  ;;  %v3790_v31 = vadd.f32 %v3789_v28, %v3788_v35  ;;  %v3791_v32 = vsel %vm13977_vm11, %v3750_v25, 0.0  ;;  %vm13983_vm8 = vmmov %vm13973_vm0  ;;  %v3451_v20 = vpop.f32.mrf.mxu0 }
 0x1fe   : >> { %8115 = vst.msk [vmem:[%s11586_s13 + $0xb0] sm:$0xff] %vm13976_vm6, %v3619_v52  ;;  %v3715_v45 = vsel %vm13978_vm7, %v3551_v10, 0.0  ;;  %vm13980_vm4 = vcmp.lt.s32.totalorder %v13979_v22, 16  ;;  %v3480_v49 = vadd.f32 %v3441_v38, %v3168_v3  ;;  %v3483_v9 = vadd.f32 %v9410_v1, %v3171_v7  ;;  %vm13984_vm6 = vmmov %vm13973_vm0  ;;  %v13998_v52 = vld [vmem:[#allocation29_spill] sm:$0xff] }
 0x1ff   : >> { %v3553_v39 = vsel %vm13980_vm4, %v11762_v16, 0.0  ;;  %v3792_v33 = vadd.f32 %v3791_v32, %v3790_v31  ;;  %v3716_v6 = vadd.f32 %v3715_v45, %v3714_v47  ;;  %v3170_v51 = vadd.f32 %v3139_v40, %v2858_v2  ;;  %vm13985_vm11 = vmmov %vm13973_vm0  ;;  %v13999_v47 = vld [vmem:[#allocation28_spill] sm:$0xff] }
 0x200   : >> { %v3793_v34 = vsel %vm13973_vm0, %v3751_v57, 0.0  ;;  %v3622_v55 = vrot.slane %v11762_v16, 7  ;;  %vm13982_vm10 = vcmp.lt.s32.totalorder %v13981_v41, 16  ;;  %v3620_v43 = vrot.slane %v3480_v49, 7  ;;  %vm13986_vm7 = vmmov %vm13973_vm0 }
 0x201   : >> { %v3552_v27 = vsel %vm13982_vm10, %v3480_v49, 0.0  ;;  %v3753_v36 = vmul.f32 %v3553_v39, %v11762_v16  ;;  %v3794_v48 = vadd.f32 %v3793_v34, %v3792_v33  ;;  %v3719_v17 = vsel %vm13984_vm6, %v3553_v39, 0.0  ;;  %vm13987_vm4 = vmmov %vm13973_vm0  ;;  %v3810_v33 = vld [vmem:[%s13495_s2] sm:$0x1] (%p718_p4) }
 0x202   : >> { %v3717_v8 = vsel %vm13983_vm8, %v3552_v27, 0.0  ;;  %v3752_v29 = vmul.f32 %v3552_v27, %v3480_v49  ;;  %v3621_v46 = vsel %vm3580_vm3, %v3618_v62, %v3620_v43  ;;  %v3623_v19 = vsel %vm3580_vm3, %v3620_v43, %v3622_v55  ;;  %vm13990_vm10 = vmmov %vm13987_vm4 }
 0x203   : >> { %v3718_v44 = vadd.f32 %v3717_v8, %v3716_v6  ;;  %8116 = vst.msk [vmem:[%s11586_s13 + $0xb8] sm:$0xff] %vm13985_vm11, %v3621_v46  ;;  %vm13989_vm0 = vcmp.lt.s32.totalorder %v13988_v24, 16  ;;  %v3482_v4 = vadd.f32 %v3451_v20, %v3170_v51  ;;  %v3797_v12 = vsel %vm13990_vm10, %v3753_v36, 0.0  ;;  %vm13993_vm6 = vmmov %vm13987_vm4  ;;  %v11833_v51 = vld [vmem:[%s13496_s3] sm:$0x1] (%p718_p4) }
 0x204   : >> { %8117 = vst.msk [vmem:[%s11586_s13 + $0xc0] sm:$0xff] %vm13986_vm7, %v3623_v19  ;;  %v3795_v37 = vsel %vm13987_vm4, %v3752_v29, 0.0  ;;  %v3555_v18 = vsel %vm13989_vm0, %v3483_v9, 0.0  ;;  %v3626_v0 = vrot.slane %v3483_v9, 7  ;;  %vm13992_vm8 = vcmp.lt.s32.totalorder %v13991_v53, 16  ;;  %vm13994_vm11 = vmmov %vm13987_vm4 }
 0x205   : >> { %v3796_v11 = vadd.f32 %v3795_v37, %v3794_v48  ;;  %v3720_v60 = vadd.f32 %v3719_v17, %v3718_v44  ;;  %v3554_v42 = vsel %vm13992_vm8, %v3482_v4, 0.0  ;;  %v3624_v13 = vrot.slane %v3482_v4, 7  ;;  %vm13995_vm7 = vmmov %vm13987_vm4 }
 0x206   : >> { %v3755_v3 = vmul.f32 %v3555_v18, %v3483_v9  ;;  %v3721_v14 = vsel %vm13993_vm6, %v3554_v42, 0.0  ;;  %v3754_v59 = vmul.f32 %v3554_v42, %v3482_v4  ;;  %v3723_v26 = vsel %vm13994_vm11, %v3555_v18, 0.0  ;;  %vm13996_vm0 = vmmov %vm13987_vm4 }
 0x207   : >> { %v3798_v15 = vadd.f32 %v3797_v12, %v3796_v11  ;;  %v3625_v10 = vsel %vm3580_vm3, %v3622_v55, %v3624_v13  ;;  %v3627_v16 = vsel %vm3580_vm3, %v3624_v13, %v3626_v0  ;;  %v3722_v30 = vadd.f32 %v3721_v14, %v3720_v60  ;;  %vm13997_vm10 = vmmov %vm13996_vm0 }
 0x208   : >> { %8118 = vst.msk [vmem:[%s11586_s13 + $0xc8] sm:$0xff] %vm13995_vm7, %v3625_v10  ;;  %v3799_v23 = vsel %vm13996_vm0, %v3754_v59, 0.0  ;;  %v3801_v5 = vsel %vm13997_vm10, %v3755_v3, 0.0 }
 0x209   : >> { %8119 = vst.msk [vmem:[%s11586_s13 + $0xd0] sm:$0xff] %vm13987_vm4, %v3627_v16  ;;  %v3724_v63 = vadd.f32 %v3723_v26, %v3722_v30  ;;  %v3800_v21 = vadd.f32 %v3799_v23, %v3798_v15 }
 0x20b   : >> { %v3725_v58 = vrot.slane %v3724_v63, 4  ;;  %v3802_v62 = vadd.f32 %v3801_v5, %v3800_v21 }
 0x20d   : >> { %v3726_v54 = vadd.f32 %v3725_v58, %v3724_v63  ;;  %v3803_v56 = vrot.slane %v3802_v62, 4 }
 0x20f   : >> { %v3727_v38 = vrot.slane %v3726_v54, 2  ;;  %v3804_v35 = vadd.f32 %v3803_v56, %v3802_v62 }
 0x211   : >> { %v3728_v50 = vadd.f32 %v3727_v38, %v3726_v54  ;;  %v3805_v25 = vrot.slane %v3804_v35, 2 }
 0x213   : >> { %v3729_v7 = vrot.slane %v3728_v50, 1  ;;  %v3806_v28 = vadd.f32 %v3805_v25, %v3804_v35 }
 0x215   : >> { %v3730_v57 = vadd.f32 %v3729_v7, %v3728_v50  ;;  %v3807_v61 = vrot.slane %v3806_v28, 1 }
 0x217   : >> { %v3731_v40 = vadd.f32 %v13998_v52, %v3730_v57   ;;  %v3808_v2 = vadd.f32 %v3807_v61, %v3806_v28  ;;  %720 = sbr.rel (!%p718_p4) target bundleno = 84 (0x54), region = 145 }
 0x219   : >> { %v3809_v31 = vadd.f32 %v13999_v47, %v3808_v2   ;;  %v14001_v49 = vmov %v3731_v40  ;;  %v3812_v32 = vmul.f32 (%p718_p4), 0.00390625, %v3731_v40 }
 0x21b   : >> { %v14000_v42 = vmov %v3809_v31  ;;  %v3813_v45 = vmul.f32 (%p718_p4), 0.00390625, %v3809_v31  ;;  %v3814_v22 = vmul.f32 (%p718_p4), %v3812_v32, %v3812_v32 }
 0x21d   : > { %v3815_v39 = vsub.f32 %v3813_v45, %v3814_v22 }
 0x21f   : > { %v3816_v49 = vmax.f32 %v3815_v39, 0.0 }
 0x221   : > { %v3817_v1 = vadd.f32 1e-05, %v3816_v49 }
 0x223   : > { %9880 = vrsqrt.f32 %v3817_v1 }
 0x230   : > { %v9881_v6 = vpop.eup %9880 }
 0x231   : > { %v11828_v9 = vmul.f32 %v9881_v6, %v3810_v33 }
 0x233   : > { %v11836_v34 = vmul.f32 %v11828_v9, %v3812_v32 }
 0x235   : > { %v3821_v55 = vsub.f32 %v11833_v51, %v11836_v34 }
 0x236 LB: >> { %v14002_v41 = vld [vmem:[#allocation3_spill] sm:$0xff]  ;;  %s7572_s18 = smul.u32 192, %s9938_s11  ;;  %vm3963_vm3 = vcmask 1045504   ;;  %vm4036_vm8 = vcmask 1041408   ;;  %v14005_v19 = vld [vmem:[#allocation8_spill] sm:$0xff]  ;;  %v14006_v44 = vld [vmem:[#allocation9_spill] sm:$0xff]  ;;  %s9938_s11 = sphi %s11840_s11, %s3827_s11  }
 0x237   : >> { %v11846_v27 = vsub.s32 0, %v14002_v41  ;;  %v14004_v8 = vld [vmem:[#allocation7_spill] sm:$0xff]  ;;  %vm4110_vm7 = vcmp.eq.s32.totalorder %v14005_v19, 0  ;;  %vm4206_vm4 = vcmp.eq.s32.totalorder %v14005_v19, 17  ;;  %vm4111_vm0 = vcmp.eq.s32.totalorder %v14006_v44, 0  ;;  %v14007_v12 = vld [vmem:[#allocation10_spill] sm:$0xff] }
 0x238   : >> { %vm4109_vm6 = vcmp.eq.s32.totalorder %v14004_v8, 0  ;;  %s11860_s19 = scalar_lea.vmem [#allocation2], %s7572_s18  ;;  %vm4205_vm11 = vcmp.eq.s32.totalorder %v14004_v8, 17  ;;  %vm4207_vm10 = vcmp.eq.s32.totalorder %v14006_v44, 17  ;;  %vm4112_vm2 = vcmp.eq.s32.totalorder %v14007_v12, 0  ;;  %v14008_v30 = vld [vmem:[#allocation11_spill] sm:$0xff] }
 0x239   : >> { %14003 = vst [vmem:[#allocation43_spill] sm:$0xff] %v11846_v27  ;;  %v11851_v43 = vrot.slane %v11828_v9, %v11846_v27  ;;  %v11857_v36 = vrot.slane %v3821_v55, %v11846_v27  ;;  %v8120_v29 = vld [vmem:[%s11860_s19 + $0x18] sm:$0xff]  ;;  %v8121_v48 = vld [vmem:[%s11860_s19 + $0x20] sm:$0xff]  ;;  %v8122_v46 = vld [vmem:[%s11860_s19 + $0x28] sm:$0xff]  ;;  %vm4208_vm13 = vcmp.eq.s32.totalorder %v14007_v12, 17  ;;  %vm4113_vm5 = vcmp.eq.s32.totalorder %v14008_v30, 0 }
 0x23a   : >> { %v8123_v24 = vld [vmem:[%s11860_s19 + $0x30] sm:$0xff]  ;;  %v8124_v18 = vld [vmem:[%s11860_s19 + $0x38] sm:$0xff]  ;;  %v8125_v4 = vld [vmem:[%s11860_s19 + $0x40] sm:$0xff]  ;;  %vm4209_vm15 = vcmp.eq.s32.totalorder %v14008_v30, 17  ;;  %s3827_s11 = sadd.s32 1, %s9938_s11  }
 0x23b   : >> { %v3861_v20 = vmul.f32 %v8120_v29, %v11851_v43  ;;  %v3862_v17 = vmul.f32 %v8121_v48, %v11851_v43  ;;  %v3863_v37 = vmul.f32 %v8122_v46, %v11851_v43  ;;  %v3864_v11 = vmul.f32 %v8123_v24, %v11851_v43  ;;  %v8126_v53 = vld [vmem:[%s11860_s19 + $0x48] sm:$0xff]  ;;  %v8127_v42 = vld [vmem:[%s11860_s19 + $0x50] sm:$0xff]  ;;  %v14009_v7 = vld [vmem:[#allocation12_spill] sm:$0xff]  ;;  %p3824_p5 = scmp.ge.s32.totalorder %s3827_s11, 2  }
 0x23c   : >> { %v3865_v60 = vmul.f32 %v8124_v18, %v11851_v43  ;;  %v3866_v0 = vmul.f32 %v8125_v4, %v11851_v43  ;;  %v3867_v59 = vmul.f32 %v8126_v53, %v11851_v43  ;;  %v3868_v26 = vmul.f32 %v8127_v42, %v11851_v43  ;;  %v14010_v40 = vld [vmem:[#allocation13_spill] sm:$0xff]  ;;  %v8128_v29 = vld [vmem:[%s11860_s19 + $0x58] sm:$0xff]  ;;  %v8130_v53 = vld [vmem:[%s11860_s19 + $0x68] sm:$0xff]  ;;  %s12179_s20 = smov (%p3824_p5), 0  }
 0x23d   : >> { %v3891_v13 = vadd.f32 %v11857_v36, %v3861_v20  ;;  %v3892_v3 = vadd.f32 %v11857_v36, %v3862_v17  ;;  %v3893_v14 = vadd.f32 %v11857_v36, %v3863_v37  ;;  %v3894_v15 = vadd.f32 %v11857_v36, %v3864_v11  ;;  %v14013_v20 = vld [vmem:[#allocation14_spill] sm:$0xff]  ;;  %v14016_v12 = vld [vmem:[#allocation15_spill] sm:$0xff] }
 0x23e   : >> { %v3895_v10 = vadd.f32 %v11857_v36, %v3865_v60  ;;  %v3896_v16 = vadd.f32 %v11857_v36, %v3866_v0  ;;  %v3897_v5 = vadd.f32 %v11857_v36, %v3867_v59  ;;  %v3898_v56 = vadd.f32 %v11857_v36, %v3868_v26  ;;  %v8129_v0 = vld [vmem:[%s11860_s19 + $0x60] sm:$0xff]  ;;  %v14017_v26 = vld [vmem:[#allocation16_spill] sm:$0xff] }
 0x23f   : >> { %v3915_v23 = vmax.f32 %v3891_v13, 0.0  ;;  %v3916_v63 = vmax.f32 %v3892_v3, 0.0  ;;  %v3917_v21 = vmax.f32 %v3893_v14, 0.0  ;;  %v3918_v58 = vmax.f32 %v3894_v15, 0.0 }
 0x240   : >> { %v3919_v62 = vmax.f32 %v3895_v10, 0.0  ;;  %v11894_v54 = vmax.f32 %v3896_v16, 0.0  ;;  %vm4114_vm14 = vcmp.eq.s32.totalorder %v14009_v7, 0  ;;  %vm4210_vm1 = vcmp.eq.s32.totalorder %v14009_v7, 17 }
 0x241   : >> { %v3964_v38 = vrot.slane %v3915_v23, 2  ;;  %v3965_v35 = vrot.slane %v3916_v63, 2  ;;  %v4037_v50 = vrot.slane %v3915_v23, 6  ;;  %v3967_v25 = vrot.slane %v3917_v21, 2 }
 0x242   : >> { %v4038_v28 = vrot.slane %v3916_v63, 6  ;;  %v3969_v57 = vrot.slane %v3918_v58, 2  ;;  %v4040_v61 = vrot.slane %v3917_v21, 6  ;;  %v3971_v52 = vrot.slane %v3919_v62, 2 }
 0x243   : >> { %vm4115_vm12 = vcmp.eq.s32.totalorder %v14010_v40, 0  ;;  %v3966_v2 = vsel %vm3963_vm3, %v3964_v38, %v3965_v35  ;;  %v4108_v47 = vsel %vm4036_vm8, 0.0, %v4037_v50  ;;  %v3968_v31 = vsel %vm3963_vm3, %v3965_v35, %v3967_v25  ;;  %v8131_v38 = vld [vmem:[%s11860_s19 + $0x70] sm:$0xff] }
 0x244   : >> { %v4042_v32 = vrot.slane %v3918_v58, 6  ;;  %v4181_v45 = vsel %vm4109_vm6, %v3966_v2, %v3915_v23  ;;  %v4039_v22 = vsel %vm4036_vm8, %v4037_v50, %v4038_v28  ;;  %v4182_v39 = vsel %vm4110_vm7, %v3968_v31, %v3916_v63  ;;  %v14022_v31 = vld [vmem:[#allocation17_spill] sm:$0xff] }
 0x245   : >> { %v3970_v49 = vsel %vm3963_vm3, %v3967_v25, %v3969_v57  ;;  %v4277_v1 = vsel %vm4205_vm11, %v4108_v47, %v4181_v45  ;;  %v4278_v33 = vsel %vm4206_vm4, %v4039_v22, %v4182_v39  ;;  %v4041_v6 = vsel %vm4036_vm8, %v4038_v28, %v4040_v61 }
 0x246   : >> { %v4183_v41 = vsel %vm4111_vm0, %v3970_v49, %v3917_v21  ;;  %vm14011_vm6 = vcmask 31744   ;;  %v3972_v8 = vsel %vm3963_vm3, %v3969_v57, %v3971_v52  ;;  %v4043_v46 = vsel %vm4036_vm8, %v4040_v61, %v4042_v32  ;;  %v8132_v57 = vld [vmem:[%s11860_s19 + $0x78] sm:$0xff] }
 0x247   : >> { %8144 = vst.msk [vmem:[%s11860_s19 + $0x18] sm:$0xff] %vm14011_vm6, %v4277_v1  ;;  %vm14012_vm9 = vmmov %vm14011_vm6  ;;  %v4279_v48 = vsel %vm4207_vm10, %v4041_v6, %v4183_v41  ;;  %v3973_v19 = vrot.slane %v11894_v54, 2  ;;  %vm4116_vm11 = vcmp.eq.s32.totalorder %v14013_v20, 0  ;;  %v4184_v17 = vsel %vm4112_vm2, %v3972_v8, %v3918_v58 }
 0x248   : >> { %8145 = vst.msk [vmem:[%s11860_s19 + $0x20] sm:$0xff] %vm14012_vm9, %v4278_v33  ;;  %vm14014_vm7 = vmmov %vm14011_vm6  ;;  %v4044_v37 = vrot.slane %v3919_v62, 6  ;;  %v3921_v24 = vmax.f32 %v3897_v5, 0.0  ;;  %v4046_v44 = vrot.slane %v11894_v54, 6  ;;  %vm4212_vm9 = vcmp.eq.s32.totalorder %v14013_v20, 17 }
 0x249   : >> { %8146 = vst.msk [vmem:[%s11860_s19 + $0x28] sm:$0xff] %vm14014_vm7, %v4279_v48  ;;  %v4280_v18 = vsel %vm4208_vm13, %v4043_v46, %v4184_v17  ;;  %v3974_v4 = vsel %vm3963_vm3, %v3971_v52, %v3973_v19  ;;  %v3922_v11 = vmax.f32 %v3898_v56, 0.0  ;;  %v3869_v60 = vmul.f32 %v8128_v29, %v11851_v43  ;;  %vm14015_vm4 = vmmov %vm14011_vm6  ;;  %v14024_v17 = vld [vmem:[#allocation18_spill] sm:$0xff] }
 0x24a   : >> { %8147 = vst.msk [vmem:[%s11860_s19 + $0x30] sm:$0xff] %vm14015_vm4, %v4280_v18  ;;  %v4045_v42 = vsel %vm4036_vm8, %v4042_v32, %v4044_v37  ;;  %v4185_v13 = vsel %vm4113_vm5, %v3974_v4, %v3919_v62  ;;  %v3975_v3 = vrot.slane %v3921_v24, 2  ;;  %v4047_v14 = vsel %vm4036_vm8, %v4044_v37, %v4046_v44  ;;  %vm14018_vm10 = vmmov %vm14015_vm4  ;;  %v8133_v37 = vld [vmem:[%s11860_s19 + $0x80] sm:$0xff] }
 0x24b   : >> { %vm4117_vm13 = vcmp.eq.s32.totalorder %v14016_v12, 0  ;;  %v4281_v59 = vsel %vm4209_vm15, %v4045_v42, %v4185_v13  ;;  %v3977_v15 = vrot.slane %v3922_v11, 2  ;;  %v4048_v10 = vrot.slane %v3921_v24, 6  ;;  %vm14019_vm5 = vmmov %vm14015_vm4 }
 0x24c   : >> { %v3899_v16 = vadd.f32 %v11857_v36, %v3869_v60  ;;  %vm4213_vm2 = vcmp.eq.s32.totalorder %v14016_v12, 17  ;;  %vm4118_vm0 = vcmp.eq.s32.totalorder %v14017_v26, 0  ;;  %8148 = vst.msk [vmem:[%s11860_s19 + $0x38] sm:$0xff] %vm14018_vm10, %v4281_v59  ;;  %v3976_v23 = vsel %vm3963_vm3, %v3973_v19, %v3975_v3  ;;  %vm14021_vm6 = vmmov %vm14015_vm4 }
 0x24d   : >> { %v4050_v63 = vrot.slane %v3922_v11, 6  ;;  %v3870_v21 = vmul.f32 %v8129_v0, %v11851_v43  ;;  %v3871_v30 = vmul.f32 %v8130_v53, %v11851_v43  ;;  %vm4214_vm15 = vcmp.eq.s32.totalorder %v14017_v26, 17  ;;  %vm14023_vm7 = vmmov %vm14015_vm4 }
 0x24e   : >> { %v4186_v5 = vsel %vm4114_vm14, %v3976_v23, %v11894_v54  ;;  %v3978_v58 = vsel %vm3963_vm3, %v3975_v3, %v3977_v15  ;;  %v4049_v62 = vsel %vm4036_vm8, %v4046_v44, %v4048_v10  ;;  %v3923_v56 = vmax.f32 %v3899_v16, 0.0  ;;  %v8134_v3 = vld [vmem:[%s11860_s19 + $0x88] sm:$0xff]  ;;  %v8135_v23 = vld [vmem:[%s11860_s19 + $0x90] sm:$0xff]  ;;  %vm14028_vm10 = vmmov %vm14019_vm5 }
 0x24f   : >> { %v4282_v35 = vsel %vm4210_vm1, %v4047_v14, %v4186_v5  ;;  %v4187_v50 = vsel %vm4115_vm12, %v3978_v58, %v3921_v24  ;;  %v4051_v25 = vsel %vm4036_vm8, %v4048_v10, %v4050_v63  ;;  %v3900_v28 = vadd.f32 %v11857_v36, %v3870_v21  ;;  %v8136_v58 = vld [vmem:[%s11860_s19 + $0x98] sm:$0xff] }
 0x250   : >> { %8149 = vst.msk [vmem:[%s11860_s19 + $0x40] sm:$0xff] %vm14019_vm5, %v4282_v35  ;;  %vm14020_vm14 = vcmp.eq.s32.totalorder %v14010_v40, 17  ;;  %v3979_v61 = vrot.slane %v3923_v56, 2  ;;  %v4052_v52 = vrot.slane %v3923_v56, 6  ;;  %v3901_v2 = vadd.f32 %v11857_v36, %v3871_v30  ;;  %v8137_v35 = vld [vmem:[%s11860_s19 + $0xa0] sm:$0xff] }
 0x251   : >> { %v4283_v54 = vsel %vm14020_vm14, %v4049_v62, %v4187_v50  ;;  %v3924_v7 = vmax.f32 %v3900_v28, 0.0  ;;  %v3872_v47 = vmul.f32 %v8131_v38, %v11851_v43  ;;  %vm4119_vm12 = vcmp.eq.s32.totalorder %v14022_v31, 0  ;;  %v14029_v38 = vld [vmem:[#allocation20_spill] sm:$0xff]  ;;  %vm14030_vm14 = vmmov %vm14021_vm6  ;;  %v14031_v28 = vld [vmem:[#allocation21_spill] sm:$0xff] }
 0x252   : >> { %8150 = vst.msk [vmem:[%s11860_s19 + $0x48] sm:$0xff] %vm14021_vm6, %v4283_v54  ;;  %vm4215_vm1 = vcmp.eq.s32.totalorder %v14022_v31, 17  ;;  %v3980_v32 = vsel %vm3963_vm3, %v3977_v15, %v3979_v61  ;;  %v4053_v45 = vsel %vm4036_vm8, %v4050_v63, %v4052_v52  ;;  %v3925_v40 = vmax.f32 %v3901_v2, 0.0  ;;  %v14027_v15 = vld [vmem:[#allocation19_spill] sm:$0xff] }
 0x253   : >> { %v3873_v22 = vmul.f32 %v8132_v57, %v11851_v43  ;;  %v4188_v39 = vsel %vm4116_vm11, %v3980_v32, %v3922_v11  ;;  %v3981_v49 = vrot.slane %v3924_v7, 2  ;;  %v4054_v1 = vrot.slane %v3924_v7, 6 }
 0x254   : >> { %v3902_v33 = vadd.f32 %v11857_v36, %v3872_v47  ;;  %v4284_v6 = vsel %vm4212_vm9, %v4051_v25, %v4188_v39  ;;  %v3983_v41 = vrot.slane %v3925_v40, 2  ;;  %v4056_v29 = vrot.slane %v3925_v40, 6  ;;  %vm14025_vm9 = vmmov %vm14015_vm4 }
 0x255   : >> { %v3903_v48 = vadd.f32 %v11857_v36, %v3873_v22  ;;  %8151 = vst.msk [vmem:[%s11860_s19 + $0x50] sm:$0xff] %vm14023_vm7, %v4284_v6  ;;  %v3982_v8 = vsel %vm3963_vm3, %v3979_v61, %v3981_v49  ;;  %v4055_v46 = vsel %vm4036_vm8, %v4052_v52, %v4054_v1  ;;  %vm4120_vm11 = vcmp.eq.s32.totalorder %v14024_v17, 0  ;;  %v14032_v52 = vld [vmem:[#allocation22_spill] sm:$0xff] }
 0x256   : >> { %v3926_v19 = vmax.f32 %v3902_v33, 0.0  ;;  %v4189_v20 = vsel %vm4117_vm13, %v3982_v8, %v3923_v56  ;;  %v3984_v24 = vsel %vm3963_vm3, %v3981_v49, %v3983_v41  ;;  %v4057_v44 = vsel %vm4036_vm8, %v4054_v1, %v4056_v29  ;;  %vm14026_vm13 = vmmov %vm14019_vm5 }
 0x257   : >> { %v3927_v18 = vmax.f32 %v3903_v48, 0.0  ;;  %v4285_v4 = vsel %vm4213_vm2, %v4053_v45, %v4189_v20  ;;  %v4190_v11 = vsel %vm4118_vm0, %v3984_v24, %v3924_v7  ;;  %vm4216_vm4 = vcmp.eq.s32.totalorder %v14024_v17, 17 }
 0x258   : >> { %v3985_v60 = vrot.slane %v3926_v19, 2  ;;  %v4058_v0 = vrot.slane %v3926_v19, 6  ;;  %8152 = vst.msk [vmem:[%s11860_s19 + $0x58] sm:$0xff] %vm14025_vm9, %v4285_v4  ;;  %v4286_v53 = vsel %vm4214_vm15, %v4055_v46, %v4190_v11  ;;  %v3874_v13 = vmul.f32 %v8133_v37, %v11851_v43 }
 0x259   : >> { %v3987_v42 = vrot.slane %v3927_v18, 2  ;;  %8153 = vst.msk [vmem:[%s11860_s19 + $0x60] sm:$0xff] %vm14026_vm13, %v4286_v53  ;;  %v4060_v59 = vrot.slane %v3927_v18, 6  ;;  %vm4121_vm2 = vcmp.eq.s32.totalorder %v14027_v15, 0  ;;  %vm4217_vm0 = vcmp.eq.s32.totalorder %v14027_v15, 17  ;;  %v8140_v15 = vld [vmem:[%s11860_s19 + $0xb8] sm:$0xff] }
 0x25a   : >> { %v3986_v14 = vsel %vm3963_vm3, %v3983_v41, %v3985_v60  ;;  %v4059_v12 = vsel %vm4036_vm8, %v4056_v29, %v4058_v0  ;;  %v3904_v26 = vadd.f32 %v11857_v36, %v3874_v13  ;;  %v3875_v5 = vmul.f32 %v8134_v3, %v11851_v43  ;;  %v8138_v29 = vld [vmem:[%s11860_s19 + $0xa8] sm:$0xff]  ;;  %v8139_v13 = vld [vmem:[%s11860_s19 + $0xb0] sm:$0xff] }
 0x25b   : >> { %v4191_v10 = vsel %vm4119_vm12, %v3986_v14, %v3925_v40  ;;  %v3988_v16 = vsel %vm3963_vm3, %v3985_v60, %v3987_v42  ;;  %v4061_v30 = vsel %vm4036_vm8, %v4058_v0, %v4060_v59  ;;  %vm4122_vm15 = vcmp.eq.s32.totalorder %v14029_v38, 0  ;;  %v14033_v40 = vld [vmem:[#allocation23_spill] sm:$0xff] }
 0x25c   : >> { %v4287_v63 = vsel %vm4215_vm1, %v4057_v44, %v4191_v10  ;;  %v4192_v21 = vsel %vm4120_vm11, %v3988_v16, %v3926_v19  ;;  %v3928_v56 = vmax.f32 %v3904_v26, 0.0  ;;  %vm4218_vm5 = vcmp.eq.s32.totalorder %v14029_v38, 17 }
 0x25d   : >> { %8154 = vst.msk [vmem:[%s11860_s19 + $0x68] sm:$0xff] %vm14028_vm10, %v4287_v63  ;;  %v4288_v62 = vsel %vm4216_vm4, %v4059_v12, %v4192_v21  ;;  %v3905_v50 = vadd.f32 %v11857_v36, %v3875_v5  ;;  %v3876_v25 = vmul.f32 %v8135_v23, %v11851_v43  ;;  %vm4123_vm6 = vcmp.eq.s32.totalorder %v14031_v28, 0  ;;  %vm14034_vm4 = vmmov %vm14028_vm10  ;;  %v14038_v63 = vld [vmem:[#allocation24_spill] sm:$0xff] }
 0x25e   : >> { %8155 = vst.msk [vmem:[%s11860_s19 + $0x70] sm:$0xff] %vm14030_vm14, %v4288_v62  ;;  %vm4219_vm12 = vcmp.eq.s32.totalorder %v14031_v28, 17  ;;  %v3989_v57 = vrot.slane %v3928_v56, 2  ;;  %v4062_v54 = vrot.slane %v3928_v56, 6  ;;  %v3877_v61 = vmul.f32 %v8136_v58, %v11851_v43  ;;  %vm14035_vm13 = vmmov %vm14034_vm4 }
 0x25f   : >> { %vm4124_vm1 = vcmp.eq.s32.totalorder %v14032_v52, 0  ;;  %v3929_v2 = vmax.f32 %v3905_v50, 0.0  ;;  %v3906_v7 = vadd.f32 %v11857_v36, %v3876_v25  ;;  %vm4220_vm7 = vcmp.eq.s32.totalorder %v14032_v52, 17  ;;  %v14040_v50 = vld [vmem:[#allocation25_spill] sm:$0xff]  ;;  %v8142_v25 = vld [vmem:[%s11860_s19 + $0xc8] sm:$0xff] }
 0x260   : >> { %v3878_v47 = vmul.f32 %v8137_v35, %v11851_v43  ;;  %v3990_v31 = vsel %vm3963_vm3, %v3987_v42, %v3989_v57  ;;  %v4063_v32 = vsel %vm4036_vm8, %v4060_v59, %v4062_v54  ;;  %v3907_v45 = vadd.f32 %v11857_v36, %v3877_v61 }
 0x261   : >> { %vm4125_vm11 = vcmp.eq.s32.totalorder %v14033_v40, 0  ;;  %v4193_v22 = vsel %vm4121_vm2, %v3990_v31, %v3927_v18  ;;  %v3991_v39 = vrot.slane %v3929_v2, 2  ;;  %v3930_v49 = vmax.f32 %v3906_v7, 0.0  ;;  %vm14036_vm2 = vmmov %vm14034_vm4 }
 0x262   : >> { %v4064_v1 = vrot.slane %v3929_v2, 6  ;;  %v4289_v33 = vsel %vm4217_vm0, %v4061_v30, %v4193_v22  ;;  %v3931_v6 = vmax.f32 %v3907_v45, 0.0  ;;  %v3908_v41 = vadd.f32 %v11857_v36, %v3878_v47  ;;  %vm14037_vm0 = vmmov %vm14036_vm2  ;;  %v8141_v30 = vld [vmem:[%s11860_s19 + $0xc0] sm:$0xff]  ;;  %v8143_v45 = vld [vmem:[%s11860_s19 + $0xd0] sm:$0xff] }
 0x263   : >> { %vm4221_vm9 = vcmp.eq.s32.totalorder %v14033_v40, 17  ;;  %8156 = vst.msk [vmem:[%s11860_s19 + $0x78] sm:$0xff] %vm14034_vm4, %v4289_v33  ;;  %v3992_v48 = vsel %vm3963_vm3, %v3989_v57, %v3991_v39  ;;  %v3993_v8 = vrot.slane %v3930_v49, 2  ;;  %v4066_v19 = vrot.slane %v3930_v49, 6  ;;  %v14041_v57 = vld [vmem:[#allocation26_spill] sm:$0xff]  ;;  %vm14044_vm4 = vmmov %vm14037_vm0 }
 0x264   : >> { %v4065_v46 = vsel %vm4036_vm8, %v4062_v54, %v4064_v1  ;;  %v4194_v17 = vsel %vm4122_vm15, %v3992_v48, %v3928_v56  ;;  %v3995_v37 = vrot.slane %v3931_v6, 2  ;;  %v3932_v20 = vmax.f32 %v3908_v41, 0.0 }
 0x265   : >> { %v4068_v24 = vrot.slane %v3931_v6, 6  ;;  %v4290_v44 = vsel %vm4218_vm5, %v4063_v32, %v4194_v17  ;;  %v3994_v18 = vsel %vm3963_vm3, %v3991_v39, %v3993_v8  ;;  %v4067_v4 = vsel %vm4036_vm8, %v4064_v1, %v4066_v19  ;;  %vm14039_vm5 = vmmov %vm14037_vm0 }
 0x266   : >> { %v3879_v11 = vmul.f32 %v8138_v29, %v11851_v43  ;;  %8157 = vst.msk [vmem:[%s11860_s19 + $0x80] sm:$0xff] %vm14035_vm13, %v4290_v44  ;;  %v4195_v60 = vsel %vm4123_vm6, %v3994_v18, %v3929_v2  ;;  %v3996_v0 = vsel %vm3963_vm3, %v3993_v8, %v3995_v37  ;;  %v3997_v53 = vrot.slane %v3932_v20, 2  ;;  %v14042_v2 = vld [vmem:[#allocation4_spill] sm:$0xff]  ;;  %vm14045_vm13 = vmmov %vm14037_vm0 }
 0x267   : >> { %v4069_v42 = vsel %vm4036_vm8, %v4066_v19, %v4068_v24  ;;  %v4291_v3 = vsel %vm4219_vm12, %v4065_v46, %v4195_v60  ;;  %v4196_v14 = vsel %vm4124_vm1, %v3996_v0, %v3930_v49  ;;  %v4070_v59 = vrot.slane %v3932_v20, 6 }
 0x268   : >> { %v3909_v12 = vadd.f32 %v11857_v36, %v3879_v11  ;;  %8158 = vst.msk [vmem:[%s11860_s19 + $0x88] sm:$0xff] %vm14036_vm2, %v4291_v3  ;;  %v4292_v10 = vsel %vm4220_vm7, %v4067_v4, %v4196_v14  ;;  %v3998_v16 = vsel %vm3963_vm3, %v3995_v37, %v3997_v53  ;;  %vm4126_vm10 = vcmp.eq.s32.totalorder %v14038_v63, 0 }
 0x269   : >> { %8159 = vst.msk [vmem:[%s11860_s19 + $0x90] sm:$0xff] %vm14037_vm0, %v4292_v10  ;;  %v4197_v26 = vsel %vm4125_vm11, %v3998_v16, %v3931_v6  ;;  %v3880_v21 = vmul.f32 %v8139_v13, %v11851_v43  ;;  %v4071_v58 = vsel %vm4036_vm8, %v4068_v24, %v4070_v59  ;;  %vm4222_vm15 = vcmp.eq.s32.totalorder %v14038_v63, 17  ;;  %vm14043_vm11 = vmmov %vm14037_vm0  ;;  %v14049_v16 = vld [vmem:[#allocation27_spill] sm:$0xff] }
 0x26a   : >> { %v3933_v23 = vmax.f32 %v3909_v12, 0.0  ;;  %v4293_v5 = vsel %vm4221_vm9, %v4069_v42, %v4197_v26  ;;  %v3881_v62 = vmul.f32 %v8140_v15, %v11851_v43  ;;  %vm4127_vm14 = vcmp.eq.s32.totalorder %v14040_v50, 0  ;;  %v14048_v12 = vld [vmem:[#allocation6_spill] sm:$0xff] }
 0x26b   : >> { %8160 = vst.msk [vmem:[%s11860_s19 + $0x98] sm:$0xff] %vm14039_vm5, %v4293_v5  ;;  %v3910_v38 = vadd.f32 %v11857_v36, %v3880_v21  ;;  %vm4223_vm6 = vcmp.eq.s32.totalorder %v14040_v50, 17  ;;  %vm4128_vm12 = vcmp.eq.s32.totalorder %v14041_v57, 0  ;;  %v3882_v54 = vmul.f32 %v8141_v30, %v11851_v43 }
 0x26c   : >> { %v3999_v56 = vrot.slane %v3933_v23, 2  ;;  %v4072_v35 = vrot.slane %v3933_v23, 6  ;;  %v3911_v28 = vadd.f32 %v11857_v36, %v3881_v62  ;;  %vm4224_vm1 = vcmp.eq.s32.totalorder %v14041_v57, 17 }
 0x26d   : >> { %v3934_v52 = vmax.f32 %v3910_v38, 0.0  ;;  %vm4129_vm7 = vcmp.eq.s32.totalorder %v14042_v2, 0  ;;  %v3912_v31 = vadd.f32 %v11857_v36, %v3882_v54  ;;  %v3883_v32 = vmul.f32 %v8142_v25, %v11851_v43 }
 0x26e   : >> { %v4000_v61 = vsel %vm3963_vm3, %v3997_v53, %v3999_v56  ;;  %v3935_v47 = vmax.f32 %v3911_v28, 0.0  ;;  %v4073_v39 = vsel %vm4036_vm8, %v4070_v59, %v4072_v35  ;;  %vm4225_vm9 = vcmp.eq.s32.totalorder %v14042_v2, 17  ;;  %v14046_v53 = vld [vmem:[#allocation5_spill] sm:$0xff] }
 0x26f   : >> { %v4198_v7 = vsel %vm4126_vm10, %v4000_v61, %v3932_v20  ;;  %v4001_v22 = vrot.slane %v3934_v52, 2  ;;  %v4074_v49 = vrot.slane %v3934_v52, 6  ;;  %v3936_v33 = vmax.f32 %v3912_v31, 0.0  ;;  %vm14047_vm10 = vmmov %vm14044_vm4 }
 0x270   : >> { %v4294_v40 = vsel %vm4222_vm15, %v4071_v58, %v4198_v7  ;;  %v4003_v1 = vrot.slane %v3935_v47, 2  ;;  %v4076_v6 = vrot.slane %v3935_v47, 6  ;;  %v3913_v41 = vadd.f32 %v11857_v36, %v3883_v32 }
 0x271   : >> { %8161 = vst.msk [vmem:[%s11860_s19 + $0xa0] sm:$0xff] %vm14043_vm11, %v4294_v40  ;;  %v4002_v29 = vsel %vm3963_vm3, %v3999_v56, %v4001_v22  ;;  %v4075_v48 = vsel %vm4036_vm8, %v4072_v35, %v4074_v49  ;;  %v3884_v8 = vmul.f32 %v8143_v45, %v11851_v43  ;;  %v4005_v17 = vrot.slane %v3936_v33, 2 }
 0x272   : >> { %v4199_v46 = vsel %vm4127_vm14, %v4002_v29, %v3933_v23  ;;  %v4004_v19 = vsel %vm3963_vm3, %v4001_v22, %v4003_v1  ;;  %v4077_v37 = vsel %vm4036_vm8, %v4074_v49, %v4076_v6  ;;  %v3937_v44 = vmax.f32 %v3913_v41, 0.0 }
 0x273   : >> { %v4295_v20 = vsel %vm4223_vm6, %v4073_v39, %v4199_v46  ;;  %v4200_v24 = vsel %vm4128_vm12, %v4004_v19, %v3934_v52  ;;  %v4078_v18 = vrot.slane %v3936_v33, 6  ;;  %v4006_v4 = vsel %vm3963_vm3, %v4003_v1, %v4005_v17  ;;  %vm14050_vm12 = vmmov %vm14044_vm4 }
 0x274   : >> { %8162 = vst.msk [vmem:[%s11860_s19 + $0xa8] sm:$0xff] %vm14044_vm4, %v4295_v20  ;;  %v4296_v43 = vsel %vm4224_vm1, %v4075_v48, %v4200_v24  ;;  %v3914_v11 = vadd.f32 %v11857_v36, %v3884_v8  ;;  %v4201_v60 = vsel %vm4129_vm7, %v4006_v4, %v3935_v47  ;;  %v4007_v0 = vrot.slane %v3937_v44, 2  ;;  %vm14051_vm1 = vmmov %vm14044_vm4 }
 0x275   : >> { %8163 = vst.msk [vmem:[%s11860_s19 + $0xb0] sm:$0xff] %vm14045_vm13, %v4296_v43  ;;  %vm4130_vm2 = vcmp.eq.s32.totalorder %v14046_v53, 0  ;;  %v4080_v42 = vrot.slane %v3937_v44, 6  ;;  %v4297_v13 = vsel %vm4225_vm9, %v4077_v37, %v4201_v60  ;;  %v4079_v3 = vsel %vm4036_vm8, %v4076_v6, %v4078_v18  ;;  %vm14052_vm7 = vmmov %vm14051_vm1 }
 0x276   : >> { %vm4226_vm0 = vcmp.eq.s32.totalorder %v14046_v53, 17  ;;  %v3938_v14 = vmax.f32 %v3914_v11, 0.0  ;;  %8164 = vst.msk [vmem:[%s11860_s19 + $0xb8] sm:$0xff] %vm14047_vm10, %v4297_v13  ;;  %v4008_v36 = vsel %vm3963_vm3, %v4005_v17, %v4007_v0  ;;  %vm4131_vm15 = vcmp.eq.s32.totalorder %v14048_v12, 0 }
 0x277   : >> { %v4202_v59 = vsel %vm4130_vm2, %v4008_v36, %v3936_v33  ;;  %vm4132_vm5 = vcmp.eq.s32.totalorder %v14049_v16, 0  ;;  %v4081_v23 = vsel %vm4036_vm8, %v4078_v18, %v4080_v42  ;;  %vm4227_vm14 = vcmp.eq.s32.totalorder %v14048_v12, 17 }
 0x278   : >> { %v4009_v15 = vrot.slane %v3938_v14, 2  ;;  %v4082_v10 = vrot.slane %v3938_v14, 6  ;;  %v4298_v26 = vsel %vm4226_vm0, %v4079_v3, %v4202_v59  ;;  %vm4228_vm6 = vcmp.eq.s32.totalorder %v14049_v16, 17 }
 0x279   : >> { %8165 = vst.msk [vmem:[%s11860_s19 + $0xc0] sm:$0xff] %vm14050_vm12, %v4298_v26  ;;  %v12175_v54 = vmov (%p3824_p5), 0.0   ;;  %v12177_v9 = vmov (%p3824_p5), 0.0  }
 0x27a   : >> { %v4010_v63 = vsel %vm3963_vm3, %v4007_v0, %v4009_v15  ;;  %v4035_v21 = vsel %vm3963_vm3, %v4009_v15, 0.0  ;;  %v4083_v30 = vsel %vm4036_vm8, %v4080_v42, %v4082_v10  ;;  %3826 = sbr.rel (!%p3824_p5) target bundleno = 566 (0x236), region = 156  ;;  %vm14053_vm3 = vcmask (%p3824_p5), 31744  }
 0x27b   : >> { %v4203_v5 = vsel %vm4131_vm15, %v4010_v63, %v3937_v44  ;;  %v4204_v58 = vsel %vm4132_vm5, %v4035_v21, %v3938_v14  ;;  %vm14054_vm8 = vmmov (%p3824_p5), %vm14053_vm3 }
 0x27c   : >> { %v4299_v62 = vsel %vm4227_vm14, %v4081_v23, %v4203_v5  ;;  %v4300_v56 = vsel %vm4228_vm6, %v4083_v30, %v4204_v58  ;;  %vm14055_vm11 = vmmov (%p3824_p5), %vm14053_vm3 }
 0x27d   : >> { %8166 = vst.msk [vmem:[%s11860_s19 + $0xc8] sm:$0xff] %vm14051_vm1, %v4299_v62  ;;  %vm14056_vm9 = vmmov (%p3824_p5), %vm14053_vm3 }
 0x27e   : >> { %8167 = vst.msk [vmem:[%s11860_s19 + $0xd0] sm:$0xff] %vm14052_vm7, %v4300_v56  ;;  %vm14057_vm4 = vmmov (%p3824_p5), %vm14053_vm3 }
 0x27f   : > { %vm14058_vm13 = vmmov %vm14053_vm3 }
 0x285   : > { %v4325_v38 = vld [vmem:[#allocation2 + $0x30] sm:$0xff]  ;;  %v4326_v35 = vld [vmem:[#allocation2 + $0x38] sm:$0xff]  ;;  %v4327_v50 = vld [vmem:[#allocation2 + $0x40] sm:$0xff] }
 0x286   : > { %4328 = vst.msk [vmem:[#allocation2] sm:$0xff] %vm14053_vm3, %v4325_v38  ;;  %v4331_v25 = vld [vmem:[#allocation2 + $0x168] sm:$0xff]  ;;  %v4332_v28 = vld [vmem:[#allocation2 + $0x170] sm:$0xff]  ;;  %v4333_v57 = vld [vmem:[#allocation2 + $0x178] sm:$0xff] }
 0x287   : > { %4329 = vst.msk [vmem:[#allocation2 + $0x8] sm:$0xff] %vm14054_vm8, %v4326_v35 }
 0x288   : > { %4330 = vst.msk [vmem:[#allocation2 + $0x10] sm:$0xff] %vm14055_vm11, %v4327_v50 }
 0x289   : > { %4334 = vst.msk [vmem:[#allocation2 + $0x198] sm:$0xff] %vm14056_vm9, %v4331_v25 }
 0x28a   : > { %4335 = vst.msk [vmem:[#allocation2 + $0x1a0] sm:$0xff] %vm14057_vm4, %v4332_v28 }
 0x28b   : > { %4336 = vst.msk [vmem:[#allocation2 + $0x1a8] sm:$0xff] %vm14058_vm13, %v4333_v57 }
 0x28c LB: >> { %14059 = vst [vmem:[#allocation44_spill] sm:$0xff] %v9942_v54  ;;  %14060 = vst [vmem:[#allocation45_spill] sm:$0xff] %v9946_v9  ;;  %v8192_v51 = vld [vmem:[%s13497_s4 + $0x4] sm:$0xf]  ;;  %v4371_v34 = vld [vmem:[%s13497_s4] sm:$0xf]  ;;  %s9950_s20 = sphi %s12179_s20, %s4342_s20   ;;  %v9946_v9 = vphi %v12177_v9, %v14434_v9   ;;  %v9942_v54 = vphi %v12175_v54, %v14433_v54  }
 0x28d   : >> { %v8267_v55 = vld [vmem:[%s13497_s4 + $0x8] sm:$0xf]  ;;  %vm14061_vm2 = vcmask 1043456   ;;  %s4345_s28 = smul.u32 192, %s9950_s20  ;;  %vm14067_vm6 = vcmask 31744   ;;  %s4342_s20 = sadd.s32 1, %s9950_s20  }
 0x28e   : >> { %9755 = vmatprep.subr.msk.mxu1 %vm14061_vm2, %v8192_v51  ;;  %vm14062_vm0 = vmmov %vm14061_vm2  ;;  %v8317_v32 = vld [vmem:[%s13497_s4 + $0xc] sm:$0xf]  ;;  %v8367_v45 = vld [vmem:[%s13497_s4 + $0x10] sm:$0xf]  ;;  %p4339_p6 = scmp.ge.s32.totalorder %s4342_s20, 2  }
 0x28f   : >> { %9411 = vmatprep.subr.msk.mxu0 %vm14062_vm0, %v8192_v51  ;;  %vm14063_vm10 = vmmov %vm14062_vm0  ;;  %s12208_s29 = scalar_lea.vmem [#allocation2], %s4345_s28  ;;  %v12344_v53 = vld [vmem:[%s13497_s4 + $0x14] sm:$0xf]  ;;  %v12349_v42 = vld [vmem:[%s13497_s4 + $0x18] sm:$0xf]  ;;  %s13089_s22 = scalar_lea.vmem %s10021_s10, %s4345_s28 }
 0x290   : >> { %9756 = vmatpush3.msk.msra.mxu1 %vm14063_vm10, %v8192_v51  ;;  %vm14064_vm15 = vmmov %vm14062_vm0  ;;  %s13321_s20 = smov (%p4339_p6), 0  }
 0x291   : >> { %9412 = vmatpush3.msk.msra.mxu0 %vm14064_vm15, %v8192_v51  ;;  %vm14065_vm5 = vmmov %vm14062_vm0 }
 0x292   : >> { %9449 = vmatprep.subr.msk.mxu1 %vm14065_vm5, %v4371_v34  ;;  %vm14066_vm14 = vmmov %vm14062_vm0  ;;  %v8168_v61 = vld [vmem:[%s12208_s29 + $0x1] sm:$0xff]  ;;  %v8169_v2 = vld [vmem:[%s12208_s29 + $0x9] sm:$0xff] }
 0x293   : >> { %9487 = vmatprep.subr.msk.mxu0 %vm14066_vm14, %v8267_v55  ;;  %v12212_v52 = vld [vmem:[%s12208_s29 + $0x61] sm:$0xff]  ;;  %9413 = vmatprep.mubr.msk.f32.mxu0 %vm14067_vm6, %v8168_v61  ;;  %vm14068_vm12 = vmmov %vm14067_vm6  ;;  %v12219_v7 = vld [vmem:[%s12208_s29 + $0x69] sm:$0xff] }
 0x294   : >> { %9431 = vmatprep.mubr.msk.f32.mxu1 %vm14068_vm12, %v12212_v52  ;;  %v8170_v47 = vld [vmem:[%s12208_s29 + $0x11] sm:$0xff]  ;;  %vm14069_vm1 = vmmov %vm14067_vm6  ;;  %v12237_v40 = vld [vmem:[%s12208_s29 + $0x19] sm:$0xff] }
 0x295   : >> { %v12223_v31 = vld [vmem:[%s12208_s29 + $0x71] sm:$0xff]  ;;  %9414 = vmatmul.mubr.msk.f32.vlgmr.msra.gmra.mxu0 %vm14069_vm1, %v8169_v2  ;;  %vm14070_vm7 = vmmov %vm14069_vm1  ;;  %v12240_v22 = vld [vmem:[%s12208_s29 + $0x79] sm:$0xff] }
 0x296   : >> { %9432 = vmatmul.mubr.msk.f32.vlgmr.msra.gmra.mxu1 %vm14070_vm7, %v12219_v7  ;;  %vm14071_vm3 = vmmov %vm14062_vm0  ;;  %v12246_v39 = vld [vmem:[%s12208_s29 + $0x21] sm:$0xff]  ;;  %v12262_v1 = vld [vmem:[%s12208_s29 + $0x29] sm:$0xff] }
 0x297   : >> { %9450 = vmatpush3.msk.msra.mxu1 %vm14071_vm3, %v4371_v34  ;;  %vm14072_vm8 = vmmov %vm14062_vm0  ;;  %v12249_v49 = vld [vmem:[%s12208_s29 + $0x81] sm:$0xff]  ;;  %v12265_v33 = vld [vmem:[%s12208_s29 + $0x89] sm:$0xff] }
 0x298   : >> { %9488 = vmatpush3.msk.msra.mxu0 %vm14072_vm8, %v8267_v55  ;;  %vm14073_vm11 = vmmov %vm14069_vm1  ;;  %v12268_v6 = vld [vmem:[%s12208_s29 + $0x31] sm:$0xff]  ;;  %v12282_v29 = vld [vmem:[%s12208_s29 + $0x39] sm:$0xff] }
 0x299   : >> { %9416 = vmatprep.mubr.msk.f32.mxu0 %vm14073_vm11, %v8170_v47  ;;  %vm14074_vm9 = vmmov %vm14069_vm1  ;;  %v12271_v41 = vld [vmem:[%s12208_s29 + $0x91] sm:$0xff]  ;;  %v12285_v48 = vld [vmem:[%s12208_s29 + $0x99] sm:$0xff] }
 0x29a   : >> { %9434 = vmatprep.mubr.msk.f32.mxu1 %vm14074_vm9, %v12223_v31  ;;  %vm14075_vm4 = vmmov %vm14062_vm0  ;;  %v12288_v8 = vld [vmem:[%s12208_s29 + $0x41] sm:$0xff]  ;;  %v12302_v19 = vld [vmem:[%s12208_s29 + $0x49] sm:$0xff] }
 0x29b   : >> { %9525 = vmatprep.subr.msk.mxu1 %vm14075_vm4, %v8317_v32  ;;  %vm14076_vm13 = vmmov %vm14062_vm0  ;;  %v12291_v46 = vld [vmem:[%s12208_s29 + $0xa1] sm:$0xff]  ;;  %v12305_v17 = vld [vmem:[%s12208_s29 + $0xa9] sm:$0xff] }
 0x29c   : >> { %9563 = vmatprep.subr.msk.mxu0 %vm14076_vm13, %v8367_v45  ;;  %vm14077_vm2 = vmmov %vm14069_vm1  ;;  %v12308_v37 = vld [vmem:[%s12208_s29 + $0x51] sm:$0xff]  ;;  %v12322_v24 = vld [vmem:[%s12208_s29 + $0x59] sm:$0xff] }
 0x29d   : >> { %9417 = vmatmul.mubr.msk.f32.gmra.mxu0 %vm14077_vm2, %v12237_v40  ;;  %vm14078_vm0 = vmmov %vm14069_vm1  ;;  %v12311_v20 = vld [vmem:[%s12208_s29 + $0xb1] sm:$0xff]  ;;  %v12325_v44 = vld [vmem:[%s12208_s29 + $0xb9] sm:$0xff] }
 0x29e   : >> { %9435 = vmatmul.mubr.msk.f32.gmra.mxu1 %vm14078_vm0, %v12240_v22  ;;  %vm14079_vm10 = vmmov %vm14078_vm0  ;;  %v4347_v18 = vld [vmem:[%s12208_s29] sm:$0xff]  ;;  %v4348_v4 = vld [vmem:[%s12208_s29 + $0x8] sm:$0xff] }
 0x29f   : >> { %9419 = vmatprep.mubr.msk.f32.mxu0 %vm14079_vm10, %v12246_v39  ;;  %vm14080_vm15 = vmmov %vm14078_vm0  ;;  %v8243_v43 = vld [vmem:[%s12208_s29 + $0x2] sm:$0xff]  ;;  %v8244_v11 = vld [vmem:[%s12208_s29 + $0xa] sm:$0xff] }
 0x2a0   : >> { %9437 = vmatprep.mubr.msk.f32.mxu1 %vm14080_vm15, %v12249_v49  ;;  %vm14081_vm5 = vmmov %vm14078_vm0  ;;  %v4349_v60 = vld [vmem:[%s12208_s29 + $0x10] sm:$0xff]  ;;  %v12354_v13 = vld [vmem:[%s12208_s29 + $0x18] sm:$0xff] }
 0x2a1   : >> { %9420 = vmatmul.mubr.msk.f32.gmra.mxu0 %vm14081_vm5, %v12262_v1  ;;  %vm14082_vm14 = vmmov %vm14078_vm0  ;;  %v8245_v0 = vld [vmem:[%s12208_s29 + $0x12] sm:$0xff]  ;;  %v12357_v3 = vld [vmem:[%s12208_s29 + $0x1a] sm:$0xff] }
 0x2a2   : >> { %9438 = vmatmul.mubr.msk.f32.gmra.mxu1 %vm14082_vm14, %v12265_v33  ;;  %vm14083_vm6 = vmmov %vm14078_vm0  ;;  %v12362_v14 = vld [vmem:[%s12208_s29 + $0x20] sm:$0xff]  ;;  %v12380_v12 = vld [vmem:[%s12208_s29 + $0x28] sm:$0xff] }
 0x2a3   : >> { %9422 = vmatprep.mubr.msk.f32.mxu0 %vm14083_vm6, %v12268_v6  ;;  %vm14084_vm12 = vmmov %vm14078_vm0  ;;  %vm14098_vm6 = vcmask 1043456   ;;  %v12365_v36 = vld [vmem:[%s12208_s29 + $0x22] sm:$0xff]  ;;  %v12383_v59 = vld [vmem:[%s12208_s29 + $0x2a] sm:$0xff] }
 0x2a4   : >> { %9440 = vmatprep.mubr.msk.f32.mxu1 %vm14084_vm12, %v12271_v41  ;;  %vm14085_vm1 = vmmov %vm14078_vm0  ;;  %v12386_v15 = vld [vmem:[%s12208_s29 + $0x30] sm:$0xff]  ;;  %v12400_v16 = vld [vmem:[%s12208_s29 + $0x38] sm:$0xff] }
 0x2a5   : >> { %9423 = vmatmul.mubr.msk.f32.gmra.mxu0 %vm14085_vm1, %v12282_v29  ;;  %vm14086_vm7 = vmmov %vm14078_vm0  ;;  %v12389_v10 = vld [vmem:[%s12208_s29 + $0x32] sm:$0xff]  ;;  %v12403_v26 = vld [vmem:[%s12208_s29 + $0x3a] sm:$0xff] }
 0x2a6   : >> { %9441 = vmatmul.mubr.msk.f32.gmra.mxu1 %vm14086_vm7, %v12285_v48  ;;  %vm14087_vm3 = vmmov %vm14078_vm0  ;;  %v12406_v23 = vld [vmem:[%s12208_s29 + $0x40] sm:$0xff]  ;;  %v12420_v21 = vld [vmem:[%s12208_s29 + $0x48] sm:$0xff] }
 0x2a7   : >> { %9425 = vmatprep.mubr.msk.f32.mxu0 %vm14087_vm3, %v12288_v8  ;;  %vm14088_vm8 = vmmov %vm14078_vm0  ;;  %v12409_v63 = vld [vmem:[%s12208_s29 + $0x42] sm:$0xff]  ;;  %v12423_v30 = vld [vmem:[%s12208_s29 + $0x4a] sm:$0xff] }
 0x2a8   : >> { %9443 = vmatprep.mubr.msk.f32.mxu1 %vm14088_vm8, %v12291_v46  ;;  %vm14089_vm11 = vmmov %vm14078_vm0  ;;  %v12426_v5 = vld [vmem:[%s12208_s29 + $0x50] sm:$0xff]  ;;  %v12440_v62 = vld [vmem:[%s12208_s29 + $0x58] sm:$0xff] }
 0x2a9   : >> { %9426 = vmatmul.mubr.msk.f32.gmra.mxu0 %vm14089_vm11, %v12302_v19  ;;  %vm14090_vm9 = vmmov %vm14078_vm0  ;;  %v12429_v58 = vld [vmem:[%s12208_s29 + $0x52] sm:$0xff]  ;;  %v12443_v56 = vld [vmem:[%s12208_s29 + $0x5a] sm:$0xff] }
 0x2aa   : >> { %9444 = vmatmul.mubr.msk.f32.gmra.mxu1 %vm14090_vm9, %v12305_v17  ;;  %vm14091_vm4 = vmmov %vm14078_vm0  ;;  %v12446_v38 = vld [vmem:[%s12208_s29 + $0x60] sm:$0xff]  ;;  %v12460_v50 = vld [vmem:[%s12208_s29 + $0x68] sm:$0xff] }
 0x2ab   : >> { %9428 = vmatprep.mubr.msk.f32.mxu0 %vm14091_vm4, %v12308_v37  ;;  %vm14092_vm13 = vmmov %vm14078_vm0  ;;  %v12449_v35 = vld [vmem:[%s12208_s29 + $0x62] sm:$0xff]  ;;  %v12463_v25 = vld [vmem:[%s12208_s29 + $0x6a] sm:$0xff] }
 0x2ac   : >> { %9446 = vmatprep.mubr.msk.f32.mxu1 %vm14092_vm13, %v12311_v20  ;;  %vm14093_vm2 = vmmov %vm14078_vm0  ;;  %v12466_v28 = vld [vmem:[%s12208_s29 + $0x70] sm:$0xff]  ;;  %v12480_v51 = vld [vmem:[%s12208_s29 + $0x78] sm:$0xff] }
 0x2ad   : >> { %9429 = vmatmul.mubr.msk.f32.gmra.mxu0 %vm14093_vm2, %v12322_v24  ;;  %vm14094_vm10 = vmmov %vm14078_vm0  ;;  %v12469_v57 = vld [vmem:[%s12208_s29 + $0x72] sm:$0xff]  ;;  %v12483_v34 = vld [vmem:[%s12208_s29 + $0x7a] sm:$0xff] }
 0x2ae   : >> { %9447 = vmatmul.mubr.msk.f32.gmra.mxu1 %vm14078_vm0, %v12325_v44  ;;  %vm14095_vm15 = vmmov %vm14078_vm0  ;;  %v12486_v55 = vld [vmem:[%s12208_s29 + $0x80] sm:$0xff]  ;;  %v12500_v2 = vld [vmem:[%s12208_s29 + $0x88] sm:$0xff] }
 0x2af   : >> { %9451 = vmatprep.mubr.msk.f32.mxu1 %vm14094_vm10, %v4347_v18  ;;  %9489 = vmatprep.mubr.msk.f32.mxu0 %vm14095_vm15, %v8243_v43  ;;  %vm14096_vm5 = vmmov %vm14078_vm0  ;;  %v12489_v61 = vld [vmem:[%s12208_s29 + $0x82] sm:$0xff]  ;;  %v12503_v47 = vld [vmem:[%s12208_s29 + $0x8a] sm:$0xff] }
 0x2b0   : >> { %vm14097_vm14 = vmmov %vm14078_vm0  ;;  %v12520_v18 = vld [vmem:[%s12208_s29 + $0x98] sm:$0xff]  ;;  %v12546_v27 = vld [vmem:[%s12208_s29 + $0xb0] sm:$0xff] }
 0x2b1   : >> { %9490 = vmatmul.mubr.msk.f32.vlgmr.msra.gmra.mxu0 %vm14097_vm14, %v8244_v11  ;;  %vm14099_vm12 = vmmov %vm14098_vm6  ;;  %v12523_v43 = vld [vmem:[%s12208_s29 + $0x9a] sm:$0xff]  ;;  %v12529_v11 = vld [vmem:[%s12208_s29 + $0xa2] sm:$0xff] }
 0x2b2   : >> { %9452 = vmatmul.mubr.msk.f32.vlgmr.msra.gmra.mxu1 %vm14096_vm5, %v4348_v4  ;;  %9564 = vmatpush3.msk.msra.mxu0 %vm14099_vm12, %v8367_v45  ;;  %vm14100_vm1 = vmmov %vm14078_vm0  ;;  %v12509_v45 = vld [vmem:[%s12208_s29 + $0x92] sm:$0xff]  ;;  %v12526_v4 = vld [vmem:[%s12208_s29 + $0xa0] sm:$0xff]  ;;  %14134 = vst [vmem:[#allocation46_spill] sm:$0xff] %v12529_v11 }
 0x2b3   : >> { %9526 = vmatpush3.msk.msra.mxu1 %vm14098_vm6, %v8317_v32  ;;  %9454 = vmatprep.mubr.msk.f32.mxu1 %vm14100_vm1, %v4349_v60  ;;  %vm14101_vm7 = vmmov %vm14078_vm0  ;;  %v12506_v32 = vld [vmem:[%s12208_s29 + $0x90] sm:$0xff]  ;;  %v12540_v60 = vld [vmem:[%s12208_s29 + $0xa8] sm:$0xff] }
 0x2b4   : >> { %9492 = vmatprep.mubr.msk.f32.mxu0 %vm14101_vm7, %v8245_v0  ;;  %vm14102_vm3 = vmmov %vm14098_vm6  ;;  %v12543_v0 = vld [vmem:[%s12208_s29 + $0xaa] sm:$0xff]  ;;  %v12549_v54 = vld [vmem:[%s12208_s29 + $0xb2] sm:$0xff] }
 0x2b5   : >> { %9601 = vmatprep.subr.msk.mxu1 %vm14102_vm3, %v12344_v53  ;;  %vm14103_vm8 = vmmov %vm14102_vm3  ;;  %14139 = vst [vmem:[#allocation47_spill] sm:$0xff] %v12549_v54  ;;  %v12560_v9 = vld [vmem:[%s12208_s29 + $0xb8] sm:$0xff] }
 0x2b6   : >> { %9639 = vmatprep.subr.msk.mxu0 %vm14103_vm8, %v12349_v42  ;;  %vm14104_vm11 = vmmov %vm14078_vm0 }
 0x2b7   : >> { %9455 = vmatmul.mubr.msk.f32.gmra.mxu1 %vm14104_vm11, %v12354_v13  ;;  %vm14105_vm9 = vmmov %vm14078_vm0 }
 0x2b8   : >> { %9493 = vmatmul.mubr.msk.f32.gmra.mxu0 %vm14105_vm9, %v12357_v3  ;;  %vm14106_vm4 = vmmov %vm14078_vm0 }
 0x2b9   : >> { %9457 = vmatprep.mubr.msk.f32.mxu1 %vm14106_vm4, %v12362_v14  ;;  %vm14107_vm13 = vmmov %vm14078_vm0 }
 0x2ba   : >> { %9495 = vmatprep.mubr.msk.f32.mxu0 %vm14107_vm13, %v12365_v36  ;;  %vm14108_vm2 = vmmov %vm14078_vm0 }
 0x2bb   : >> { %9458 = vmatmul.mubr.msk.f32.gmra.mxu1 %vm14108_vm2, %v12380_v12  ;;  %vm14109_vm10 = vmmov %vm14078_vm0 }
 0x2bc   : >> { %9496 = vmatmul.mubr.msk.f32.gmra.mxu0 %vm14078_vm0, %v12383_v59  ;;  %9460 = vmatprep.mubr.msk.f32.mxu1 %vm14109_vm10, %v12386_v15  ;;  %vm14110_vm15 = vmmov %vm14078_vm0 }
 0x2bd   : >> { %9498 = vmatprep.mubr.msk.f32.mxu0 %vm14110_vm15, %v12389_v10  ;;  %vm14111_vm5 = vmmov %vm14078_vm0 }
 0x2be   : >> { %vm14112_vm14 = vmmov %vm14078_vm0 }
 0x2bf   : >> { %9461 = vmatmul.mubr.msk.f32.gmra.mxu1 %vm14111_vm5, %v12400_v16  ;;  %vm14113_vm6 = vmmov %vm14078_vm0 }
 0x2c0   : >> { %9499 = vmatmul.mubr.msk.f32.gmra.mxu0 %vm14112_vm14, %v12403_v26  ;;  %9463 = vmatprep.mubr.msk.f32.mxu1 %vm14113_vm6, %v12406_v23  ;;  %vm14114_vm12 = vmmov %vm14078_vm0 }
 0x2c1   : >> { %9501 = vmatprep.mubr.msk.f32.mxu0 %vm14114_vm12, %v12409_v63  ;;  %vm14115_vm1 = vmmov %vm14078_vm0 }
 0x2c2   : >> { %vm14116_vm7 = vmmov %vm14078_vm0 }
 0x2c3   : >> { %9464 = vmatmul.mubr.msk.f32.gmra.mxu1 %vm14115_vm1, %v12420_v21  ;;  %vm14117_vm3 = vmmov %vm14078_vm0 }
 0x2c4   : >> { %9502 = vmatmul.mubr.msk.f32.gmra.mxu0 %vm14116_vm7, %v12423_v30  ;;  %9466 = vmatprep.mubr.msk.f32.mxu1 %vm14117_vm3, %v12426_v5  ;;  %vm14118_vm8 = vmmov %vm14078_vm0 }
 0x2c5   : >> { %9504 = vmatprep.mubr.msk.f32.mxu0 %vm14118_vm8, %v12429_v58  ;;  %vm14119_vm11 = vmmov %vm14078_vm0 }
 0x2c6   : >> { %vm14120_vm9 = vmmov %vm14078_vm0 }
 0x2c7   : >> { %9467 = vmatmul.mubr.msk.f32.gmra.mxu1 %vm14119_vm11, %v12440_v62  ;;  %vm14121_vm4 = vmmov %vm14078_vm0 }
 0x2c8   : >> { %9505 = vmatmul.mubr.msk.f32.gmra.mxu0 %vm14120_vm9, %v12443_v56  ;;  %9469 = vmatprep.mubr.msk.f32.mxu1 %vm14121_vm4, %v12446_v38  ;;  %vm14122_vm13 = vmmov %vm14078_vm0 }
 0x2c9   : >> { %9507 = vmatprep.mubr.msk.f32.mxu0 %vm14122_vm13, %v12449_v35  ;;  %vm14123_vm2 = vmmov %vm14078_vm0 }
 0x2ca   : >> { %vm14124_vm10 = vmmov %vm14078_vm0 }
 0x2cb   : >> { %9470 = vmatmul.mubr.msk.f32.gmra.mxu1 %vm14123_vm2, %v12460_v50  ;;  %vm14125_vm15 = vmmov %vm14078_vm0 }
 0x2cc   : >> { %9508 = vmatmul.mubr.msk.f32.gmra.mxu0 %vm14078_vm0, %v12463_v25  ;;  %9472 = vmatprep.mubr.msk.f32.mxu1 %vm14124_vm10, %v12466_v28  ;;  %vm14126_vm5 = vmmov %vm14078_vm0 }
 0x2cd   : >> { %9510 = vmatprep.mubr.msk.f32.mxu0 %vm14125_vm15, %v12469_v57  ;;  %vm14127_vm14 = vmmov %vm14078_vm0 }
 0x2ce   : >> { %vm14128_vm6 = vmmov %vm14078_vm0 }
 0x2cf   : >> { %9473 = vmatmul.mubr.msk.f32.gmra.mxu1 %vm14126_vm5, %v12480_v51  ;;  %vm14129_vm12 = vmmov %vm14078_vm0 }
 0x2d0   : >> { %9511 = vmatmul.mubr.msk.f32.gmra.mxu0 %vm14127_vm14, %v12483_v34  ;;  %9475 = vmatprep.mubr.msk.f32.mxu1 %vm14128_vm6, %v12486_v55  ;;  %vm14130_vm1 = vmmov %vm14078_vm0 }
 0x2d1   : >> { %9513 = vmatprep.mubr.msk.f32.mxu0 %vm14129_vm12, %v12489_v61  ;;  %vm14131_vm7 = vmmov %vm14078_vm0 }
 0x2d2   : >> { %vm14132_vm3 = vmmov %vm14078_vm0 }
 0x2d3   : >> { %9476 = vmatmul.mubr.msk.f32.gmra.mxu1 %vm14130_vm1, %v12500_v2  ;;  %vm14133_vm8 = vmmov %vm14078_vm0 }
 0x2d4   : >> { %9514 = vmatmul.mubr.msk.f32.gmra.mxu0 %vm14131_vm7, %v12503_v47  ;;  %9478 = vmatprep.mubr.msk.f32.mxu1 %vm14132_vm3, %v12506_v32  ;;  %vm14135_vm11 = vmmov %vm14078_vm0  ;;  %vm14150_vm3 = vcmask 1043456  }
 0x2d5   : >> { %9516 = vmatprep.mubr.msk.f32.mxu0 %vm14133_vm8, %v12509_v45  ;;  %vm14136_vm9 = vmmov %vm14078_vm0 }
 0x2d6   : >> { %vm14137_vm4 = vmmov %vm14078_vm0 }
 0x2d7   : >> { %9479 = vmatmul.mubr.msk.f32.gmra.mxu1 %vm14135_vm11, %v12520_v18  ;;  %vm14138_vm13 = vmmov %vm14078_vm0 }
 0x2d8   : >> { %9517 = vmatmul.mubr.msk.f32.gmra.mxu0 %vm14136_vm9, %v12523_v43  ;;  %9481 = vmatprep.mubr.msk.f32.mxu1 %vm14137_vm4, %v12526_v4  ;;  %vm14140_vm2 = vmmov %vm14078_vm0 }
 0x2d9   : >> { %9519 = vmatprep.mubr.msk.f32.mxu0 %vm14138_vm13, %v12529_v11  ;;  %vm14141_vm10 = vmmov %vm14078_vm0  ;;  %v12563_v11 = vld [vmem:[%s12208_s29 + $0xba] sm:$0xff] }
 0x2da   : >> { %vm14142_vm15 = vmmov %vm14078_vm0  ;;  %14143 = vst [vmem:[#allocation48_spill] sm:$0xff] %v12563_v11 }
 0x2db   : >> { %9482 = vmatmul.mubr.msk.f32.gmra.mxu1 %vm14140_vm2, %v12540_v60  ;;  %vm14144_vm5 = vmmov %vm14078_vm0 }
 0x2dc   : >> { %9520 = vmatmul.mubr.msk.f32.gmra.mxu0 %vm14078_vm0, %v12543_v0  ;;  %9484 = vmatprep.mubr.msk.f32.mxu1 %vm14141_vm10, %v12546_v27  ;;  %vm14145_vm14 = vmmov %vm14078_vm0 }
 0x2dd   : >> { %9522 = vmatprep.mubr.msk.f32.mxu0 %vm14142_vm15, %v12549_v54  ;;  %vm14146_vm6 = vmmov %vm14078_vm0  ;;  %v8517_v54 = vld [vmem:[%s13497_s4 + $0x1c] sm:$0xf] }
 0x2de   : >> { %vm14147_vm12 = vmmov %vm14078_vm0 }
 0x2df   : >> { %9485 = vmatmul.mubr.msk.f32.gmra.mxu1 %vm14144_vm5, %v12560_v9  ;;  %vm14148_vm1 = vmmov %vm14078_vm0 }
 0x2e0   : >> { %9523 = vmatmul.mubr.msk.f32.gmra.mxu0 %vm14145_vm14, %v12563_v11  ;;  %9527 = vmatprep.mubr.msk.f32.mxu1 %vm14146_vm6, %v12354_v13  ;;  %vm14149_vm7 = vmmov %vm14078_vm0  ;;  %v8567_v11 = vld [vmem:[%s13497_s4 + $0x20] sm:$0xf]  ;;  %v12681_v13 = vld [vmem:[%s12208_s29 + $0xd1] sm:$0xff] }
 0x2e1   : >> { %9565 = vmatprep.mubr.msk.f32.mxu0 %vm14147_vm12, %v12237_v40  ;;  %vm14151_vm8 = vmmov %vm14150_vm3  ;;  %v8314_v40 = vld [vmem:[%s12208_s29 + $0xc0] sm:$0xff] }
 0x2e2   : >> { %vm14152_vm11 = vmmov %vm14078_vm0 }
 0x2e3   : >> { %9528 = vmatmul.mubr.msk.f32.vlgmr.msra.gmra.mxu1 %vm14148_vm1, %v12362_v14  ;;  %vm14153_vm9 = vmmov %vm14078_vm0  ;;  %v14236_v14 = vld [vmem:[#allocation48_spill] sm:$0xff] }
 0x2e4   : >> { %9566 = vmatmul.mubr.msk.f32.vlgmr.msra.gmra.mxu0 %vm14149_vm7, %v12246_v39  ;;  %9602 = vmatpush3.msk.msra.mxu1 %vm14150_vm3, %v12344_v53  ;;  %vm14154_vm4 = vmmov %vm14150_vm3  ;;  %v12667_v39 = vld [vmem:[%s12208_s29 + $0xc1] sm:$0xff]  ;;  %v12671_v53 = vld [vmem:[%s12208_s29 + $0xc9] sm:$0xff] }
 0x2e5   : >> { %9640 = vmatpush3.msk.msra.mxu0 %vm14151_vm8, %v12349_v42  ;;  %9530 = vmatprep.mubr.msk.f32.mxu1 %vm14152_vm11, %v12380_v12  ;;  %vm14155_vm13 = vmmov %vm14150_vm3  ;;  %v8316_v42 = vld [vmem:[%s12208_s29 + $0xd0] sm:$0xff] }
 0x2e6   : >> { %9568 = vmatprep.mubr.msk.f32.mxu0 %vm14153_vm9, %v12262_v1  ;;  %9677 = vmatprep.subr.msk.mxu1 %vm14154_vm4, %v8517_v54  ;;  %vm14156_vm2 = vmmov %vm14078_vm0  ;;  %v8315_v1 = vld [vmem:[%s12208_s29 + $0xc8] sm:$0xff] }
 0x2e7   : >> { %9715 = vmatprep.subr.msk.mxu0 %vm14155_vm13, %v8567_v11  ;;  %9531 = vmatmul.mubr.msk.f32.gmra.mxu1 %vm14156_vm2, %v12386_v15  ;;  %vm14157_vm10 = vmmov %vm14078_vm0  ;;  %v12772_v12 = vld [vmem:[%s12208_s29 + $0xca] sm:$0xff] }
 0x2e8   : >> { %9569 = vmatmul.mubr.msk.f32.gmra.mxu0 %vm14078_vm0, %v12268_v6  ;;  %9533 = vmatprep.mubr.msk.f32.mxu1 %vm14157_vm10, %v12400_v16  ;;  %vm14158_vm15 = vmmov %vm14078_vm0 }
 0x2e9   : >> { %9571 = vmatprep.mubr.msk.f32.mxu0 %vm14158_vm15, %v12282_v29  ;;  %vm14159_vm5 = vmmov %vm14078_vm0 }
 0x2ea   : >> { %vm14160_vm14 = vmmov %vm14078_vm0 }
 0x2eb   : >> { %9534 = vmatmul.mubr.msk.f32.gmra.mxu1 %vm14159_vm5, %v12406_v23  ;;  %vm14161_vm6 = vmmov %vm14078_vm0 }
 0x2ec   : >> { %9572 = vmatmul.mubr.msk.f32.gmra.mxu0 %vm14160_vm14, %v12288_v8  ;;  %9536 = vmatprep.mubr.msk.f32.mxu1 %vm14161_vm6, %v12420_v21  ;;  %vm14162_vm12 = vmmov %vm14078_vm0 }
 0x2ed   : >> { %9574 = vmatprep.mubr.msk.f32.mxu0 %vm14162_vm12, %v12302_v19  ;;  %vm14163_vm1 = vmmov %vm14078_vm0 }
 0x2ee   : >> { %vm14164_vm7 = vmmov %vm14078_vm0 }
 0x2ef   : >> { %9537 = vmatmul.mubr.msk.f32.gmra.mxu1 %vm14163_vm1, %v12426_v5  ;;  %vm14165_vm3 = vmmov %vm14078_vm0 }
 0x2f0   : >> { %9575 = vmatmul.mubr.msk.f32.gmra.mxu0 %vm14164_vm7, %v12308_v37  ;;  %9539 = vmatprep.mubr.msk.f32.mxu1 %vm14165_vm3, %v12440_v62  ;;  %vm14166_vm8 = vmmov %vm14078_vm0 }
 0x2f1   : >> { %9577 = vmatprep.mubr.msk.f32.mxu0 %vm14166_vm8, %v12322_v24  ;;  %vm14167_vm11 = vmmov %vm14078_vm0 }
 0x2f2   : >> { %vm14168_vm9 = vmmov %vm14078_vm0 }
 0x2f3   : >> { %9540 = vmatmul.mubr.msk.f32.gmra.mxu1 %vm14167_vm11, %v12446_v38  ;;  %vm14169_vm4 = vmmov %vm14078_vm0 }
 0x2f4   : >> { %9578 = vmatmul.mubr.msk.f32.gmra.mxu0 %vm14168_vm9, %v12212_v52  ;;  %9542 = vmatprep.mubr.msk.f32.mxu1 %vm14169_vm4, %v12460_v50  ;;  %vm14170_vm13 = vmmov %vm14078_vm0 }
 0x2f5   : >> { %9580 = vmatprep.mubr.msk.f32.mxu0 %vm14170_vm13, %v12219_v7  ;;  %vm14171_vm2 = vmmov %vm14078_vm0 }
 0x2f6   : >> { %vm14172_vm10 = vmmov %vm14078_vm0 }
 0x2f7   : >> { %9543 = vmatmul.mubr.msk.f32.gmra.mxu1 %vm14171_vm2, %v12466_v28  ;;  %vm14173_vm15 = vmmov %vm14078_vm0 }
 0x2f8   : >> { %9581 = vmatmul.mubr.msk.f32.gmra.mxu0 %vm14078_vm0, %v12223_v31  ;;  %9545 = vmatprep.mubr.msk.f32.mxu1 %vm14172_vm10, %v12480_v51  ;;  %vm14174_vm5 = vmmov %vm14078_vm0 }
 0x2f9   : >> { %9583 = vmatprep.mubr.msk.f32.mxu0 %vm14173_vm15, %v12240_v22  ;;  %vm14175_vm14 = vmmov %vm14078_vm0 }
 0x2fa   : >> { %vm14176_vm6 = vmmov %vm14078_vm0 }
 0x2fb   : >> { %9546 = vmatmul.mubr.msk.f32.gmra.mxu1 %vm14174_vm5, %v12486_v55  ;;  %vm14177_vm12 = vmmov %vm14078_vm0 }
 0x2fc   : >> { %9584 = vmatmul.mubr.msk.f32.gmra.mxu0 %vm14175_vm14, %v12249_v49  ;;  %9548 = vmatprep.mubr.msk.f32.mxu1 %vm14176_vm6, %v12500_v2  ;;  %vm14178_vm1 = vmmov %vm14078_vm0 }
 0x2fd   : >> { %9586 = vmatprep.mubr.msk.f32.mxu0 %vm14177_vm12, %v12265_v33  ;;  %vm14179_vm7 = vmmov %vm14078_vm0 }
 0x2fe   : >> { %vm14180_vm3 = vmmov %vm14078_vm0 }
 0x2ff   : >> { %9549 = vmatmul.mubr.msk.f32.gmra.mxu1 %vm14178_vm1, %v12506_v32  ;;  %vm14181_vm8 = vmmov %vm14078_vm0 }
 0x300   : >> { %9587 = vmatmul.mubr.msk.f32.gmra.mxu0 %vm14179_vm7, %v12271_v41  ;;  %9551 = vmatprep.mubr.msk.f32.mxu1 %vm14180_vm3, %v12520_v18  ;;  %vm14182_vm11 = vmmov %vm14078_vm0 }
 0x301   : >> { %9589 = vmatprep.mubr.msk.f32.mxu0 %vm14181_vm8, %v12285_v48  ;;  %vm14183_vm9 = vmmov %vm14078_vm0 }
 0x302   : >> { %vm14184_vm4 = vmmov %vm14078_vm0 }
 0x303   : >> { %9552 = vmatmul.mubr.msk.f32.gmra.mxu1 %vm14182_vm11, %v12526_v4  ;;  %vm14185_vm13 = vmmov %vm14078_vm0 }
 0x304   : >> { %9590 = vmatmul.mubr.msk.f32.gmra.mxu0 %vm14183_vm9, %v12291_v46  ;;  %9554 = vmatprep.mubr.msk.f32.mxu1 %vm14184_vm4, %v12540_v60  ;;  %vm14186_vm2 = vmmov %vm14078_vm0  ;;  %vm14199_vm4 = vcmask 1043456  }
 0x305   : >> { %9592 = vmatprep.mubr.msk.f32.mxu0 %vm14185_vm13, %v12305_v17  ;;  %vm14187_vm10 = vmmov %vm14078_vm0 }
 0x306   : >> { %vm14188_vm15 = vmmov %vm14078_vm0 }
 0x307   : >> { %9555 = vmatmul.mubr.msk.f32.gmra.mxu1 %vm14186_vm2, %v12546_v27  ;;  %vm14189_vm5 = vmmov %vm14078_vm0 }
 0x308   : >> { %9593 = vmatmul.mubr.msk.f32.gmra.mxu0 %vm14078_vm0, %v12311_v20  ;;  %9557 = vmatprep.mubr.msk.f32.mxu1 %vm14187_vm10, %v12560_v9  ;;  %vm14190_vm14 = vmmov %vm14078_vm0 }
 0x309   : >> { %9595 = vmatprep.mubr.msk.f32.mxu0 %vm14188_vm15, %v12325_v44  ;;  %vm14191_vm6 = vmmov %vm14078_vm0 }
 0x30a   : >> { %vm14192_vm12 = vmmov %vm14078_vm0 }
 0x30b   : >> { %9558 = vmatmul.mubr.msk.f32.gmra.mxu1 %vm14189_vm5, %v8314_v40  ;;  %vm14193_vm1 = vmmov %vm14078_vm0 }
 0x30c   : >> { %9596 = vmatmul.mubr.msk.f32.gmra.mxu0 %vm14190_vm14, %v12667_v39  ;;  %9560 = vmatprep.mubr.msk.f32.mxu1 %vm14191_vm6, %v8315_v1  ;;  %vm14194_vm7 = vmmov %vm14078_vm0 }
 0x30d   : >> { %9598 = vmatprep.mubr.msk.f32.mxu0 %vm14192_vm12, %v12671_v53  ;;  %vm14195_vm3 = vmmov %vm14078_vm0 }
 0x30e   : >> { %vm14196_vm8 = vmmov %vm14078_vm0 }
 0x30f   : >> { %9561 = vmatmul.mubr.msk.f32.gmra.mxu1 %vm14193_vm1, %v8316_v42  ;;  %vm14197_vm11 = vmmov %vm14078_vm0 }
 0x310   : >> { %9599 = vmatmul.mubr.msk.f32.gmra.mxu0 %vm14194_vm7, %v12681_v13  ;;  %9603 = vmatprep.mubr.msk.f32.mxu1 %vm14195_vm3, %v12357_v3  ;;  %vm14198_vm9 = vmmov %vm14078_vm0  ;;  %v14233_v3 = vld [vmem:[#allocation47_spill] sm:$0xff] }
 0x311   : >> { %9641 = vmatprep.mubr.msk.f32.mxu0 %vm14196_vm8, %v12386_v15  ;;  %vm14200_vm13 = vmmov %vm14199_vm4  ;;  %v8466_v15 = vld [vmem:[%s12208_s29 + $0xe8] sm:$0xff] }
 0x312   : >> { %vm14201_vm2 = vmmov %vm14078_vm0 }
 0x313   : >> { %9604 = vmatmul.mubr.msk.f32.vlgmr.msra.gmra.mxu1 %vm14197_vm11, %v12365_v36  ;;  %vm14202_vm10 = vmmov %vm14078_vm0  ;;  %v8464_v36 = vld [vmem:[%s12208_s29 + $0xd8] sm:$0xff] }
 0x314   : >> { %9642 = vmatmul.mubr.msk.f32.vlgmr.msra.gmra.mxu0 %vm14198_vm9, %v12400_v16  ;;  %9678 = vmatpush3.msk.msra.mxu1 %vm14199_vm4, %v8517_v54  ;;  %vm14203_vm15 = vmmov %vm14078_vm0  ;;  %v14229_v54 = vld [vmem:[#allocation46_spill] sm:$0xff] }
 0x315   : >> { %9716 = vmatpush3.msk.msra.mxu0 %vm14200_vm13, %v8567_v11  ;;  %9606 = vmatprep.mubr.msk.f32.mxu1 %vm14201_vm2, %v12383_v59  ;;  %vm14204_vm5 = vmmov %vm14078_vm0  ;;  %v8416_v59 = vld [vmem:[%s12208_s29 + $0xd2] sm:$0xff]  ;;  %v8565_v16 = vld [vmem:[%s12208_s29 + $0xe2] sm:$0xff] }
 0x316   : >> { %9644 = vmatprep.mubr.msk.f32.mxu0 %vm14078_vm0, %v12406_v23  ;;  %vm14205_vm14 = vmmov %vm14078_vm0 }
 0x317   : >> { %9607 = vmatmul.mubr.msk.f32.gmra.mxu1 %vm14202_vm10, %v12389_v10  ;;  %vm14206_vm6 = vmmov %vm14078_vm0 }
 0x318   : >> { %9645 = vmatmul.mubr.msk.f32.gmra.mxu0 %vm14203_vm15, %v12420_v21  ;;  %9609 = vmatprep.mubr.msk.f32.mxu1 %vm14204_vm5, %v12403_v26  ;;  %vm14207_vm12 = vmmov %vm14078_vm0  ;;  %v8566_v21 = vld [vmem:[%s12208_s29 + $0xea] sm:$0xff] }
 0x319   : >> { %9647 = vmatprep.mubr.msk.f32.mxu0 %vm14205_vm14, %v12426_v5  ;;  %vm14208_vm1 = vmmov %vm14078_vm0 }
 0x31a   : >> { %vm14209_vm7 = vmmov %vm14078_vm0 }
 0x31b   : >> { %9610 = vmatmul.mubr.msk.f32.gmra.mxu1 %vm14206_vm6, %v12409_v63  ;;  %vm14210_vm3 = vmmov %vm14078_vm0 }
 0x31c   : >> { %9648 = vmatmul.mubr.msk.f32.gmra.mxu0 %vm14207_vm12, %v12440_v62  ;;  %9612 = vmatprep.mubr.msk.f32.mxu1 %vm14208_vm1, %v12423_v30  ;;  %vm14211_vm8 = vmmov %vm14078_vm0 }
 0x31d   : >> { %9650 = vmatprep.mubr.msk.f32.mxu0 %vm14209_vm7, %v12446_v38  ;;  %vm14212_vm11 = vmmov %vm14078_vm0 }
 0x31e   : >> { %vm14213_vm9 = vmmov %vm14078_vm0 }
 0x31f   : >> { %9613 = vmatmul.mubr.msk.f32.gmra.mxu1 %vm14210_vm3, %v12429_v58  ;;  %vm14214_vm4 = vmmov %vm14078_vm0 }
 0x320   : >> { %9651 = vmatmul.mubr.msk.f32.gmra.mxu0 %vm14211_vm8, %v12460_v50  ;;  %9615 = vmatprep.mubr.msk.f32.mxu1 %vm14212_vm11, %v12443_v56  ;;  %vm14215_vm13 = vmmov %vm14078_vm0 }
 0x321   : >> { %9653 = vmatprep.mubr.msk.f32.mxu0 %vm14213_vm9, %v12466_v28  ;;  %vm14216_vm2 = vmmov %vm14078_vm0 }
 0x322   : >> { %vm14217_vm10 = vmmov %vm14078_vm0 }
 0x323   : >> { %9616 = vmatmul.mubr.msk.f32.gmra.mxu1 %vm14214_vm4, %v12449_v35  ;;  %vm14218_vm15 = vmmov %vm14078_vm0 }
 0x324   : >> { %9654 = vmatmul.mubr.msk.f32.gmra.mxu0 %vm14215_vm13, %v12480_v51  ;;  %9618 = vmatprep.mubr.msk.f32.mxu1 %vm14216_vm2, %v12463_v25  ;;  %vm14219_vm5 = vmmov %vm14078_vm0 }
 0x325   : >> { %9656 = vmatprep.mubr.msk.f32.mxu0 %vm14078_vm0, %v12486_v55  ;;  %vm14220_vm14 = vmmov %vm14078_vm0 }
 0x326   : >> { %vm14221_vm6 = vmmov %vm14078_vm0 }
 0x327   : >> { %9619 = vmatmul.mubr.msk.f32.gmra.mxu1 %vm14217_vm10, %v12469_v57  ;;  %vm14222_vm12 = vmmov %vm14078_vm0 }
 0x328   : >> { %9657 = vmatmul.mubr.msk.f32.gmra.mxu0 %vm14218_vm15, %v12500_v2  ;;  %9621 = vmatprep.mubr.msk.f32.mxu1 %vm14219_vm5, %v12483_v34  ;;  %vm14223_vm1 = vmmov %vm14078_vm0 }
 0x329   : >> { %9659 = vmatprep.mubr.msk.f32.mxu0 %vm14220_vm14, %v12506_v32  ;;  %vm14224_vm7 = vmmov %vm14078_vm0 }
 0x32a   : >> { %vm14225_vm3 = vmmov %vm14078_vm0 }
 0x32b   : >> { %9622 = vmatmul.mubr.msk.f32.gmra.mxu1 %vm14221_vm6, %v12489_v61  ;;  %vm14226_vm8 = vmmov %vm14078_vm0 }
 0x32c   : >> { %9660 = vmatmul.mubr.msk.f32.gmra.mxu0 %vm14222_vm12, %v12520_v18  ;;  %9624 = vmatprep.mubr.msk.f32.mxu1 %vm14223_vm1, %v12503_v47  ;;  %vm14227_vm11 = vmmov %vm14078_vm0 }
 0x32d   : >> { %9662 = vmatprep.mubr.msk.f32.mxu0 %vm14224_vm7, %v12526_v4  ;;  %vm14228_vm9 = vmmov %vm14078_vm0 }
 0x32e   : >> { %vm14230_vm4 = vmmov %vm14078_vm0 }
 0x32f   : >> { %9625 = vmatmul.mubr.msk.f32.gmra.mxu1 %vm14225_vm3, %v12509_v45  ;;  %vm14231_vm13 = vmmov %vm14078_vm0 }
 0x330   : >> { %9663 = vmatmul.mubr.msk.f32.gmra.mxu0 %vm14226_vm8, %v12540_v60  ;;  %9627 = vmatprep.mubr.msk.f32.mxu1 %vm14227_vm11, %v12523_v43  ;;  %vm14232_vm2 = vmmov %vm14078_vm0 }
 0x331   : >> { %9665 = vmatprep.mubr.msk.f32.mxu0 %vm14228_vm9, %v12546_v27  ;;  %vm14234_vm10 = vmmov %vm14078_vm0  ;;  %v8414_v27 = vld [vmem:[%s12208_s29 + $0xc2] sm:$0xff] }
 0x332   : >> { %vm14235_vm15 = vmmov %vm14078_vm0 }
 0x333   : >> { %9628 = vmatmul.mubr.msk.f32.gmra.mxu1 %vm14230_vm4, %v14229_v54  ;;  %vm14237_vm5 = vmmov %vm14078_vm0 }
 0x334   : >> { %9666 = vmatmul.mubr.msk.f32.gmra.mxu0 %vm14231_vm13, %v12560_v9  ;;  %9630 = vmatprep.mubr.msk.f32.mxu1 %vm14232_vm2, %v12543_v0  ;;  %vm14238_vm14 = vmmov %vm14078_vm0  ;;  %v8465_v9 = vld [vmem:[%s12208_s29 + $0xe0] sm:$0xff] }
 0x335   : >> { %9668 = vmatprep.mubr.msk.f32.mxu0 %vm14078_vm0, %v8314_v40  ;;  %vm14239_vm6 = vmmov %vm14078_vm0 }
 0x336   : >> { %vm14240_vm12 = vmmov %vm14078_vm0 }
 0x337   : >> { %9631 = vmatmul.mubr.msk.f32.gmra.mxu1 %vm14234_vm10, %v14233_v3  ;;  %vm14241_vm1 = vmmov %vm14078_vm0 }
 0x338   : >> { %9669 = vmatmul.mubr.msk.f32.gmra.mxu0 %vm14235_vm15, %v8315_v1  ;;  %9633 = vmatprep.mubr.msk.f32.mxu1 %vm14237_vm5, %v14236_v14  ;;  %vm14242_vm7 = vmmov %vm14078_vm0 }
 0x339   : >> { %9671 = vmatprep.mubr.msk.f32.mxu0 %vm14238_vm14, %v8316_v42  ;;  %vm14243_vm3 = vmmov %vm14078_vm0 }
 0x33a   : >> { %vm14244_vm8 = vmmov %vm14078_vm0 }
 0x33b   : >> { %9634 = vmatmul.mubr.msk.f32.gmra.mxu1 %vm14239_vm6, %v8414_v27  ;;  %vm14245_vm11 = vmmov %vm14078_vm0 }
 0x33c   : >> { %9672 = vmatmul.mubr.msk.f32.gmra.mxu0 %vm14240_vm12, %v8464_v36  ;;  %9636 = vmatprep.mubr.msk.f32.mxu1 %vm14241_vm1, %v12772_v12  ;;  %vm14246_vm9 = vmmov %vm14078_vm0 }
 0x33d   : >> { %9674 = vmatprep.mubr.msk.f32.mxu0 %vm14242_vm7, %v8465_v9  ;;  %vm14247_vm4 = vmmov %vm14078_vm0 }
 0x33e   : >> { %vm14248_vm13 = vmmov %vm14078_vm0 }
 0x33f   : >> { %9637 = vmatmul.mubr.msk.f32.gmra.mxu1 %vm14243_vm3, %v8416_v59  ;;  %vm14249_vm2 = vmmov %vm14078_vm0 }
 0x340   : >> { %9675 = vmatmul.mubr.msk.f32.gmra.mxu0 %vm14244_vm8, %v8466_v15  ;;  %9679 = vmatprep.mubr.msk.f32.mxu1 %vm14245_vm11, %v12268_v6  ;;  %vm14250_vm10 = vmmov %vm14078_vm0 }
 0x341   : >> { %9717 = vmatprep.mubr.msk.f32.mxu0 %vm14246_vm9, %v12389_v10  ;;  %vm14251_vm15 = vmmov %vm14078_vm0  ;;  %v8515_v10 = vld [vmem:[%s12208_s29 + $0xe1] sm:$0xff] }
 0x342   : >> { %vm14252_vm5 = vmmov %vm14078_vm0 }
 0x343   : >> { %9680 = vmatmul.mubr.msk.f32.vlgmr.msra.gmra.mxu1 %vm14247_vm4, %v12282_v29  ;;  %vm14253_vm14 = vmmov %vm14078_vm0 }
 0x344   : >> { %9718 = vmatmul.mubr.msk.f32.vlgmr.msra.gmra.mxu0 %vm14248_vm13, %v12403_v26  ;;  %9682 = vmatprep.mubr.msk.f32.mxu1 %vm14249_vm2, %v12288_v8  ;;  %vm14254_vm6 = vmmov %vm14078_vm0 }
 0x345   : >> { %9720 = vmatprep.mubr.msk.f32.mxu0 %vm14078_vm0, %v12409_v63  ;;  %vm14255_vm12 = vmmov %vm14078_vm0  ;;  %v8516_v63 = vld [vmem:[%s12208_s29 + $0xe9] sm:$0xff] }
 0x346   : >> { %vm14256_vm1 = vmmov %vm14078_vm0 }
 0x347   : >> { %9683 = vmatmul.mubr.msk.f32.gmra.mxu1 %vm14250_vm10, %v12302_v19  ;;  %vm14257_vm7 = vmmov %vm14078_vm0 }
 0x348   : >> { %9721 = vmatmul.mubr.msk.f32.gmra.mxu0 %vm14251_vm15, %v12423_v30  ;;  %9685 = vmatprep.mubr.msk.f32.mxu1 %vm14252_vm5, %v12308_v37  ;;  %vm14258_vm3 = vmmov %vm14078_vm0  ;;  %v8514_v37 = vld [vmem:[%s12208_s29 + $0xd9] sm:$0xff] }
 0x349   : >> { %9723 = vmatprep.mubr.msk.f32.mxu0 %vm14253_vm14, %v12429_v58  ;;  %vm14259_vm8 = vmmov %vm14078_vm0 }
 0x34a   : >> { %vm14260_vm11 = vmmov %vm14078_vm0 }
 0x34b   : >> { %9686 = vmatmul.mubr.msk.f32.gmra.mxu1 %vm14254_vm6, %v12322_v24  ;;  %vm14261_vm9 = vmmov %vm14078_vm0 }
 0x34c   : >> { %9724 = vmatmul.mubr.msk.f32.gmra.mxu0 %vm14255_vm12, %v12443_v56  ;;  %9688 = vmatprep.mubr.msk.f32.mxu1 %vm14256_vm1, %v12212_v52  ;;  %vm14262_vm4 = vmmov %vm14078_vm0 }
 0x34d   : >> { %9726 = vmatprep.mubr.msk.f32.mxu0 %vm14257_vm7, %v12449_v35  ;;  %vm14263_vm13 = vmmov %vm14078_vm0 }
 0x34e   : >> { %vm14264_vm2 = vmmov %vm14078_vm0 }
 0x34f   : >> { %9689 = vmatmul.mubr.msk.f32.gmra.mxu1 %vm14258_vm3, %v12219_v7  ;;  %vm14265_vm10 = vmmov %vm14078_vm0 }
 0x350   : >> { %9727 = vmatmul.mubr.msk.f32.gmra.mxu0 %vm14259_vm8, %v12463_v25  ;;  %9691 = vmatprep.mubr.msk.f32.mxu1 %vm14260_vm11, %v12223_v31  ;;  %vm14266_vm15 = vmmov %vm14078_vm0 }
 0x351   : >> { %9729 = vmatprep.mubr.msk.f32.mxu0 %vm14261_vm9, %v12469_v57  ;;  %vm14267_vm5 = vmmov %vm14078_vm0 }
 0x352   : >> { %vm14268_vm14 = vmmov %vm14078_vm0 }
 0x353   : >> { %9692 = vmatmul.mubr.msk.f32.gmra.mxu1 %vm14262_vm4, %v12240_v22  ;;  %vm14269_vm6 = vmmov %vm14078_vm0 }
 0x354   : >> { %9730 = vmatmul.mubr.msk.f32.gmra.mxu0 %vm14263_vm13, %v12483_v34  ;;  %9694 = vmatprep.mubr.msk.f32.mxu1 %vm14264_vm2, %v12249_v49  ;;  %vm14270_vm12 = vmmov %vm14078_vm0 }
 0x355   : >> { %9732 = vmatprep.mubr.msk.f32.mxu0 %vm14078_vm0, %v12489_v61  ;;  %v9415_v52 = vpop.f32.mrf.mxu0  ;;  %vm14271_vm1 = vmmov %vm14078_vm0 }
 0x356   : >> { %v12836_v7 = vpop.f32.mrf.mxu1  ;;  %vm14272_vm7 = vmmov %vm14078_vm0 }
 0x357   : >> { %9695 = vmatmul.mubr.msk.f32.gmra.mxu1 %vm14265_vm10, %v12265_v33  ;;  %v4542_v31 = vpop.f32.mrf.mxu0  ;;  %vm14273_vm3 = vmmov %vm14078_vm0 }
 0x358   : >> { %9733 = vmatmul.mubr.msk.f32.gmra.mxu0 %vm14266_vm15, %v12503_v47  ;;  %9697 = vmatprep.mubr.msk.f32.mxu1 %vm14267_vm5, %v12271_v41  ;;  %v12846_v22 = vpop.f32.mrf.mxu1  ;;  %vm14274_vm8 = vmmov %vm14078_vm0 }
 0x359   : >> { %9735 = vmatprep.mubr.msk.f32.mxu0 %vm14268_vm14, %v12509_v45  ;;  %vm14275_vm11 = vmmov %vm14078_vm0 }
 0x35a   : >> { %vm14276_vm9 = vmmov %vm14078_vm0 }
 0x35b   : >> { %9698 = vmatmul.mubr.msk.f32.gmra.mxu1 %vm14269_vm6, %v12285_v48  ;;  %vm14277_vm4 = vmmov %vm14078_vm0 }
 0x35c   : >> { %9736 = vmatmul.mubr.msk.f32.gmra.mxu0 %vm14270_vm12, %v12523_v43  ;;  %9700 = vmatprep.mubr.msk.f32.mxu1 %vm14271_vm1, %v12291_v46  ;;  %vm14278_vm13 = vmmov %vm14078_vm0 }
 0x35d   : >> { %9738 = vmatprep.mubr.msk.f32.mxu0 %vm14272_vm7, %v14229_v54  ;;  %v9418_v49 = vpop.f32.mrf.mxu0  ;;  %vm14279_vm2 = vmmov %vm14078_vm0 }
 0x35e   : >> { %v12848_v33 = vpop.f32.mrf.mxu1  ;;  %vm14280_vm10 = vmmov %vm14078_vm0 }
 0x35f   : >> { %9701 = vmatmul.mubr.msk.f32.gmra.mxu1 %vm14273_vm3, %v12305_v17  ;;  %v4552_v6 = vpop.f32.mrf.mxu0  ;;  %vm14281_vm15 = vmmov %vm14078_vm0 }
 0x360   : >> { %9739 = vmatmul.mubr.msk.f32.gmra.mxu0 %vm14274_vm8, %v12543_v0  ;;  %9703 = vmatprep.mubr.msk.f32.mxu1 %vm14275_vm11, %v12311_v20  ;;  %v12858_v41 = vpop.f32.mrf.mxu1  ;;  %vm14282_vm5 = vmmov %vm14078_vm0  ;;  %v8564_v20 = vld [vmem:[%s12208_s29 + $0xda] sm:$0xff] }
 0x361   : >> { %9741 = vmatprep.mubr.msk.f32.mxu0 %vm14276_vm9, %v14233_v3  ;;  %v9421_v29 = vpop.f32.mrf.mxu0  ;;  %vm14283_vm14 = vmmov %vm14078_vm0 }
 0x362   : >> { %v12860_v48 = vpop.f32.mrf.mxu1  ;;  %vm14284_vm6 = vmmov %vm14078_vm0 }
 0x363   : >> { %9704 = vmatmul.mubr.msk.f32.gmra.mxu1 %vm14277_vm4, %v12325_v44  ;;  %v4562_v8 = vpop.f32.mrf.mxu0  ;;  %vm14285_vm12 = vmmov %vm14078_vm0 }
 0x364   : >> { %9742 = vmatmul.mubr.msk.f32.gmra.mxu0 %vm14278_vm13, %v14236_v14  ;;  %9706 = vmatprep.mubr.msk.f32.mxu1 %vm14279_vm2, %v12667_v39  ;;  %v12869_v46 = vpop.f32.mrf.mxu1  ;;  %vm14286_vm1 = vmmov %vm14078_vm0 }
 0x365   : >> { %9744 = vmatprep.mubr.msk.f32.mxu0 %vm14078_vm0, %v8414_v27  ;;  %v9424_v19 = vpop.f32.mrf.mxu0  ;;  %vm14287_vm7 = vmmov %vm14078_vm0 }
 0x366   : >> { %v12871_v17 = vpop.f32.mrf.mxu1  ;;  %vm14288_vm3 = vmmov %vm14078_vm0 }
 0x367   : >> { %9707 = vmatmul.mubr.msk.f32.gmra.mxu1 %vm14280_vm10, %v12671_v53  ;;  %v4572_v24 = vpop.f32.mrf.mxu0  ;;  %vm14289_vm8 = vmmov %vm14078_vm0 }
 0x368   : >> { %9745 = vmatmul.mubr.msk.f32.gmra.mxu0 %vm14281_vm15, %v12772_v12  ;;  %9709 = vmatprep.mubr.msk.f32.mxu1 %vm14282_vm5, %v12681_v13  ;;  %v12882_v44 = vpop.f32.mrf.mxu1  ;;  %vm14309_vm9 = vmmov %vm14078_vm0 }
 0x369   : >> { %9747 = vmatprep.mubr.msk.f32.mxu0 %vm14283_vm14, %v8416_v59  ;;  %v9427_v26 = vpop.f32.mrf.mxu0  ;;  %vm14316_vm13 = vmmov %vm14078_vm0 }
 0x36a   : >> { %v12886_v23 = vpop.f32.mrf.mxu1  ;;  %vm14318_vm2 = vmmov %vm14078_vm0 }
 0x36b   : >> { %9710 = vmatmul.mubr.msk.f32.gmra.mxu1 %vm14284_vm6, %v8514_v37  ;;  %v4582_v30 = vpop.f32.mrf.mxu0  ;;  %vm14321_vm15 = vmmov %vm14078_vm0 }
 0x36c   : >> { %9748 = vmatmul.mubr.msk.f32.gmra.mxu0 %vm14285_vm12, %v8564_v20  ;;  %9712 = vmatprep.mubr.msk.f32.mxu1 %vm14286_vm1, %v8515_v10  ;;  %v12894_v5 = vpop.f32.mrf.mxu1  ;;  %vm14323_vm5 = vmmov %vm14078_vm0 }
 0x36d   : >> { %9750 = vmatprep.mubr.msk.f32.mxu0 %vm14287_vm7, %v8565_v16  ;;  %v9430_v58 = vpop.f32.mrf.mxu0  ;;  %vm14324_vm14 = vmmov %vm14078_vm0 }
 0x36e   : >> { %v12896_v62 = vpop.f32.mrf.mxu1  ;;  %vm14327_vm12 = vmmov %vm14078_vm0 }
 0x36f   : >> { %9713 = vmatmul.mubr.msk.f32.gmra.mxu1 %vm14288_vm3, %v8516_v63  ;;  %v4592_v56 = vpop.f32.mrf.mxu0  ;;  %vm14330_vm1 = vmmov %vm14078_vm0 }
 0x370   : >> { %9751 = vmatmul.mubr.msk.f32.gmra.mxu0 %vm14289_vm8, %v8566_v21  ;;  %v12900_v38 = vpop.f32.mrf.mxu1  ;;  %vm14333_vm3 = vmmov %vm14078_vm0 }
 0x371   : >> { %v9491_v50 = vpop.f32.mrf.mxu0  ;;  %vm14335_vm8 = vmmov %vm14078_vm0 }
 0x372   : >> { %v9453_v35 = vpop.f32.mrf.mxu1 }
 0x373   : >> { %v4808_v25 = vadd.f32 %v9453_v35, %v9415_v52  ;;  %v5090_v57 = vpop.f32.mrf.mxu0 }
 0x374   : >> { %v4802_v28 = vpop.f32.mrf.mxu1 }
 0x375   : >> { %v12902_v51 = vadd.f32 %v9491_v50, %v4808_v25  ;;  %v4803_v34 = vadd.f32 %v4802_v28, %v4542_v31 }
 0x377   : >> { %v9456_v55 = vpop.f32.mrf.mxu1  ;;  %v12904_v2 = vadd.f32 %v5090_v57, %v4803_v34 }
 0x378   : >> { %v9494_v61 = vpop.f32.mrf.mxu0  ;;  %v4818_v47 = vadd.f32 %v9456_v55, %v9418_v49 }
 0x379   : >> { %v4812_v32 = vpop.f32.mrf.mxu1 }
 0x37a   : >> { %v5100_v45 = vpop.f32.mrf.mxu0  ;;  %v12906_v18 = vadd.f32 %v9494_v61, %v4818_v47  ;;  %v4813_v43 = vadd.f32 %v4812_v32, %v4552_v6 }
 0x37b   : >> { %v9459_v4 = vpop.f32.mrf.mxu1 }
 0x37c   : >> { %v9497_v11 = vpop.f32.mrf.mxu0  ;;  %v12908_v60 = vadd.f32 %v5100_v45, %v4813_v43  ;;  %v4828_v0 = vadd.f32 %v9459_v4, %v9421_v29 }
 0x37d   : >> { %v4822_v40 = vpop.f32.mrf.mxu1 }
 0x37e   : >> { %v5110_v39 = vpop.f32.mrf.mxu0  ;;  %v12910_v1 = vadd.f32 %v9497_v11, %v4828_v0  ;;  %v4823_v53 = vadd.f32 %v4822_v40, %v4562_v8 }
 0x37f   : >> { %v9462_v42 = vpop.f32.mrf.mxu1 }
 0x380   : >> { %v9500_v13 = vpop.f32.mrf.mxu0  ;;  %v12912_v54 = vadd.f32 %v5110_v39, %v4823_v53  ;;  %v4838_v3 = vadd.f32 %v9462_v42, %v9424_v19 }
 0x381   : >> { %v4832_v14 = vpop.f32.mrf.mxu1 }
 0x382   : >> { %v5120_v27 = vpop.f32.mrf.mxu0  ;;  %v12914_v36 = vadd.f32 %v9500_v13, %v4838_v3  ;;  %v4833_v12 = vadd.f32 %v4832_v14, %v4572_v24 }
 0x383   : >> { %v9465_v9 = vpop.f32.mrf.mxu1 }
 0x384   : >> { %v9503_v59 = vpop.f32.mrf.mxu0  ;;  %v12916_v15 = vadd.f32 %v5120_v27, %v4833_v12  ;;  %v4848_v52 = vadd.f32 %v9465_v9, %v9427_v26 }
 0x385   : >> { %v4842_v31 = vpop.f32.mrf.mxu1 }
 0x386   : >> { %v5130_v49 = vpop.f32.mrf.mxu0  ;;  %v12918_v6 = vadd.f32 %v9503_v59, %v4848_v52  ;;  %v4843_v29 = vadd.f32 %v4842_v31, %v4582_v30 }
 0x387   : >> { %v9468_v8 = vpop.f32.mrf.mxu1 }
 0x388   : >> { %v9506_v37 = vpop.f32.mrf.mxu0  ;;  %v12920_v20 = vadd.f32 %v5130_v49, %v4843_v29  ;;  %v4858_v19 = vadd.f32 %v9468_v8, %v9430_v58 }
 0x389   : >> { %v4852_v10 = vpop.f32.mrf.mxu1 }
 0x38a   : >> { %v5140_v16 = vpop.f32.mrf.mxu0  ;;  %v12922_v63 = vadd.f32 %v9506_v37, %v4858_v19  ;;  %v4853_v24 = vadd.f32 %v4852_v10, %v4592_v56 }
 0x38b   : >> { %v9471_v21 = vpop.f32.mrf.mxu1 }
 0x38c   : >> { %v9509_v35 = vpop.f32.mrf.mxu0  ;;  %v12924_v50 = vadd.f32 %v5140_v16, %v4853_v24  ;;  %v4868_v26 = vadd.f32 %v9471_v21, %v12836_v7 }
 0x38d   : >> { %v4862_v25 = vpop.f32.mrf.mxu1 }
 0x38e   : >> { %v5150_v28 = vpop.f32.mrf.mxu0  ;;  %v12927_v57 = vadd.f32 %v9509_v35, %v4868_v26  ;;  %v4863_v30 = vadd.f32 %v4862_v25, %v12846_v22 }
 0x38f   : >> { %v9474_v34 = vpop.f32.mrf.mxu1 }
 0x390   : >> { %v9512_v55 = vpop.f32.mrf.mxu0  ;;  %v12930_v58 = vadd.f32 %v5150_v28, %v4863_v30  ;;  %v4878_v61 = vadd.f32 %v9474_v34, %v12848_v33 }
 0x391   : >> { %v4872_v47 = vpop.f32.mrf.mxu1 }
 0x392   : >> { %v5160_v56 = vpop.f32.mrf.mxu0  ;;  %v12933_v32 = vadd.f32 %v9512_v55, %v4878_v61  ;;  %v4873_v45 = vadd.f32 %v4872_v47, %v12858_v41 }
 0x393   : >> { %v9477_v43 = vpop.f32.mrf.mxu1 }
 0x394   : >> { %v9515_v7 = vpop.f32.mrf.mxu0  ;;  %v12936_v4 = vadd.f32 %v5160_v56, %v4873_v45  ;;  %v4888_v11 = vadd.f32 %v9477_v43, %v12860_v48 }
 0x395   : >> { %v4882_v0 = vpop.f32.mrf.mxu1 }
 0x396   : >> { %v5170_v22 = vpop.f32.mrf.mxu0  ;;  %v12939_v40 = vadd.f32 %v9515_v7, %v4888_v11  ;;  %v4883_v39 = vadd.f32 %v4882_v0, %v12869_v46 }
 0x397   : >> { %v9480_v53 = vpop.f32.mrf.mxu1 }
 0x398   : >> { %v9518_v33 = vpop.f32.mrf.mxu0  ;;  %v12942_v42 = vadd.f32 %v5170_v22, %v4883_v39  ;;  %v4898_v13 = vadd.f32 %v9480_v53, %v12871_v17 }
 0x399   : >> { %v4892_v3 = vpop.f32.mrf.mxu1 }
 0x39a   : >> { %v5180_v41 = vpop.f32.mrf.mxu0  ;;  %v12945_v14 = vadd.f32 %v9518_v33, %v4898_v13  ;;  %v4893_v27 = vadd.f32 %v4892_v3, %v12882_v44 }
 0x39b   : >> { %v9483_v12 = vpop.f32.mrf.mxu1 }
 0x39c   : >> { %v9521_v48 = vpop.f32.mrf.mxu0  ;;  %v12948_v9 = vadd.f32 %v5180_v41, %v4893_v27  ;;  %v4908_v59 = vadd.f32 %v9483_v12, %v12886_v23 }
 0x39d   : >> { %v4902_v52 = vpop.f32.mrf.mxu1 }
 0x39e   : >> { %v5190_v46 = vpop.f32.mrf.mxu0  ;;  %v12951_v31 = vadd.f32 %v9521_v48, %v4908_v59  ;;  %v4903_v49 = vadd.f32 %v4902_v52, %v12894_v5 }
 0x39f   : >> { %v9486_v29 = vpop.f32.mrf.mxu1 }
 0x3a0   : >> { %v9524_v17 = vpop.f32.mrf.mxu0  ;;  %v12954_v8 = vadd.f32 %v5190_v46, %v4903_v49  ;;  %v4918_v37 = vadd.f32 %v9486_v29, %v12896_v62 }
 0x3a1   : >> { %v4912_v19 = vpop.f32.mrf.mxu1 }
 0x3a2   : >> { %v5200_v44 = vpop.f32.mrf.mxu0  ;;  %v12957_v10 = vadd.f32 %v9524_v17, %v4918_v37  ;;  %v4913_v16 = vadd.f32 %v4912_v19, %v12900_v38 }
 0x3a3   : >> { %v9529_v24 = vpop.f32.mrf.mxu1 }
 0x3a4   : >> { %v9567_v23 = vpop.f32.mrf.mxu0  ;;  %v12960_v21 = vadd.f32 %v5200_v44, %v4913_v16  ;;  %v5522_v35 = vadd.f32 %v9529_v24, %v12902_v51 }
 0x3a5   : >> { %v5402_v26 = vpop.f32.mrf.mxu1 }
 0x3a6   : >> { %v5714_v5 = vpop.f32.mrf.mxu0  ;;  %v12963_v25 = vadd.f32 %v9567_v23, %v5522_v35  ;;  %v5521_v28 = vadd.f32 %v5402_v26, %v12904_v2 }
 0x3a7   : >> { %v9532_v30 = vpop.f32.mrf.mxu1 }
 0x3a8   : >> { %v9570_v62 = vpop.f32.mrf.mxu0  ;;  %v12966_v34 = vadd.f32 %v5714_v5, %v5521_v28  ;;  %v5524_v55 = vadd.f32 %v9532_v30, %v12906_v18 }
 0x3a9   : >> { %v5412_v61 = vpop.f32.mrf.mxu1 }
 0x3aa   : >> { %v5724_v38 = vpop.f32.mrf.mxu0  ;;  %v12969_v47 = vadd.f32 %v9570_v62, %v5524_v55  ;;  %v5523_v56 = vadd.f32 %v5412_v61, %v12908_v60 }
 0x3ab   : >> { %v9535_v45 = vpop.f32.mrf.mxu1 }
 0x3ac   : >> { %v9573_v51 = vpop.f32.mrf.mxu0  ;;  %v12972_v43 = vadd.f32 %v5724_v38, %v5523_v56  ;;  %v5526_v7 = vadd.f32 %v9535_v45, %v12910_v1 }
 0x3ad   : >> { %v5422_v11 = vpop.f32.mrf.mxu1 }
 0x3ae   : >> { %v5734_v2 = vpop.f32.mrf.mxu0  ;;  %v12975_v0 = vadd.f32 %v9573_v51, %v5526_v7  ;;  %v5525_v22 = vadd.f32 %v5422_v11, %v12912_v54 }
 0x3af   : >> { %v9538_v39 = vpop.f32.mrf.mxu1 }
 0x3b0   : >> { %v9576_v18 = vpop.f32.mrf.mxu0  ;;  %v12978_v53 = vadd.f32 %v5734_v2, %v5525_v22  ;;  %v5528_v33 = vadd.f32 %v9538_v39, %v12914_v36 }
 0x3b1   : >> { %v5432_v13 = vpop.f32.mrf.mxu1 }
 0x3b2   : >> { %v5744_v60 = vpop.f32.mrf.mxu0  ;;  %v12981_v3 = vadd.f32 %v9576_v18, %v5528_v33  ;;  %v5527_v41 = vadd.f32 %v5432_v13, %v12916_v15 }
 0x3b3   : >> { %v9541_v27 = vpop.f32.mrf.mxu1 }
 0x3b4   : >> { %v9579_v1 = vpop.f32.mrf.mxu0  ;;  %v12984_v12 = vadd.f32 %v5744_v60, %v5527_v41  ;;  %v5530_v48 = vadd.f32 %v9541_v27, %v12918_v6 }
 0x3b5   : >> { %v5442_v59 = vpop.f32.mrf.mxu1 }
 0x3b6   : >> { %v5754_v54 = vpop.f32.mrf.mxu0  ;;  %v12987_v52 = vadd.f32 %v9579_v1, %v5530_v48  ;;  %v5529_v46 = vadd.f32 %v5442_v59, %v12920_v20 }
 0x3b7   : >> { %v9544_v49 = vpop.f32.mrf.mxu1 }
 0x3b8   : >> { %v9582_v36 = vpop.f32.mrf.mxu0  ;;  %v12990_v29 = vadd.f32 %v5754_v54, %v5529_v46  ;;  %v5532_v17 = vadd.f32 %v9544_v49, %v12922_v63 }
 0x3b9   : >> { %v5452_v37 = vpop.f32.mrf.mxu1 }
 0x3ba   : >> { %v5764_v15 = vpop.f32.mrf.mxu0  ;;  %v12993_v19 = vadd.f32 %v9582_v36, %v5532_v17  ;;  %v5531_v44 = vadd.f32 %v5452_v37, %v12924_v50 }
 0x3bb   : >> { %v9547_v16 = vpop.f32.mrf.mxu1 }
 0x3bc   : >> { %v9585_v6 = vpop.f32.mrf.mxu0  ;;  %v12996_v24 = vadd.f32 %v5764_v15, %v5531_v44  ;;  %v5534_v23 = vadd.f32 %v9547_v16, %v12927_v57 }
 0x3bd   : >> { %v5462_v35 = vpop.f32.mrf.mxu1 }
 0x3be   : >> { %v5774_v20 = vpop.f32.mrf.mxu0  ;;  %v12999_v26 = vadd.f32 %v9585_v6, %v5534_v23  ;;  %v5533_v5 = vadd.f32 %v5462_v35, %v12930_v58 }
 0x3bf   : >> { %v9550_v28 = vpop.f32.mrf.mxu1 }
 0x3c0   : >> { %v9588_v63 = vpop.f32.mrf.mxu0  ;;  %v13002_v30 = vadd.f32 %v5774_v20, %v5533_v5  ;;  %v5536_v62 = vadd.f32 %v9550_v28, %v12933_v32 }
 0x3c1   : >> { %v5472_v55 = vpop.f32.mrf.mxu1 }
 0x3c2   : >> { %v5784_v50 = vpop.f32.mrf.mxu0  ;;  %v13005_v61 = vadd.f32 %v9588_v63, %v5536_v62  ;;  %v5535_v38 = vadd.f32 %v5472_v55, %v12936_v4 }
 0x3c3   : >> { %v9553_v56 = vpop.f32.mrf.mxu1 }
 0x3c4   : >> { %v9591_v57 = vpop.f32.mrf.mxu0  ;;  %v13008_v45 = vadd.f32 %v5784_v50, %v5535_v38  ;;  %v5538_v51 = vadd.f32 %v9553_v56, %v12939_v40 }
 0x3c5   : >> { %v5482_v7 = vpop.f32.mrf.mxu1 }
 0x3c6   : >> { %v5794_v58 = vpop.f32.mrf.mxu0  ;;  %v13011_v11 = vadd.f32 %v9591_v57, %v5538_v51  ;;  %v5537_v2 = vadd.f32 %v5482_v7, %v12942_v42 }
 0x3c7   : >> { %v9556_v22 = vpop.f32.mrf.mxu1 }
 0x3c8   : >> { %14290 = vst [vmem:[#allocation46_spill] sm:$0xff] %v13011_v11  ;;  %v9594_v32 = vpop.f32.mrf.mxu0  ;;  %v13014_v39 = vadd.f32 %v5794_v58, %v5537_v2  ;;  %v5540_v18 = vadd.f32 %v9556_v22, %v12945_v14 }
 0x3c9   : >> { %v5492_v33 = vpop.f32.mrf.mxu1 }
 0x3ca   : >> { %14291 = vst [vmem:[#allocation47_spill] sm:$0xff] %v13014_v39  ;;  %v5804_v4 = vpop.f32.mrf.mxu0  ;;  %v13017_v13 = vadd.f32 %v9594_v32, %v5540_v18  ;;  %v5539_v60 = vadd.f32 %v5492_v33, %v12948_v9 }
 0x3cb   : >> { %v9559_v41 = vpop.f32.mrf.mxu1 }
 0x3cc   : >> { %14292 = vst [vmem:[#allocation48_spill] sm:$0xff] %v13017_v13  ;;  %v9597_v40 = vpop.f32.mrf.mxu0  ;;  %v13020_v27 = vadd.f32 %v5804_v4, %v5539_v60  ;;  %v5542_v1 = vadd.f32 %v9559_v41, %v12951_v31 }
 0x3cd   : >> { %v5502_v48 = vpop.f32.mrf.mxu1 }
 0x3ce   : >> { %14293 = vst [vmem:[#allocation49_spill] sm:$0xff] %v13020_v27  ;;  %v5814_v42 = vpop.f32.mrf.mxu0  ;;  %v13023_v59 = vadd.f32 %v9597_v40, %v5542_v1  ;;  %v5541_v54 = vadd.f32 %v5502_v48, %v12954_v8 }
 0x3cf   : >> { %v9562_v46 = vpop.f32.mrf.mxu1 }
 0x3d0   : >> { %14294 = vst [vmem:[#allocation50_spill] sm:$0xff] %v13023_v59  ;;  %v9600_v14 = vpop.f32.mrf.mxu0  ;;  %v13026_v49 = vadd.f32 %v5814_v42, %v5541_v54  ;;  %v5544_v36 = vadd.f32 %v9562_v46, %v12957_v10 }
 0x3d1   : >> { %v5512_v17 = vpop.f32.mrf.mxu1 }
 0x3d2   : >> { %14295 = vst [vmem:[#allocation51_spill] sm:$0xff] %v13026_v49  ;;  %v5824_v9 = vpop.f32.mrf.mxu0  ;;  %v13029_v37 = vadd.f32 %v9600_v14, %v5544_v36  ;;  %v5543_v15 = vadd.f32 %v5512_v17, %v12960_v21 }
 0x3d3   : >> { %v9605_v44 = vpop.f32.mrf.mxu1 }
 0x3d4   : >> { %14296 = vst [vmem:[#allocation52_spill] sm:$0xff] %v13029_v37  ;;  %v9643_v31 = vpop.f32.mrf.mxu0  ;;  %v13032_v16 = vadd.f32 %v5824_v9, %v5543_v15  ;;  %v6146_v49 = vadd.f32 %v9605_v44, %v12963_v25 }
 0x3d5   : >> { %v6026_v6 = vpop.f32.mrf.mxu1 }
 0x3d6   : >> { %14297 = vst [vmem:[#allocation53_spill] sm:$0xff] %v13032_v16  ;;  %v6338_v23 = vpop.f32.mrf.mxu0  ;;  %v6145_v59 = vadd.f32 %v6026_v6, %v12966_v34  ;;  %v6458_v25 = vadd.f32 %v9643_v31, %v6146_v49 }
 0x3d7   : >> { %v9608_v35 = vpop.f32.mrf.mxu1 }
 0x3d8   : >> { %v9646_v8 = vpop.f32.mrf.mxu0  ;;  %v6148_v27 = vadd.f32 %v9608_v35, %v12969_v47  ;;  %v6457_v44 = vadd.f32 %v6338_v23, %v6145_v59 }
 0x3d9   : >> { %v6036_v20 = vpop.f32.mrf.mxu1 }
 0x3da   : >> { %v6348_v5 = vpop.f32.mrf.mxu0  ;;  %v6460_v6 = vadd.f32 %v9646_v8, %v6148_v27 }
 0x3db   : >> { %v9611_v28 = vpop.f32.mrf.mxu1 }
 0x3dc   : >> { %v9649_v63 = vpop.f32.mrf.mxu0 }
 0x3dd   : >> { %v6046_v62 = vpop.f32.mrf.mxu1 }
 0x3de   : >> { %v6358_v10 = vpop.f32.mrf.mxu0  ;;  %v6149_v39 = vadd.f32 %v6046_v62, %v12978_v53 }
 0x3df   : >> { %v9614_v55 = vpop.f32.mrf.mxu1 }
 0x3e0   : >> { %v9652_v50 = vpop.f32.mrf.mxu0 }
 0x3e1   : >> { %v6056_v38 = vpop.f32.mrf.mxu1 }
 0x3e2   : >> { %v6368_v56 = vpop.f32.mrf.mxu0  ;;  %v6151_v34 = vadd.f32 %v6056_v38, %v12984_v12 }
 0x3e3   : >> { %v9617_v57 = vpop.f32.mrf.mxu1 }
 0x3e4   : >> { %v9655_v21 = vpop.f32.mrf.mxu0  ;;  %v6154_v47 = vadd.f32 %v9617_v57, %v12987_v52  ;;  %v13075_v31 = vadd.f32 %v6368_v56, %v6151_v34 }
 0x3e5   : >> { %v6066_v51 = vpop.f32.mrf.mxu1 }
 0x3e6   : >> { %v6378_v7 = vpop.f32.mrf.mxu0  ;;  %v6153_v35 = vadd.f32 %v6066_v51, %v12990_v29  ;;  %v13077_v23 = vadd.f32 %v9655_v21, %v6154_v47 }
 0x3e7   : >> { %v9620_v58 = vpop.f32.mrf.mxu1 }
 0x3e8   : >> { %v9658_v2 = vpop.f32.mrf.mxu0 }
 0x3e9   : >> { %v6076_v22 = vpop.f32.mrf.mxu1 }
 0x3ea   : >> { %v6388_v32 = vpop.f32.mrf.mxu0  ;;  %v6155_v12 = vadd.f32 %v6076_v22, %v12996_v24 }
 0x3eb   : >> { %v9623_v18 = vpop.f32.mrf.mxu1 }
 0x3ec   : >> { %v9661_v33 = vpop.f32.mrf.mxu0  ;;  %v6158_v52 = vadd.f32 %v9623_v18, %v12999_v26  ;;  %v14304_v26 = vld [vmem:[#allocation47_spill] sm:$0xff] }
 0x3ed   : >> { %v6086_v4 = vpop.f32.mrf.mxu1 }
 0x3ee   : >> { %v6398_v60 = vpop.f32.mrf.mxu0  ;;  %v6157_v29 = vadd.f32 %v6086_v4, %v13002_v30  ;;  %v13094_v57 = vadd.f32 %v9661_v33, %v6158_v52  ;;  %v14307_v4 = vld [vmem:[#allocation8_spill] sm:$0xff] }
 0x3ef   : >> { %v9626_v41 = vpop.f32.mrf.mxu1  ;;  %vm14308_vm11 = vcmp.lt.s32.totalorder %v14307_v4, 16 }
 0x3f0   : >> { %v9664_v40 = vpop.f32.mrf.mxu0  ;;  %v13096_v21 = vadd.f32 %v6398_v60, %v6157_v29 }
 0x3f1   : >> { %v6096_v1 = vpop.f32.mrf.mxu1 }
 0x3f2   : >> { %v6408_v48 = vpop.f32.mrf.mxu0 }
 0x3f3   : >> { %v9629_v42 = vpop.f32.mrf.mxu1 }
 0x3f4   : >> { %v13034_v54 = vpop.f32.mrf.mxu0 }
 0x3f5   : >> { %14298 = vst [vmem:[#allocation54_spill] sm:$0xff] %v13034_v54  ;;  %v6106_v46 = vpop.f32.mrf.mxu1 }
 0x3f6   : >> { %v13036_v14 = vpop.f32.mrf.mxu0 }
 0x3f7   : >> { %14299 = vst [vmem:[#allocation55_spill] sm:$0xff] %v13036_v14  ;;  %v9632_v36 = vpop.f32.mrf.mxu1  ;;  %v6147_v14 = vadd.f32 %v6036_v20, %v12972_v43  ;;  %v6156_v43 = vadd.f32 %v9620_v58, %v12993_v19  ;;  %v6160_v19 = vadd.f32 %v9626_v41, %v13005_v61 }
 0x3f8   : >> { %v13038_v17 = vpop.f32.mrf.mxu0 }
 0x3f9   : >> { %14300 = vst [vmem:[#allocation56_spill] sm:$0xff] %v13038_v17  ;;  %v6116_v9 = vpop.f32.mrf.mxu1  ;;  %v6150_v17 = vadd.f32 %v9611_v28, %v12975_v0  ;;  %v13067_v28 = vadd.f32 %v6358_v10, %v6149_v39  ;;  %v6159_v39 = vadd.f32 %v6096_v1, %v13008_v45  ;;  %v13082_v24 = vadd.f32 %v9658_v2, %v6156_v43 }
 0x3fa   : >> { %v13040_v15 = vpop.f32.mrf.mxu0  ;;  %v6161_v10 = vadd.f32 %v6106_v46, %v14304_v26  ;;  %v13098_v51 = vadd.f32 %v9664_v40, %v6160_v19  ;;  %v14312_v46 = vld [vmem:[#allocation50_spill] sm:$0xff] }
 0x3fb   : >> { %14301 = vst [vmem:[#allocation57_spill] sm:$0xff] %v13040_v15  ;;  %v9635_v16 = vpop.f32.mrf.mxu1  ;;  %v6152_v15 = vadd.f32 %v9614_v55, %v12981_v3  ;;  %v6459_v3 = vadd.f32 %v6348_v5, %v6147_v14  ;;  %v6462_v20 = vadd.f32 %v9649_v63, %v6150_v17  ;;  %v13080_v5 = vadd.f32 %v6378_v7, %v6153_v35  ;;  %v14303_v63 = vld [vmem:[#allocation46_spill] sm:$0xff]  ;;  %v14306_v7 = vld [vmem:[#allocation49_spill] sm:$0xff] }
 0x3fc   : >> { %v13042_v37 = vpop.f32.mrf.mxu0  ;;  %v6162_v62 = vadd.f32 %v9629_v42, %v14303_v63  ;;  %v13091_v55 = vadd.f32 %v6388_v32, %v6155_v12  ;;  %v6163_v58 = vadd.f32 %v6116_v9, %v14306_v7  ;;  %v13101_v18 = vadd.f32 %v6408_v48, %v6159_v39  ;;  %v14310_v33 = vld [vmem:[#allocation54_spill] sm:$0xff]  ;;  %v14328_v7 = vld [vmem:[#allocation51_spill] sm:$0xff] }
 0x3fd   : >> { %14302 = vst [vmem:[#allocation58_spill] sm:$0xff] %v13042_v37  ;;  %v13047_v13 = vpop.f32.mrf.mxu1  ;;  %v13070_v49 = vadd.f32 %v9652_v50, %v6152_v15  ;;  %v14305_v50 = vld [vmem:[#allocation48_spill] sm:$0xff]  ;;  %v6166_v14 = vadd.f32 %v9635_v16, %v14312_v46 }
 0x3fe   : >> { %v13049_v54 = vpop.f32.mrf.mxu0  ;;  %v6164_v38 = vadd.f32 %v9632_v36, %v14305_v50  ;;  %v13108_v42 = vadd.f32 %v14310_v33, %v6162_v62  ;;  %v14311_v60 = vld [vmem:[#allocation55_spill] sm:$0xff] }
 0x3ff   : >> { %v13055_v11 = vpop.f32.mrf.mxu1  ;;  %v13111_v40 = vadd.f32 %v14311_v60, %v6161_v10  ;;  %v14331_v60 = vld [vmem:[#allocation12_spill] sm:$0xff] }
 0x400   : >> { %v13057_v37 = vpop.f32.mrf.mxu0  ;;  %v14313_v9 = vld [vmem:[#allocation56_spill] sm:$0xff]  ;;  %vm14332_vm7 = vcmp.lt.s32.totalorder %v14331_v60, 16 }
 0x401   : >> { %v13063_v0 = vpop.f32.mrf.mxu1  ;;  %v13115_v15 = vadd.f32 %v14313_v9, %v6164_v38  ;;  %v14325_v38 = vld [vmem:[#allocation9_spill] sm:$0xff] }
 0x402   : >> { %v13065_v53 = vpop.f32.mrf.mxu0  ;;  %vm14326_vm6 = vcmp.lt.s32.totalorder %v14325_v38, 16 }
 0x403   : >> { %v9681_v27 = vpop.f32.mrf.mxu1 }
 0x404   : >> { %v9719_v59 = vpop.f32.mrf.mxu0  ;;  %v6770_v8 = vadd.f32 %v9681_v27, %v6458_v25  ;;  %v14314_v25 = vld [vmem:[#allocation7_spill] sm:$0xff]  ;;  %v14319_v27 = vld [vmem:[#allocation10_spill] sm:$0xff] }
 0x405   : >> { %v6650_v30 = vpop.f32.mrf.mxu1  ;;  %vm14315_vm4 = vcmp.lt.s32.totalorder %v14314_v25, 16  ;;  %vm14320_vm10 = vcmp.lt.s32.totalorder %v14319_v27, 16 }
 0x406   : >> { %v6962_v61 = vpop.f32.mrf.mxu0  ;;  %v7082_v45 = vadd.f32 %v9719_v59, %v6770_v8  ;;  %v6769_v56 = vadd.f32 %v6650_v30, %v6457_v44 }
 0x407   : >> { %v9684_v2 = vpop.f32.mrf.mxu1 }
 0x408   : >> { %v9722_v22 = vpop.f32.mrf.mxu0  ;;  %v7154_v32 = vsel %vm14308_vm11, %v7082_v45, 0.0  ;;  %7179 = vst.msk [vmem:[%s13089_s22 + $0x8] sm:$0xff] %vm14309_vm9, %v7082_v45  ;;  %v7081_v41 = vadd.f32 %v6962_v61, %v6769_v56  ;;  %v6772_v1 = vadd.f32 %v9684_v2, %v6460_v6  ;;  %v14317_v6 = vld [vmem:[#allocation57_spill] sm:$0xff]  ;;  %v14329_v2 = vld [vmem:[#allocation52_spill] sm:$0xff]  ;;  %vm14336_vm11 = vmmov %vm14078_vm0 }
 0x409   : >> { %v7257_v36 = vmul.f32 %v7154_v32, %v7082_v45  ;;  %v6660_v17 = vpop.f32.mrf.mxu1  ;;  %v13122_v35 = vadd.f32 %v14317_v6, %v6163_v58  ;;  %v7203_v43 = vsel %vm14318_vm2, %v7154_v32, 0.0  ;;  %v6165_v58 = vadd.f32 %v13047_v13, %v14328_v7  ;;  %vm14337_vm9 = vmmov %vm14078_vm0  ;;  %v14348_v7 = vld [vmem:[#allocation13_spill] sm:$0xff] }
 0x40a   : >> { %v6972_v48 = vpop.f32.mrf.mxu0  ;;  %v7153_v34 = vsel %vm14315_vm4, %v7081_v41, 0.0  ;;  %7178 = vst.msk [vmem:[%s13089_s22] sm:$0xff] %vm14316_vm13, %v7081_v41  ;;  %v7084_v47 = vadd.f32 %v9722_v22, %v6772_v1  ;;  %v6771_v44 = vadd.f32 %v6660_v17, %v6459_v3  ;;  %v14322_v3 = vld [vmem:[#allocation58_spill] sm:$0xff]  ;;  %v6168_v22 = vadd.f32 %v13055_v11, %v14329_v2  ;;  %vm14340_vm13 = vmmov %vm14078_vm0 }
 0x40b   : >> { %v7202_v16 = vsel %vm14078_vm0, %v7153_v34, 0.0  ;;  %v7256_v12 = vmul.f32 %v7153_v34, %v7081_v41  ;;  %v9687_v52 = vpop.f32.mrf.mxu1  ;;  %v13131_v63 = vadd.f32 %v14322_v3, %v6166_v14  ;;  %v7281_v62 = vsel %vm14323_vm5, %v7257_v36, 0.0  ;;  %v14334_v36 = vld [vmem:[#allocation53_spill] sm:$0xff]  ;;  %vm14341_vm2 = vmmov %vm14078_vm0 }
 0x40c   : >> { %v9725_v29 = vpop.f32.mrf.mxu0  ;;  %v7204_v19 = vadd.f32 %v7203_v43, %v7202_v16  ;;  %v7156_v59 = vsel %vm14320_vm10, %v7084_v47, 0.0  ;;  %7181 = vst.msk [vmem:[%s13089_s22 + $0x18] sm:$0xff] %vm14321_vm15, %v7084_v47  ;;  %v7083_v39 = vadd.f32 %v6972_v48, %v6771_v44  ;;  %v6774_v8 = vadd.f32 %v9687_v52, %v6462_v20  ;;  %vm14344_vm10 = vmmov %vm14330_vm1 }
 0x40d   : >> { %v7280_v26 = vsel %vm14324_vm14, %v7256_v12, 0.0  ;;  %v7259_v10 = vmul.f32 %v7156_v59, %v7084_v47  ;;  %v6670_v30 = vpop.f32.mrf.mxu1  ;;  %v6167_v13 = vadd.f32 %v13063_v0, %v14334_v36  ;;  %v7207_v11 = vsel %vm14335_vm8, %v7156_v59, 0.0  ;;  %v14338_v47 = vld [vmem:[#allocation11_spill] sm:$0xff]  ;;  %v14342_v59 = vld [vmem:[#allocation14_spill] sm:$0xff]  ;;  %vm14345_vm15 = vmmov %vm14330_vm1 }
 0x40e   : >> { %v6982_v61 = vpop.f32.mrf.mxu0  ;;  %v7282_v50 = vadd.f32 %v7281_v62, %v7280_v26  ;;  %v7155_v45 = vsel %vm14326_vm6, %v7083_v39, 0.0  ;;  %7180 = vst.msk [vmem:[%s13089_s22 + $0x10] sm:$0xff] %vm14327_vm12, %v7083_v39  ;;  %v7086_v56 = vadd.f32 %v9725_v29, %v6774_v8  ;;  %v6773_v20 = vadd.f32 %v6670_v30, %v13067_v28  ;;  %vm14346_vm5 = vmmov %vm14330_vm1 }
 0x40f   : >> { %v7205_v4 = vsel %vm14330_vm1, %v7155_v45, 0.0  ;;  %v7258_v32 = vmul.f32 %v7155_v45, %v7083_v39  ;;  %v9690_v41 = vpop.f32.mrf.mxu1  ;;  %v7285_v17 = vsel %vm14336_vm11, %v7259_v10, 0.0  ;;  %vm14339_vm4 = vcmp.lt.s32.totalorder %v14338_v47, 16  ;;  %vm14347_vm14 = vmmov %vm14330_vm1 }
 0x410   : >> { %v9728_v1 = vpop.f32.mrf.mxu0  ;;  %v7206_v33 = vadd.f32 %v7205_v4, %v7204_v19  ;;  %v7158_v46 = vsel %vm14332_vm7, %v7086_v56, 0.0  ;;  %7183 = vst.msk [vmem:[%s13089_s22 + $0x28] sm:$0xff] %vm14333_vm3, %v7086_v56  ;;  %v7085_v14 = vadd.f32 %v6982_v61, %v6773_v20  ;;  %v6776_v28 = vadd.f32 %v9690_v41, %v13070_v49  ;;  %vm14350_vm12 = vmmov %vm14330_vm1 }
 0x411   : >> { %v7283_v48 = vsel %vm14337_vm9, %v7258_v32, 0.0  ;;  %v6680_v9 = vpop.f32.mrf.mxu1  ;;  %v7261_v43 = vmul.f32 %v7158_v46, %v7086_v56  ;;  %vm14343_vm0 = vcmp.lt.s32.totalorder %v14342_v59, 16  ;;  %v7211_v3 = vsel %vm14345_vm15, %v7158_v46, 0.0  ;;  %vm14353_vm3 = vmmov %vm14330_vm1  ;;  %v14366_v59 = vld [vmem:[#allocation17_spill] sm:$0xff] }
 0x412   : >> { %v6992_v25 = vpop.f32.mrf.mxu0  ;;  %v7284_v34 = vadd.f32 %v7283_v48, %v7282_v50  ;;  %v7157_v44 = vsel %vm14339_vm4, %v7085_v14, 0.0  ;;  %7182 = vst.msk [vmem:[%s13089_s22 + $0x20] sm:$0xff] %vm14340_vm13, %v7085_v14  ;;  %v7208_v6 = vadd.f32 %v7207_v11, %v7206_v33  ;;  %v7088_v49 = vadd.f32 %v9728_v1, %v6776_v28  ;;  %vm14354_vm8 = vmmov %vm14330_vm1 }
 0x413   : >> { %v7209_v0 = vsel %vm14341_vm2, %v7157_v44, 0.0  ;;  %v7260_v16 = vmul.f32 %v7157_v44, %v7085_v14  ;;  %v6775_v12 = vadd.f32 %v6680_v9, %v13075_v31  ;;  %v9693_v52 = vpop.f32.mrf.mxu1  ;;  %v13170_v56 = vadd.f32 %v13049_v54, %v6165_v58  ;;  %vm14355_vm11 = vmmov %vm14330_vm1 }
 0x414   : >> { %v9731_v29 = vpop.f32.mrf.mxu0  ;;  %v7210_v19 = vadd.f32 %v7209_v0, %v7208_v6  ;;  %v7286_v27 = vadd.f32 %v7285_v17, %v7284_v34  ;;  %v7160_v39 = vsel %vm14343_vm0, %v7088_v49, 0.0  ;;  %7185 = vst.msk [vmem:[%s13089_s22 + $0x38] sm:$0xff] %vm14344_vm10, %v7088_v49  ;;  %v6778_v8 = vadd.f32 %v9693_v52, %v13077_v23  ;;  %vm14356_vm9 = vmmov %vm14330_vm1 }
 0x415   : >> { %v7287_v62 = vsel %vm14346_vm5, %v7260_v16, 0.0  ;;  %v7263_v26 = vmul.f32 %v7160_v39, %v7088_v49  ;;  %v7087_v10 = vadd.f32 %v6992_v25, %v6775_v12  ;;  %v6690_v30 = vpop.f32.mrf.mxu1  ;;  %v13173_v20 = vadd.f32 %v13057_v37, %v6168_v22  ;;  %v14357_v25 = vld [vmem:[#allocation15_spill] sm:$0xff]  ;;  %vm14359_vm13 = vmmov %vm14330_vm1 }
 0x416   : >> { %v7002_v31 = vpop.f32.mrf.mxu0  ;;  %v7288_v61 = vadd.f32 %v7287_v62, %v7286_v27  ;;  %v7212_v50 = vadd.f32 %v7211_v3, %v7210_v19  ;;  %v7090_v38 = vadd.f32 %v9731_v29, %v6778_v8  ;;  %v6777_v45 = vadd.f32 %v6690_v30, %v13080_v5  ;;  %v14351_v5 = vld [vmem:[#allocation16_spill] sm:$0xff]  ;;  %vm14360_vm2 = vmmov %vm14330_vm1  ;;  %v14363_v19 = vld [vmem:[#allocation18_spill] sm:$0xff] }
 0x417   : >> { %v7289_v23 = vsel %vm14347_vm14, %v7261_v43, 0.0  ;;  %vm14349_vm6 = vcmp.lt.s32.totalorder %v14348_v7, 16  ;;  %7184 = vst.msk [vmem:[%s13089_s22 + $0x30] sm:$0xff] %vm14350_vm12, %v7087_v10  ;;  %v9696_v4 = vpop.f32.mrf.mxu1  ;;  %vm14352_vm7 = vcmp.lt.s32.totalorder %v14351_v5, 16  ;;  %v13186_v37 = vadd.f32 %v13065_v53, %v6167_v13  ;;  %vm14361_vm0 = vmmov %vm14330_vm1 }
 0x418   : >> { %v7159_v2 = vsel %vm14349_vm6, %v7087_v10, 0.0  ;;  %v9734_v32 = vpop.f32.mrf.mxu0  ;;  %v7290_v33 = vadd.f32 %v7289_v23, %v7288_v61  ;;  %v7162_v54 = vsel %vm14352_vm7, %v7090_v38, 0.0  ;;  %7187 = vst.msk [vmem:[%s13089_s22 + $0x48] sm:$0xff] %vm14353_vm3, %v7090_v38  ;;  %v7215_v58 = vsel %vm14354_vm8, %v7160_v39, 0.0  ;;  %vm14362_vm10 = vmmov %vm14361_vm0 }
 0x419   : >> { %v7213_v41 = vsel %vm14330_vm1, %v7159_v2, 0.0  ;;  %v7262_v1 = vmul.f32 %v7159_v2, %v7087_v10  ;;  %v7089_v60 = vadd.f32 %v7002_v31, %v6777_v45  ;;  %v6700_v46 = vpop.f32.mrf.mxu1  ;;  %v7293_v28 = vsel %vm14355_vm11, %v7263_v26, 0.0  ;;  %vm14365_vm5 = vmmov %vm14361_vm0 }
 0x41a   : >> { %v7214_v22 = vadd.f32 %v7213_v41, %v7212_v50  ;;  %v7012_v14 = vpop.f32.mrf.mxu0  ;;  %v6780_v11 = vadd.f32 %v9696_v4, %v13082_v24  ;;  %v6779_v17 = vadd.f32 %v6700_v46, %v13091_v55  ;;  %v7265_v9 = vmul.f32 %v7162_v54, %v7090_v38  ;;  %vm14368_vm6 = vmmov %vm14361_vm0  ;;  %v14373_v41 = vld [vmem:[#allocation20_spill] sm:$0xff] }
 0x41b   : >> { %v7291_v36 = vsel %vm14356_vm9, %v7262_v1, 0.0  ;;  %vm14358_vm4 = vcmp.lt.s32.totalorder %v14357_v25, 16  ;;  %7186 = vst.msk [vmem:[%s13089_s22 + $0x40] sm:$0xff] %vm14359_vm13, %v7089_v60  ;;  %v9699_v34 = vpop.f32.mrf.mxu1  ;;  %v7219_v24 = vsel %vm14361_vm0, %v7162_v54, 0.0  ;;  %vm14364_vm15 = vcmp.lt.s32.totalorder %v14363_v19, 16  ;;  %vm14369_vm12 = vmmov %vm14361_vm0 }
 0x41c   : >> { %v7292_v48 = vadd.f32 %v7291_v36, %v7290_v33  ;;  %v7161_v53 = vsel %vm14358_vm4, %v7089_v60, 0.0  ;;  %v7216_v13 = vadd.f32 %v7215_v58, %v7214_v22  ;;  %v9737_v47 = vpop.f32.mrf.mxu0  ;;  %v7092_v49 = vadd.f32 %v9734_v32, %v6780_v11  ;;  %vm14370_vm1 = vmmov %vm14361_vm0  ;;  %v14376_v33 = vld [vmem:[#allocation19_spill] sm:$0xff] }
 0x41d   : >> { %v7217_v44 = vsel %vm14360_vm2, %v7161_v53, 0.0  ;;  %v7264_v6 = vmul.f32 %v7161_v53, %v7089_v60  ;;  %v7091_v43 = vadd.f32 %v7012_v14, %v6779_v17  ;;  %v6782_v16 = vadd.f32 %v9699_v34, %v13094_v57  ;;  %v6710_v12 = vpop.f32.mrf.mxu1  ;;  %vm14371_vm7 = vmmov %vm14361_vm0 }
 0x41e   : >> { %v7218_v55 = vadd.f32 %v7217_v44, %v7216_v13  ;;  %v7294_v0 = vadd.f32 %v7293_v28, %v7292_v48  ;;  %v7022_v52 = vpop.f32.mrf.mxu0  ;;  %v7164_v27 = vsel %vm14364_vm15, %v7092_v49, 0.0  ;;  %7189 = vst.msk [vmem:[%s13089_s22 + $0x58] sm:$0xff] %vm14365_vm5, %v7092_v49  ;;  %vm14367_vm14 = vcmp.lt.s32.totalorder %v14366_v59, 16  ;;  %vm14372_vm3 = vmmov %vm14361_vm0 }
 0x41f   : >> { %v7295_v29 = vsel %vm14362_vm10, %v7264_v6, 0.0  ;;  %v7163_v39 = vsel %vm14367_vm14, %v7091_v43, 0.0  ;;  %7188 = vst.msk [vmem:[%s13089_s22 + $0x50] sm:$0xff] %vm14368_vm6, %v7091_v43  ;;  %v6781_v8 = vadd.f32 %v6710_v12, %v13096_v21  ;;  %v7297_v3 = vsel %vm14369_vm12, %v7265_v9, 0.0  ;;  %v9702_v10 = vpop.f32.mrf.mxu1  ;;  %vm14375_vm11 = vmmov %vm14361_vm0  ;;  %v14385_v6 = vld [vmem:[#allocation21_spill] sm:$0xff] }
 0x420   : >> { %v7296_v62 = vadd.f32 %v7295_v29, %v7294_v0  ;;  %v7267_v57 = vmul.f32 %v7164_v27, %v7092_v49  ;;  %v7220_v26 = vadd.f32 %v7219_v24, %v7218_v55  ;;  %v9740_v30 = vpop.f32.mrf.mxu0  ;;  %v7221_v31 = vsel %vm14370_vm1, %v7163_v39, 0.0  ;;  %vm14378_vm4 = vmmov %vm14361_vm0 }
 0x421   : >> { %v7266_v61 = vmul.f32 %v7163_v39, %v7091_v43  ;;  %v7094_v50 = vadd.f32 %v9737_v47, %v6782_v16  ;;  %v7093_v38 = vadd.f32 %v7022_v52, %v6781_v8  ;;  %v7223_v45 = vsel %vm14371_vm7, %v7164_v27, 0.0  ;;  %v6720_v2 = vpop.f32.mrf.mxu1  ;;  %vm14379_vm13 = vmmov %vm14361_vm0  ;;  %v14382_v47 = vld [vmem:[#allocation22_spill] sm:$0xff] }
 0x422   : >> { %v7222_v23 = vadd.f32 %v7221_v31, %v7220_v26  ;;  %v7298_v7 = vadd.f32 %v7297_v3, %v7296_v62  ;;  %v6784_v21 = vadd.f32 %v9702_v10, %v13098_v51  ;;  %v7032_v4 = vpop.f32.mrf.mxu0  ;;  %vm14374_vm8 = vcmp.lt.s32.totalorder %v14373_v41, 16  ;;  %vm14380_vm2 = vmmov %vm14361_vm0  ;;  %v14392_v26 = vld [vmem:[#allocation24_spill] sm:$0xff] }
 0x423   : >> { %v7299_v32 = vsel %vm14372_vm3, %v7266_v61, 0.0  ;;  %v7166_v1 = vsel %vm14374_vm8, %v7094_v50, 0.0  ;;  %7191 = vst.msk [vmem:[%s13089_s22 + $0x68] sm:$0xff] %vm14375_vm11, %v7094_v50  ;;  %vm14377_vm9 = vcmp.lt.s32.totalorder %v14376_v33, 16  ;;  %v6783_v54 = vadd.f32 %v6720_v2, %v13101_v18  ;;  %v9705_v46 = vpop.f32.mrf.mxu1  ;;  %vm14381_vm10 = vmmov %vm14361_vm0 }
 0x424   : >> { %v7165_v5 = vsel %vm14377_vm9, %v7093_v38, 0.0  ;;  %7190 = vst.msk [vmem:[%s13089_s22 + $0x60] sm:$0xff] %vm14378_vm4, %v7093_v38  ;;  %v7301_v58 = vsel %vm14379_vm13, %v7267_v57, 0.0  ;;  %v7300_v22 = vadd.f32 %v7299_v32, %v7298_v7  ;;  %v7269_v51 = vmul.f32 %v7166_v1, %v7094_v50  ;;  %v9743_v14 = vpop.f32.mrf.mxu0  ;;  %vm14384_vm5 = vmmov %vm14361_vm0 }
 0x425   : >> { %v7224_v60 = vadd.f32 %v7223_v45, %v7222_v23  ;;  %v7225_v28 = vsel %vm14380_vm2, %v7165_v5, 0.0  ;;  %v7268_v36 = vmul.f32 %v7165_v5, %v7093_v38  ;;  %v7096_v11 = vadd.f32 %v9740_v30, %v6784_v21  ;;  %v6730_v53 = vpop.f32.mrf.mxu1  ;;  %vm14387_vm6 = vmmov %vm14361_vm0  ;;  %v14395_v30 = vld [vmem:[#allocation23_spill] sm:$0xff] }
 0x426   : >> { %v7095_v17 = vadd.f32 %v7032_v4, %v6783_v54  ;;  %v7227_v48 = vsel %vm14361_vm0, %v7166_v1, 0.0  ;;  %v7302_v25 = vadd.f32 %v7301_v58, %v7300_v22  ;;  %v6786_v18 = vadd.f32 %v9705_v46, %v13108_v42  ;;  %v7042_v13 = vpop.f32.mrf.mxu0  ;;  %vm14388_vm12 = vmmov %vm14361_vm0  ;;  %v14401_v22 = vld [vmem:[#allocation26_spill] sm:$0xff] }
 0x427   : >> { %v7226_v9 = vadd.f32 %v7225_v28, %v7224_v60  ;;  %v7303_v34 = vsel %vm14381_vm10, %v7268_v36, 0.0  ;;  %vm14383_vm15 = vcmp.lt.s32.totalorder %v14382_v47, 16  ;;  %7193 = vst.msk [vmem:[%s13089_s22 + $0x78] sm:$0xff] %vm14384_vm5, %v7096_v11  ;;  %vm14386_vm14 = vcmp.lt.s32.totalorder %v14385_v6, 16  ;;  %v9708_v16 = vpop.f32.mrf.mxu1  ;;  %vm14389_vm1 = vmmov %vm14361_vm0  ;;  %v14404_v60 = vld [vmem:[#allocation25_spill] sm:$0xff] }
 0x428   : >> { %v7168_v44 = vsel %vm14383_vm15, %v7096_v11, 0.0  ;;  %v7167_v49 = vsel %vm14386_vm14, %v7095_v17, 0.0  ;;  %7192 = vst.msk [vmem:[%s13089_s22 + $0x70] sm:$0xff] %vm14387_vm6, %v7095_v17  ;;  %v6785_v43 = vadd.f32 %v6730_v53, %v13111_v40  ;;  %v7305_v24 = vsel %vm14388_vm12, %v7269_v51, 0.0  ;;  %v9746_v12 = vpop.f32.mrf.mxu0  ;;  %vm14390_vm7 = vmmov %vm14361_vm0 }
 0x429   : >> { %v7304_v55 = vadd.f32 %v7303_v34, %v7302_v25  ;;  %v7271_v42 = vmul.f32 %v7168_v44, %v7096_v11  ;;  %v7228_v0 = vadd.f32 %v7227_v48, %v7226_v9  ;;  %v7229_v52 = vsel %vm14389_vm1, %v7167_v49, 0.0  ;;  %v6740_v3 = vpop.f32.mrf.mxu1  ;;  %vm14391_vm3 = vmmov %vm14361_vm0 }
 0x42a   : >> { %v7270_v29 = vmul.f32 %v7167_v49, %v7095_v17  ;;  %v7098_v19 = vadd.f32 %v9743_v14, %v6786_v18  ;;  %v7097_v27 = vadd.f32 %v7042_v13, %v6785_v43  ;;  %v7231_v59 = vsel %vm14390_vm7, %v7168_v44, 0.0  ;;  %v7052_v62 = vpop.f32.mrf.mxu0  ;;  %vm14394_vm11 = vmmov %vm14361_vm0  ;;  %v14411_v49 = vld [vmem:[#allocation5_spill] sm:$0xff] }
 0x42b   : >> { %v7230_v39 = vadd.f32 %v7229_v52, %v7228_v0  ;;  %v7306_v8 = vadd.f32 %v7305_v24, %v7304_v55  ;;  %v6788_v40 = vadd.f32 %v9708_v16, %v13115_v15  ;;  %vm14393_vm8 = vcmp.lt.s32.totalorder %v14392_v26, 16  ;;  %vm14397_vm4 = vmmov %vm14361_vm0  ;;  %v9711_v23 = vpop.f32.mrf.mxu1  ;;  %v14414_v24 = vld [vmem:[#allocation4_spill] sm:$0xff] }
 0x42c   : >> { %v7307_v57 = vsel %vm14391_vm3, %v7270_v29, 0.0  ;;  %v7170_v10 = vsel %vm14393_vm8, %v7098_v19, 0.0  ;;  %7195 = vst.msk [vmem:[%s13089_s22 + $0x88] sm:$0xff] %vm14394_vm11, %v7098_v19  ;;  %vm14396_vm9 = vcmp.lt.s32.totalorder %v14395_v30, 16  ;;  %v6787_v61 = vadd.f32 %v6740_v3, %v13122_v35  ;;  %vm14398_vm13 = vmmov %vm14361_vm0  ;;  %v9749_v7 = vpop.f32.mrf.mxu0 }
 0x42d   : >> { %v7169_v31 = vsel %vm14396_vm9, %v7097_v27, 0.0  ;;  %7194 = vst.msk [vmem:[%s13089_s22 + $0x80] sm:$0xff] %vm14397_vm4, %v7097_v27  ;;  %v7309_v50 = vsel %vm14398_vm13, %v7271_v42, 0.0  ;;  %v7308_v38 = vadd.f32 %v7307_v57, %v7306_v8  ;;  %v7273_v15 = vmul.f32 %v7170_v10, %v7098_v19  ;;  %vm14399_vm2 = vmmov %vm14361_vm0  ;;  %v6750_v5 = vpop.f32.mrf.mxu1  ;;  %v14423_v57 = vld [vmem:[#allocation6_spill] sm:$0xff] }
 0x42e   : >> { %v7232_v45 = vadd.f32 %v7231_v59, %v7230_v39  ;;  %v7233_v21 = vsel %vm14399_vm2, %v7169_v31, 0.0  ;;  %v7272_v2 = vmul.f32 %v7169_v31, %v7097_v27  ;;  %v7100_v4 = vadd.f32 %v9746_v12, %v6788_v40  ;;  %v7062_v54 = vpop.f32.mrf.mxu0  ;;  %vm14400_vm10 = vmmov %vm14361_vm0 }
 0x42f   : >> { %v7099_v32 = vadd.f32 %v7052_v62, %v6787_v61  ;;  %v7235_v41 = vsel %vm14361_vm0, %v7170_v10, 0.0  ;;  %v7310_v33 = vadd.f32 %v7309_v50, %v7308_v38  ;;  %v6790_v35 = vadd.f32 %v9711_v23, %v13131_v63  ;;  %vm14403_vm5 = vmmov %vm14361_vm0  ;;  %v9714_v17 = vpop.f32.mrf.mxu1  ;;  %v14420_v62 = vld [vmem:[#allocation27_spill] sm:$0xff] }
 0x430   : >> { %v7234_v1 = vadd.f32 %v7233_v21, %v7232_v45  ;;  %v7311_v58 = vsel %vm14400_vm10, %v7272_v2, 0.0  ;;  %vm14402_vm15 = vcmp.lt.s32.totalorder %v14401_v22, 16  ;;  %7197 = vst.msk [vmem:[%s13089_s22 + $0x98] sm:$0xff] %vm14403_vm5, %v7100_v4  ;;  %vm14405_vm14 = vcmp.lt.s32.totalorder %v14404_v60, 16  ;;  %vm14406_vm6 = vmmov %vm14361_vm0  ;;  %v9752_v48 = vpop.f32.mrf.mxu0 }
 0x431   : >> { %v7172_v51 = vsel %vm14402_vm15, %v7100_v4, 0.0  ;;  %v7171_v46 = vsel %vm14405_vm14, %v7099_v32, 0.0  ;;  %7196 = vst.msk [vmem:[%s13089_s22 + $0x90] sm:$0xff] %vm14406_vm6, %v7099_v32  ;;  %v6789_v14 = vadd.f32 %v6750_v5, %v13170_v56  ;;  %vm14407_vm12 = vmmov %vm14361_vm0  ;;  %v7312_v36 = vadd.f32 %v7311_v58, %v7310_v33  ;;  %v6760_v44 = vpop.f32.mrf.mxu1 }
 0x432   : >> { %v7313_v28 = vsel %vm14407_vm12, %v7273_v15, 0.0  ;;  %v7275_v63 = vmul.f32 %v7172_v51, %v7100_v4  ;;  %v7236_v11 = vadd.f32 %v7235_v41, %v7234_v1  ;;  %vm14408_vm1 = vmmov %vm14361_vm0  ;;  %v7274_v25 = vmul.f32 %v7171_v46, %v7099_v32  ;;  %v7072_v52 = vpop.f32.mrf.mxu0 }
 0x433   : >> { %v7237_v9 = vsel %vm14408_vm1, %v7171_v46, 0.0  ;;  %v7102_v18 = vadd.f32 %v9749_v7, %v6790_v35  ;;  %v7101_v53 = vadd.f32 %v7062_v54, %v6789_v14  ;;  %vm14409_vm7 = vmmov %vm14361_vm0  ;;  %v7314_v47 = vadd.f32 %v7313_v28, %v7312_v36  ;;  %v14431_v14 = vld [vmem:[#allocation45_spill] sm:$0xff] }
 0x434   : >> { %v7239_v13 = vsel %vm14409_vm7, %v7172_v51, 0.0  ;;  %v7238_v34 = vadd.f32 %v7237_v9, %v7236_v11  ;;  %v6792_v56 = vadd.f32 %v9714_v17, %v13173_v20  ;;  %vm14410_vm3 = vmmov %vm14361_vm0  ;;  %vm14412_vm8 = vcmp.lt.s32.totalorder %v14411_v49, 16 }
 0x435   : >> { %v7315_v6 = vsel %vm14410_vm3, %v7274_v25, 0.0  ;;  %v7174_v43 = vsel %vm14412_vm8, %v7102_v18, 0.0  ;;  %vm14413_vm11 = vmmov %vm14361_vm0  ;;  %vm14415_vm9 = vcmp.lt.s32.totalorder %v14414_v24, 16  ;;  %v6791_v42 = vadd.f32 %v6760_v44, %v13186_v37 }
 0x436   : >> { %7199 = vst.msk [vmem:[%s13089_s22 + $0xa8] sm:$0xff] %vm14413_vm11, %v7102_v18  ;;  %v7173_v55 = vsel %vm14415_vm9, %v7101_v53, 0.0  ;;  %vm14416_vm4 = vmmov %vm14361_vm0  ;;  %v7316_v20 = vadd.f32 %v7315_v6, %v7314_v47  ;;  %v7277_v16 = vmul.f32 %v7174_v43, %v7102_v18  ;;  %v7240_v12 = vadd.f32 %v7239_v13, %v7238_v34  ;;  %v7334_v13 = vld [vmem:[%s13498_s5] sm:$0x1] (%p4339_p6) }
 0x437   : >> { %7198 = vst.msk [vmem:[%s13089_s22 + $0xa0] sm:$0xff] %vm14416_vm4, %v7101_v53  ;;  %vm14417_vm13 = vmmov %vm14361_vm0  ;;  %v7276_v19 = vmul.f32 %v7173_v55, %v7101_v53  ;;  %v7104_v27 = vadd.f32 %v9752_v48, %v6792_v56  ;;  %v7103_v59 = vadd.f32 %v7072_v52, %v6791_v42  ;;  %v7243_v40 = vsel %vm14361_vm0, %v7174_v43, 0.0  ;;  %v13314_v56 = vld [vmem:[%s13499_s6] sm:$0x1] (%p4339_p6) }
 0x438   : >> { %v7317_v0 = vsel %vm14417_vm13, %v7275_v63, 0.0  ;;  %vm14418_vm2 = vmmov %vm14361_vm0  ;;  %vm14421_vm15 = vcmp.lt.s32.totalorder %v14420_v62, 16  ;;  %vm14424_vm14 = vcmp.lt.s32.totalorder %v14423_v57, 16  ;;  %v14432_v63 = vld [vmem:[#allocation44_spill] sm:$0xff] }
 0x439   : >> { %v7241_v29 = vsel %vm14418_vm2, %v7173_v55, 0.0  ;;  %v7318_v8 = vadd.f32 %v7317_v0, %v7316_v20  ;;  %vm14419_vm10 = vmmov %vm14361_vm0  ;;  %v7176_v37 = vsel %vm14421_vm15, %v7104_v27, 0.0  ;;  %v7175_v26 = vsel %vm14424_vm14, %v7103_v59, 0.0 }
 0x43a   : >> { %v7242_v39 = vadd.f32 %v7241_v29, %v7240_v12  ;;  %v7319_v3 = vsel %vm14419_vm10, %v7276_v19, 0.0  ;;  %vm14422_vm5 = vmmov %vm14361_vm0  ;;  %v7279_v61 = vmul.f32 %v7176_v37, %v7104_v27  ;;  %v7278_v38 = vmul.f32 %v7175_v26, %v7103_v59 }
 0x43b   : >> { %7201 = vst.msk [vmem:[%s13089_s22 + $0xb8] sm:$0xff] %vm14422_vm5, %v7104_v27  ;;  %vm14425_vm6 = vmmov %vm14361_vm0  ;;  %v7320_v10 = vadd.f32 %v7319_v3, %v7318_v8 }
 0x43c   : >> { %7200 = vst.msk [vmem:[%s13089_s22 + $0xb0] sm:$0xff] %vm14425_vm6, %v7103_v59  ;;  %v7244_v30 = vadd.f32 %v7243_v40, %v7242_v39  ;;  %vm14426_vm12 = vmmov %vm14361_vm0 }
 0x43d   : >> { %v7321_v31 = vsel %vm14426_vm12, %v7277_v16, 0.0  ;;  %vm14427_vm1 = vmmov %vm14361_vm0 }
 0x43e   : >> { %v7245_v50 = vsel %vm14427_vm1, %v7175_v26, 0.0  ;;  %v7322_v45 = vadd.f32 %v7321_v31, %v7320_v10  ;;  %vm14428_vm7 = vmmov %vm14361_vm0 }
 0x43f   : >> { %v7246_v15 = vadd.f32 %v7245_v50, %v7244_v30  ;;  %v7247_v23 = vsel %vm14428_vm7, %v7176_v37, 0.0  ;;  %vm14429_vm3 = vmmov %vm14361_vm0 }
 0x440   : >> { %v7323_v7 = vsel %vm14429_vm3, %v7278_v38, 0.0  ;;  %vm14430_vm8 = vmmov %vm14361_vm0 }
 0x441   : >> { %v7248_v21 = vadd.f32 %v7247_v23, %v7246_v15  ;;  %v7324_v2 = vadd.f32 %v7323_v7, %v7322_v45  ;;  %v7325_v4 = vsel %vm14430_vm8, %v7279_v61, 0.0 }
 0x443   : >> { %v7249_v32 = vrot.slane %v7248_v21, 4  ;;  %v7326_v41 = vadd.f32 %v7325_v4, %v7324_v2 }
 0x445   : >> { %v7250_v1 = vadd.f32 %v7249_v32, %v7248_v21  ;;  %v7327_v33 = vrot.slane %v7326_v41, 4 }
 0x447   : >> { %v7251_v35 = vrot.slane %v7250_v1, 2  ;;  %v7328_v5 = vadd.f32 %v7327_v33, %v7326_v41 }
 0x449   : >> { %v7252_v54 = vadd.f32 %v7251_v35, %v7250_v1  ;;  %v7329_v58 = vrot.slane %v7328_v5, 2 }
 0x44b   : >> { %v7253_v22 = vrot.slane %v7252_v54, 1  ;;  %v7330_v51 = vadd.f32 %v7329_v58, %v7328_v5 }
 0x44d   : >> { %v7254_v60 = vadd.f32 %v7253_v22, %v7252_v54  ;;  %v7331_v46 = vrot.slane %v7330_v51, 1 }
 0x44f   : >> { %v7255_v28 = vadd.f32 %v14431_v14, %v7254_v60   ;;  %v7332_v36 = vadd.f32 %v7331_v46, %v7330_v51  ;;  %4341 = sbr.rel (!%p4339_p6) target bundleno = 652 (0x28c), region = 167 }
 0x451   : >> { %v7333_v11 = vadd.f32 %v14432_v63, %v7332_v36   ;;  %v14434_v9 = vmov %v7255_v28  ;;  %v7336_v17 = vmul.f32 (%p4339_p6), 0.00390625, %v7255_v28 }
 0x453   : >> { %v14433_v54 = vmov %v7333_v11  ;;  %v7337_v48 = vmul.f32 (%p4339_p6), 0.00390625, %v7333_v11  ;;  %v7338_v9 = vmul.f32 (%p4339_p6), %v7336_v17, %v7336_v17 }
 0x455   : > { %v7339_v25 = vsub.f32 %v7337_v48, %v7338_v9 }
 0x457   : > { %v7340_v18 = vmax.f32 %v7339_v25, 0.0 }
 0x459   : > { %v7341_v53 = vadd.f32 1e-05, %v7340_v18 }
 0x45b   : > { %9882 = vrsqrt.f32 %v7341_v53 }
 0x468   : > { %v9883_v34 = vpop.eup %9882 }
 0x469   : > { %v13309_v47 = vmul.f32 %v9883_v34, %v7334_v13 }
 0x46b   : > { %v13317_v44 = vmul.f32 %v13309_v47, %v7336_v17 }
 0x46d   : > { %v7345_v6 = vsub.f32 %v13314_v56, %v13317_v44 }
 0x46e LB: >> { %s7352_s28 = smul.u32 192, %s9954_s20  ;;  %v14435_v49 = vld [vmem:[#allocation43_spill] sm:$0xff]  ;;  %vm14436_vm11 = vcmask 31744   ;;  %s7351_s20 = sadd.s32 1, %s9954_s20   ;;  %s9954_s20 = sphi %s13321_s20, %s7351_s20  }
 0x46f   : >> { %v13329_v43 = vrot.slane %v13309_v47, %v14435_v49  ;;  %v13341_v24 = vrot.slane %v7345_v6, %v14435_v49  ;;  %vm14437_vm9 = vmmov %vm14436_vm11  ;;  %p7348_p7 = scmp.ge.s32.totalorder %s7351_s20, 2  }
 0x470   : >> { %s13332_s29 = scalar_lea.vmem %s10021_s10, %s7352_s28  ;;  %s13335_s8 = scalar_lea.vmem %s10013_s30, %s7352_s28  ;;  %vm14438_vm4 = vmmov %vm14437_vm9 }
 0x471   : >> { %v7354_v55 = vld [vmem:[%s13332_s29] sm:$0xff]  ;;  %v7355_v42 = vld [vmem:[%s13332_s29 + $0x8] sm:$0xff]  ;;  %v7356_v12 = vld [vmem:[%s13332_s29 + $0x10] sm:$0xff] }
 0x472   : >> { %v8593_v0 = vld [vmem:[%s13335_s8 + $0x19] sm:$0xff]  ;;  %v7410_v20 = vmul.f32 %v13329_v43, %v7354_v55  ;;  %v7411_v16 = vmul.f32 %v13329_v43, %v7355_v42  ;;  %v8594_v52 = vld [vmem:[%s13335_s8 + $0x21] sm:$0xff]  ;;  %v7412_v29 = vmul.f32 %v13329_v43, %v7356_v12  ;;  %v8595_v8 = vld [vmem:[%s13335_s8 + $0x29] sm:$0xff] }
 0x473   : >> { %v7357_v19 = vld [vmem:[%s13332_s29 + $0x18] sm:$0xff]  ;;  %v7358_v27 = vld [vmem:[%s13332_s29 + $0x20] sm:$0xff]  ;;  %v7359_v37 = vld [vmem:[%s13332_s29 + $0x28] sm:$0xff] }
 0x474   : >> { %v7440_v59 = vadd.f32 %v13341_v24, %v7410_v20  ;;  %v7441_v39 = vadd.f32 %v13341_v24, %v7411_v16  ;;  %v8596_v40 = vld [vmem:[%s13335_s8 + $0x31] sm:$0xff]  ;;  %v7413_v3 = vmul.f32 %v13329_v43, %v7357_v19  ;;  %v7414_v62 = vmul.f32 %v13329_v43, %v7358_v27  ;;  %v8597_v26 = vld [vmem:[%s13335_s8 + $0x39] sm:$0xff]  ;;  %v8598_v45 = vld [vmem:[%s13335_s8 + $0x41] sm:$0xff] }
 0x475   : >> { %v7442_v57 = vadd.f32 %v13341_v24, %v7412_v29  ;;  %v7415_v10 = vmul.f32 %v13329_v43, %v7359_v37  ;;  %v7360_v30 = vld [vmem:[%s13332_s29 + $0x30] sm:$0xff]  ;;  %v7361_v31 = vld [vmem:[%s13332_s29 + $0x38] sm:$0xff]  ;;  %v7362_v23 = vld [vmem:[%s13332_s29 + $0x40] sm:$0xff] }
 0x476   : >> { %v7464_v61 = vadd.f32 %v8593_v0, %v7440_v59  ;;  %v7465_v50 = vadd.f32 %v8594_v52, %v7441_v39  ;;  %v7443_v38 = vadd.f32 %v13341_v24, %v7413_v3  ;;  %v7444_v15 = vadd.f32 %v13341_v24, %v7414_v62  ;;  %v8599_v2 = vld [vmem:[%s13335_s8 + $0x49] sm:$0xff]  ;;  %v8600_v5 = vld [vmem:[%s13335_s8 + $0x51] sm:$0xff]  ;;  %v8601_v54 = vld [vmem:[%s13335_s8 + $0x59] sm:$0xff] }
 0x477   : >> { %v7466_v7 = vadd.f32 %v8595_v8, %v7442_v57  ;;  %v7445_v21 = vadd.f32 %v13341_v24, %v7415_v10  ;;  %v7416_v4 = vmul.f32 %v13329_v43, %v7360_v30  ;;  %v7417_v32 = vmul.f32 %v13329_v43, %v7361_v31  ;;  %v7363_v41 = vld [vmem:[%s13332_s29 + $0x48] sm:$0xff]  ;;  %v7364_v1 = vld [vmem:[%s13332_s29 + $0x50] sm:$0xff]  ;;  %v7365_v51 = vld [vmem:[%s13332_s29 + $0x58] sm:$0xff] }
 0x478   : >> { %7488 = vst.msk [vmem:[%s13332_s29] sm:$0xff] %vm14436_vm11, %v7464_v61  ;;  %v7467_v33 = vadd.f32 %v8596_v40, %v7443_v38  ;;  %v7468_v35 = vadd.f32 %v8597_v26, %v7444_v15  ;;  %v7418_v58 = vmul.f32 %v13329_v43, %v7362_v23  ;;  %v7419_v22 = vmul.f32 %v13329_v43, %v7363_v41  ;;  %v8602_v28 = vld [vmem:[%s13335_s8 + $0x61] sm:$0xff]  ;;  %vm14439_vm13 = vmmov %vm14438_vm4  ;;  %v8603_v9 = vld [vmem:[%s13335_s8 + $0x69] sm:$0xff] }
 0x479   : >> { %7489 = vst.msk [vmem:[%s13332_s29 + $0x8] sm:$0xff] %vm14437_vm9, %v7465_v50  ;;  %v7469_v60 = vadd.f32 %v8598_v45, %v7445_v21  ;;  %v7446_v46 = vadd.f32 %v13341_v24, %v7416_v4  ;;  %v7447_v14 = vadd.f32 %v13341_v24, %v7417_v32  ;;  %v7420_v36 = vmul.f32 %v13329_v43, %v7364_v1  ;;  %v7366_v63 = vld [vmem:[%s13332_s29 + $0x60] sm:$0xff]  ;;  %v7367_v11 = vld [vmem:[%s13332_s29 + $0x68] sm:$0xff]  ;;  %vm14440_vm2 = vmmov %vm14438_vm4 }
 0x47a   : >> { %7490 = vst.msk [vmem:[%s13332_s29 + $0x10] sm:$0xff] %vm14438_vm4, %v7466_v7  ;;  %v7448_v17 = vadd.f32 %v13341_v24, %v7418_v58  ;;  %v7449_v48 = vadd.f32 %v13341_v24, %v7419_v22  ;;  %v8604_v25 = vld [vmem:[%s13335_s8 + $0x71] sm:$0xff]  ;;  %v7421_v18 = vmul.f32 %v13329_v43, %v7365_v51  ;;  %v7422_v53 = vmul.f32 %v13329_v43, %v7366_v63  ;;  %vm14441_vm0 = vmmov %vm14440_vm2  ;;  %v8605_v0 = vld [vmem:[%s13335_s8 + $0x79] sm:$0xff] }
 0x47b   : >> { %7491 = vst.msk [vmem:[%s13332_s29 + $0x18] sm:$0xff] %vm14439_vm13, %v7467_v33  ;;  %v7368_v13 = vld [vmem:[%s13332_s29 + $0x70] sm:$0xff]  ;;  %v7470_v34 = vadd.f32 %v8599_v2, %v7446_v46  ;;  %v7471_v55 = vadd.f32 %v8600_v5, %v7447_v14  ;;  %v7450_v42 = vadd.f32 %v13341_v24, %v7420_v36  ;;  %v7423_v20 = vmul.f32 %v13329_v43, %v7367_v11  ;;  %v7369_v16 = vld [vmem:[%s13332_s29 + $0x78] sm:$0xff]  ;;  %v7370_v12 = vld [vmem:[%s13332_s29 + $0x80] sm:$0xff] }
 0x47c   : >> { %7492 = vst.msk [vmem:[%s13332_s29 + $0x20] sm:$0xff] %vm14440_vm2, %v7468_v35  ;;  %v7472_v52 = vadd.f32 %v8601_v54, %v7448_v17  ;;  %v7473_v29 = vadd.f32 %v8602_v28, %v7449_v48  ;;  %v7451_v19 = vadd.f32 %v13341_v24, %v7421_v18  ;;  %v7452_v27 = vadd.f32 %v13341_v24, %v7422_v53  ;;  %v8606_v59 = vld [vmem:[%s13335_s8 + $0x81] sm:$0xff]  ;;  %vm14442_vm10 = vmmov %vm14441_vm0  ;;  %v7372_v37 = vld [vmem:[%s13332_s29 + $0x90] sm:$0xff] }
 0x47d   : >> { %7493 = vst.msk [vmem:[%s13332_s29 + $0x28] sm:$0xff] %vm14441_vm0, %v7469_v60  ;;  %v7371_v39 = vld [vmem:[%s13332_s29 + $0x88] sm:$0xff]  ;;  %vm14443_vm15 = vmmov %vm14441_vm0  ;;  %v7474_v8 = vadd.f32 %v8603_v9, %v7450_v42  ;;  %v7453_v40 = vadd.f32 %v13341_v24, %v7423_v20  ;;  %v7424_v3 = vmul.f32 %v13329_v43, %v7368_v13  ;;  %v7425_v62 = vmul.f32 %v13329_v43, %v7369_v16  ;;  %v7373_v57 = vld [vmem:[%s13332_s29 + $0x98] sm:$0xff] }
 0x47e   : >> { %7494 = vst.msk [vmem:[%s13332_s29 + $0x30] sm:$0xff] %vm14442_vm10, %v7470_v34  ;;  %vm14444_vm5 = vmmov %vm14441_vm0  ;;  %v7475_v26 = vadd.f32 %v8604_v25, %v7451_v19  ;;  %v7476_v10 = vadd.f32 %v8605_v0, %v7452_v27  ;;  %v8607_v30 = vld [vmem:[%s13335_s8 + $0x89] sm:$0xff]  ;;  %v8608_v31 = vld [vmem:[%s13335_s8 + $0x91] sm:$0xff]  ;;  %v7426_v61 = vmul.f32 %v13329_v43, %v7370_v12  ;;  %v7427_v50 = vmul.f32 %v13329_v43, %v7371_v39 }
 0x47f   : >> { %7495 = vst.msk [vmem:[%s13332_s29 + $0x38] sm:$0xff] %vm14443_vm15, %v7471_v55  ;;  %vm14445_vm14 = vmmov %vm14441_vm0  ;;  %v7374_v38 = vld [vmem:[%s13332_s29 + $0xa0] sm:$0xff]  ;;  %v7477_v15 = vadd.f32 %v8606_v59, %v7453_v40  ;;  %v7454_v45 = vadd.f32 %v13341_v24, %v7424_v3  ;;  %v7455_v23 = vadd.f32 %v13341_v24, %v7425_v62  ;;  %v7428_v2 = vmul.f32 %v13329_v43, %v7372_v37  ;;  %v7375_v4 = vld [vmem:[%s13332_s29 + $0xa8] sm:$0xff] }
 0x480   : >> { %7496 = vst.msk [vmem:[%s13332_s29 + $0x40] sm:$0xff] %vm14444_vm5, %v7472_v52  ;;  %vm14446_vm6 = vmmov %vm14441_vm0  ;;  %v8609_v7 = vld [vmem:[%s13335_s8 + $0x99] sm:$0xff]  ;;  %v8610_v21 = vld [vmem:[%s13335_s8 + $0xa1] sm:$0xff]  ;;  %v7456_v32 = vadd.f32 %v13341_v24, %v7426_v61  ;;  %v7457_v41 = vadd.f32 %v13341_v24, %v7427_v50  ;;  %v7429_v33 = vmul.f32 %v13329_v43, %v7373_v57  ;;  %v7430_v35 = vmul.f32 %v13329_v43, %v7374_v38 }
 0x481   : >> { %7497 = vst.msk [vmem:[%s13332_s29 + $0x48] sm:$0xff] %vm14445_vm14, %v7473_v29  ;;  %vm14447_vm12 = vmmov %vm14441_vm0  ;;  %v8611_v1 = vld [vmem:[%s13335_s8 + $0xa9] sm:$0xff]  ;;  %v7377_v54 = vld [vmem:[%s13332_s29 + $0xb8] sm:$0xff]  ;;  %v7478_v58 = vadd.f32 %v8607_v30, %v7454_v45  ;;  %v7479_v22 = vadd.f32 %v8608_v31, %v7455_v23  ;;  %v7458_v51 = vadd.f32 %v13341_v24, %v7428_v2  ;;  %v7431_v14 = vmul.f32 %v13329_v43, %v7375_v4 }
 0x482   : >> { %7498 = vst.msk [vmem:[%s13332_s29 + $0x50] sm:$0xff] %vm14446_vm6, %v7474_v8  ;;  %vm14448_vm1 = vmmov %vm14441_vm0  ;;  %v7376_v5 = vld [vmem:[%s13332_s29 + $0xb0] sm:$0xff]  ;;  %v8613_v46 = vld [vmem:[%s13335_s8 + $0xb9] sm:$0xff]  ;;  %v7480_v28 = vadd.f32 %v8609_v7, %v7456_v32  ;;  %v7481_v36 = vadd.f32 %v8610_v21, %v7457_v41  ;;  %v7459_v63 = vadd.f32 %v13341_v24, %v7429_v33  ;;  %v7460_v11 = vadd.f32 %v13341_v24, %v7430_v35 }
 0x483   : >> { %7499 = vst.msk [vmem:[%s13332_s29 + $0x58] sm:$0xff] %vm14447_vm12, %v7475_v26  ;;  %vm14449_vm7 = vmmov %vm14441_vm0  ;;  %v8612_v60 = vld [vmem:[%s13335_s8 + $0xb1] sm:$0xff]  ;;  %v8614_v17 = vld [vmem:[%s13335_s8 + $0xc1] sm:$0xff]  ;;  %v7482_v48 = vadd.f32 %v8611_v1, %v7458_v51  ;;  %v7461_v9 = vadd.f32 %v13341_v24, %v7431_v14  ;;  %v7432_v25 = vmul.f32 %v13329_v43, %v7376_v5  ;;  %v7433_v18 = vmul.f32 %v13329_v43, %v7377_v54 }
 0x484   : >> { %7500 = vst.msk [vmem:[%s13332_s29 + $0x60] sm:$0xff] %vm14448_vm1, %v7476_v10  ;;  %vm14450_vm3 = vmmov %vm14441_vm0  ;;  %v7483_v53 = vadd.f32 %v8612_v60, %v7459_v63  ;;  %v7484_v13 = vadd.f32 %v8613_v46, %v7460_v11  ;;  %v8615_v34 = vld [vmem:[%s13335_s8 + $0xc9] sm:$0xff]  ;;  %v8616_v55 = vld [vmem:[%s13335_s8 + $0xd1] sm:$0xff] }
 0x485   : >> { %7501 = vst.msk [vmem:[%s13332_s29 + $0x68] sm:$0xff] %vm14449_vm7, %v7477_v15  ;;  %vm14451_vm8 = vmmov %vm14441_vm0  ;;  %v7485_v42 = vadd.f32 %v8614_v17, %v7461_v9  ;;  %v7462_v0 = vadd.f32 %v13341_v24, %v7432_v25  ;;  %v7463_v20 = vadd.f32 %v13341_v24, %v7433_v18 }
 0x486   : >> { %7502 = vst.msk [vmem:[%s13332_s29 + $0x70] sm:$0xff] %vm14450_vm3, %v7478_v58  ;;  %vm14452_vm11 = vmmov %vm14441_vm0 }
 0x487   : >> { %7503 = vst.msk [vmem:[%s13332_s29 + $0x78] sm:$0xff] %vm14451_vm8, %v7479_v22  ;;  %vm14453_vm9 = vmmov %vm14441_vm0  ;;  %v7486_v43 = vadd.f32 %v8615_v34, %v7462_v0  ;;  %v7487_v16 = vadd.f32 %v8616_v55, %v7463_v20 }
 0x488   : >> { %7504 = vst.msk [vmem:[%s13332_s29 + $0x80] sm:$0xff] %vm14452_vm11, %v7480_v28  ;;  %vm14454_vm4 = vmmov %vm14441_vm0 }
 0x489   : >> { %7505 = vst.msk [vmem:[%s13332_s29 + $0x88] sm:$0xff] %vm14453_vm9, %v7481_v36  ;;  %vm14455_vm13 = vmmov %vm14441_vm0 }
 0x48a   : >> { %7506 = vst.msk [vmem:[%s13332_s29 + $0x90] sm:$0xff] %vm14454_vm4, %v7482_v48  ;;  %vm14456_vm2 = vmmov %vm14441_vm0 }
 0x48b   : >> { %7507 = vst.msk [vmem:[%s13332_s29 + $0x98] sm:$0xff] %vm14455_vm13, %v7483_v53  ;;  %vm14457_vm10 = vmmov %vm14441_vm0  ;;  %7350 = sbr.rel (!%p7348_p7) target bundleno = 1134 (0x46e), region = 178 }
 0x48c   : >> { %7508 = vst.msk [vmem:[%s13332_s29 + $0xa0] sm:$0xff] %vm14456_vm2, %v7484_v13  ;;  %vm14458_vm15 = vmmov %vm14441_vm0 }
 0x48d   : >> { %7509 = vst.msk [vmem:[%s13332_s29 + $0xa8] sm:$0xff] %vm14441_vm0, %v7485_v42 }
 0x48e   : >> { %7510 = vst.msk [vmem:[%s13332_s29 + $0xb0] sm:$0xff] %vm14457_vm10, %v7486_v43 }
 0x48f   : >> { %7511 = vst.msk [vmem:[%s13332_s29 + $0xb8] sm:$0xff] %vm14458_vm15, %v7487_v16 }
 0x490 PF: > { %s17_s24 = sadd.s32 1, %s9922_s24  }
 0x491   : > { %p14_p8 = scmp.ge.s32.totalorder %s17_s24, 4  }
 0x493   :  { %16 = sbr.rel (!%p14_p8) target bundleno = 1 (0x1), region = 189 }

</bundles_post_ra>
